<compile_context>
chip_gen: v6e
topology: v6e:2x2x1
jax: 0.10.0
libtpu: 0.0.40
codegen_flags: <defaults>
</compile_context>

<pallas_src>
import functools

import jax
import jax.numpy as jnp
from jax.experimental import pallas as pl
from jax.experimental.pallas import tpu as pltpu

EPS = 1e-5     # nn.GroupNorm default eps
W_HALO = 8     # sublane-aligned left halo for the y1 scratch interior


def _round_up(x, m):
    return (x + m - 1) // m * m


# ---------------------------------------------------------------------------
# Fused kernel: conv1 + GN + ReLU + conv2 + GN + residual(+1x1 conv + GN) + ReLU
# One batch element per grid step; GroupNorm(num_groups=1) stats are whole-sample,
# exact because the whole sample lives in this block.
# TODO(synk): for very large H*W*C (per-sample block approaching VMEM), strip-tile hw
#             with cross-tile sum/sum-of-squares accumulation (two-pass GroupNorm).
# TODO(synk): for small-spatial stages (hw << 256), block several batch samples per
#             grid step (M = nb*hw) with per-sample GN stats to fill the MXU M dim.
# TODO(synk): when B == 1 on v7x, add a second "parallel" axis (split Ho) so both
#             TensorCores are fed.
# ---------------------------------------------------------------------------
def _resnet_block_kernel(*refs, s, Ho, Wo, c_real, project):
    if project:
        (planes_ref, w1_ref, w2_ref, wr_ref,
         g1_ref, b1_ref, g2_ref, b2_ref, o_ref, y1p_ref) = refs
    else:
        (planes_ref, w1_ref, w2_ref,
         g1_ref, b1_ref, g2_ref, b2_ref, o_ref, y1p_ref) = refs
        wr_ref = None

    hw = Ho * Wo
    cp = o_ref.shape[-1]                 # lane-padded channel count
    cin = planes_ref.shape[-1]           # real input channels (unpadded in HBM)
    inv_n = 1.0 / float(hw * c_real)     # stats over REAL elements only
    n_pad = float(hw * (cp - c_real))    # padded-lane element count

    def gnorm(z, g, b):
        # GroupNorm(num_groups=1), mean-shifted variance.  Padded lanes of z are
        # exactly zero, so the real-element sum of squares is the full-array sum
        # minus the padded lanes' (0 - mu)^2 contribution.
        mu = jnp.sum(z) * inv_n
        d = z - mu
        var = (jnp.sum(d * d) - n_pad * (mu * mu)) * inv_n
        # g/b are zero in padded lanes -> padded output lanes stay exactly zero.
        return d * jax.lax.rsqrt(var + EPS) * g + b

    # ---- conv1 (3x3, stride s): 9 shifted bf16 reads of the space-to-depth planes.
    # Tiny Cin (9*Cin <= 128): fold taps into one small-K dot (buffer <= hw x 128 bf16).
    # Otherwise: 9 accumulating dots, no patches buffer at all.
    fold1 = (9 * cin) <= 128
    taps1 = []
    acc1 = None
    center = None
    for ky in range(3):
        for kx in range(3):
            p = (ky % s) * s + (kx % s)                       # which parity plane
            r0, c0 = ky // s, kx // s                         # offset inside plane
            t = planes_ref[p, r0:r0 + Ho, c0:c0 + Wo, :].reshape(hw, cin)  # bf16
            if ky == 1 and kx == 1:
                center = t            # == x[::s, ::s]; reused by the residual branch
            if fold1:
                taps1.append(t)
            else:
                k = ky * 3 + kx
                d = jnp.dot(t, w1_ref[k * cin:(k + 1) * cin, :],
                            preferred_element_type=jnp.float32)
                acc1 = d if acc1 is None else acc1 + d
    if fold1:
        acc1 = jnp.dot(jnp.concatenate(taps1, axis=-1), w1_ref[...],
                       preferred_element_type=jnp.float32)    # (hw, cp) f32
    y1 = jnp.maximum(gnorm(acc1, g1_ref[...], b1_ref[...]), 0.0)

    # ---- refresh only the thin zero halo of the bf16 y1 scratch, then store interior.
    wsc = y1p_ref.shape[1]
    zrow = jnp.zeros((1, wsc, cp), y1p_ref.dtype)
    zcol = jnp.zeros((Ho + 2, 1, cp), y1p_ref.dtype)
    y1p_ref[0:1, :, :] = zrow                                   # top halo row
    y1p_ref[Ho + 1:Ho + 2, :, :] = zrow                         # bottom halo row
    y1p_ref[:, W_HALO - 1:W_HALO, :] = zcol                     # left halo column
    y1p_ref[:, W_HALO + Wo:W_HALO + Wo + 1, :] = zcol           # right halo column
    y1p_ref[1:Ho + 1, W_HALO:W_HALO + Wo, :] = (
        y1.reshape(Ho, Wo, cp).astype(y1p_ref.dtype))

    # ---- conv2 (3x3, stride 1): 9 shifted bf16 reads of the VMEM-resident y1,
    # accumulating dots (no (hw, 9*cp) patches buffer).
    acc2 = None
    for ky in range(3):
        for kx in range(3):
            c0 = W_HALO - 1 + kx
            t = y1p_ref[ky:ky + Ho, c0:c0 + Wo, :].reshape(hw, cp)   # bf16
            k = ky * 3 + kx
            d = jnp.dot(t, w2_ref[k * cp:(k + 1) * cp, :],
                        preferred_element_type=jnp.float32)
            acc2 = d if acc2 is None else acc2 + d
    y2 = gnorm(acc2, g2_ref[...], b2_ref[...])

    # ---- residual branch: reuse conv1's center tap (== x[::s, ::s]); no HBM read.
    if project:
        r = jnp.dot(center, wr_ref[...], preferred_element_type=jnp.float32)
        r = gnorm(r, g2_ref[...], b2_ref[...])
    else:
        r = center.astype(jnp.float32)
        if cp > c_real:
            r = jnp.concatenate(
                [r, jnp.zeros((hw, cp - c_real), jnp.float32)], axis=-1)

    o_ref[0] = jnp.maximum(y2 + r, 0.0).astype(o_ref.dtype)


def _vmem_limit_bytes():
    # ~3/4 of per-core VMEM: ~48 MiB on v7x (64 MiB), ~96 MiB on v5e/v6e (128 MiB).
    try:
        cap = getattr(pltpu.get_tpu_info(), "vmem_capacity_bytes", None)
        if cap:
            return int(cap) * 3 // 4
    except Exception:
        pass
    return 48 * 1024 * 1024


# ---------------------------------------------------------------------------
# ResNetBlock forward (Pallas-backed). Accepts/returns NCHW (PyTorch convention).
# TODO(synk): when chaining blocks, keep activations NHWC bf16 between blocks
#             (out_dtype=jnp.bfloat16, skip the NCHW transposes) to halve writeback.
# TODO(synk): for very small Cin (3/4) a further win is pre-folding the kx taps into
#             the channel dim on the host so conv1's lane dim isn't 32x padded.
# ---------------------------------------------------------------------------
def resnet_block_forward(x_nchw, params, strides=(1, 1), out_dtype=jnp.float32):
    assert strides[0] == strides[1]
    s = int(strides[0])
    w1, w2, wr = params["w1"], params["w2"], params["wr"]
    g1, b1, g2, b2 = params["g1"], params["b1"], params["g2"], params["b2"]

    B, Cin, H, W = x_nchw.shape
    Cout = w1.shape[0]
    Cp = _round_up(Cout, 128)                    # lane-dense output channels
    Ho = (H - 1) // s + 1
    Wo = (W - 1) // s + 1
    HW = Ho * Wo
    project = (Cin, H, W) != (Cout, Ho, Wo)      # residual.shape != conv-path shape

    x = jnp.transpose(x_nchw, (0, 2, 3, 1)).astype(jnp.float32)     # NHWC

    # --- space-to-depth of the zero-padded input (single data-movement pass).
    # Plane p = ip*s + jp holds xpad[:, ip::s, jp::s, :]; in-kernel tap (ky, kx) reads
    # plane (ky % s, kx % s) at static offset (ky // s, kx // s).
    Hpl = max(Ho + 2 // s, (H + 2 + s - 1) // s)
    Wpl = max(Wo + 2 // s, (W + 2 + s - 1) // s)
    xpad = jnp.pad(x, ((0, 0), (1, s * Hpl - H - 1), (1, s * Wpl - W - 1), (0, 0)))
    planes = (xpad.reshape(B, Hpl, s, Wpl, s, Cin)
                  .transpose(0, 2, 4, 1, 3, 5)
                  .reshape(B * s * s, Hpl, Wpl, Cin)
                  .astype(jnp.bfloat16))

    # --- weights: taps folded along the contraction dim, Cout lane-padded, bf16.
    w1f = jnp.pad(jnp.transpose(w1, (2, 3, 1, 0)),                   # (3,3,Cin,Cout)
                  ((0, 0), (0, 0), (0, 0), (0, Cp - Cout))
                  ).reshape(9 * Cin, Cp).astype(jnp.bfloat16)
    w2f = jnp.pad(jnp.transpose(w2, (2, 3, 1, 0)),                   # (3,3,Cout,Cout)
                  ((0, 0), (0, 0), (0, Cp - Cout), (0, Cp - Cout))
                  ).reshape(9 * Cp, Cp).astype(jnp.bfloat16)

    def _pad_vec(v):
        return jnp.pad(v.astype(jnp.float32), (0, Cp - Cout)).reshape(1, Cp)

    g1p, b1p, g2p, b2p = _pad_vec(g1), _pad_vec(b1), _pad_vec(g2), _pad_vec(b2)

    vec_spec = pl.BlockSpec((1, Cp), lambda b: (0, 0))
    in_specs = [
        pl.BlockSpec((s * s, Hpl, Wpl, Cin), lambda b: (b, 0, 0, 0)),
        pl.BlockSpec((9 * Cin, Cp), lambda b: (0, 0)),
        pl.BlockSpec((9 * Cp, Cp), lambda b: (0, 0)),
    ]
    operands = [planes, w1f, w2f]
    if project:
        wrf = jnp.pad(jnp.transpose(wr[:, :, 0, 0], (1, 0)),
                      ((0, 0), (0, Cp - Cout))).astype(jnp.bfloat16)  # (Cin, Cp)
        in_specs.append(pl.BlockSpec((Cin, Cp), lambda b: (0, 0)))
        operands.append(wrf)
    in_specs += [vec_spec] * 4
    operands += [g1p, b1p, g2p, b2p]

    # --- bf16 y1 scratch with 8-wide (sublane-aligned) left halo.
    Wsc = _round_up(W_HALO + Wo + 1, 8)

    flops = 2 * B * HW * Cp * (9 * Cin + 9 * Cp + (Cin if project else 0))
    bytes_accessed = (B * s * s * Hpl * Wpl * Cin * 2
                      + 9 * Cin * Cp * 2 + 9 * Cp * Cp * 2
                      + (Cin * Cp * 2 if project else 0)
                      + 4 * Cp * 4
                      + B * HW * Cp * jnp.dtype(out_dtype).itemsize)

    out = pl.pallas_call(
        functools.partial(_resnet_block_kernel,
                          s=s, Ho=Ho, Wo=Wo, c_real=Cout, project=project),
        out_shape=jax.ShapeDtypeStruct((B, HW, Cp), out_dtype),
        grid=(B,),
        in_specs=in_specs,
        out_specs=pl.BlockSpec((1, HW, Cp), lambda b: (b, 0, 0)),
        scratch_shapes=[pltpu.VMEM((Ho + 2, Wsc, Cp), jnp.bfloat16)],  # padded y1
        compiler_params=pltpu.CompilerParams(
            dimension_semantics=("parallel",),
            vmem_limit_bytes=_vmem_limit_bytes(),
        ),
        cost_estimate=pl.CostEstimate(
            flops=int(flops), transcendentals=int(3 * B),
            bytes_accessed=int(bytes_accessed)),
    )(*operands)

    out = out[:, :, :Cout].reshape(B, Ho, Wo, Cout).astype(jnp.float32)
    return jnp.transpose(out, (0, 3, 1, 2))      # back to NCHW


# ---------------------------------------------------------------------------
# Pure-JAX reference (for correctness check only)
# ---------------------------------------------------------------------------
def _groupnorm1_ref(x, g, b):  # NCHW, num_groups=1
    mu = jnp.mean(x, axis=(1, 2, 3), keepdims=True)
    var = jnp.mean(jnp.square(x - mu), axis=(1, 2, 3), keepdims=True)
    return (x - mu) * jax.lax.rsqrt(var + EPS) * g[None, :, None, None] + b[None, :, None, None]


def resnet_block_reference(x, params, strides):
    conv = functools.partial(
        jax.lax.conv_general_dilated,
        dimension_numbers=("NCHW", "OIHW", "NCHW"),
        precision=jax.lax.Precision.HIGHEST,
    )
    residual = x
    h = conv(x, params["w1"], window_strides=strides, padding=((1, 1), (1, 1)))
    h = jax.nn.relu(_groupnorm1_ref(h, params["g1"], params["b1"]))
    h = conv(h, params["w2"], window_strides=(1, 1), padding=((1, 1), (1, 1)))
    h = _groupnorm1_ref(h, params["g2"], params["b2"])
    if residual.shape != h.shape:
        residual = conv(residual, params["wr"], window_strides=strides, padding=((0, 0), (0, 0)))
        residual = _groupnorm1_ref(residual, params["g2"], params["b2"])
    return jax.nn.relu(residual + h)


if __name__ == "__main__":
    key = jax.random.PRNGKey(0)

    def make_params(k, cin, cout):
        ks = jax.random.split(k, 7)
        return dict(
            w1=0.1 * jax.random.normal(ks[0], (cout, cin, 3, 3), jnp.float32),
            w2=0.1 * jax.random.normal(ks[1], (cout, cout, 3, 3), jnp.float32),
            wr=0.1 * jax.random.normal(ks[2], (cout, cin, 1, 1), jnp.float32),
            g1=1.0 + 0.1 * jax.random.normal(ks[3], (cout,), jnp.float32),
            b1=0.1 * jax.random.normal(ks[4], (cout,), jnp.float32),
            g2=1.0 + 0.1 * jax.random.normal(ks[5], (cout,), jnp.float32),
            b2=0.1 * jax.random.normal(ks[6], (cout,), jnp.float32),
        )

    B, H, W = 2, 16, 16
    cases = [
        (4, 8, (2, 2)),   # projection path: stride 2, channel change
        (8, 8, (1, 1)),   # identity path: residual is the raw input
    ]
    for cin, cout, strides in cases:
        k_x, k_p, key = jax.random.split(key, 3)
        x = jax.random.normal(k_x, (B, cin, H, W), jnp.float32)
        params = make_params(k_p, cin, cout)

        fwd = jax.jit(functools.partial(resnet_block_forward, strides=strides))
        out = jax.block_until_ready(fwd(x, params))

        ref = resnet_block_reference(x, params, strides)
        assert out.shape == ref.shape == (B, cout, (H - 1) // strides[0] + 1,
                                          (W - 1) // strides[1] + 1)
        # bf16 MXU operands / bf16 residual tap -> slightly looser tolerance than f32
        err = float(jnp.max(jnp.abs(out - ref)))
        assert jnp.allclose(out, ref, rtol=2e-2, atol=2e-2), (cin, cout, strides, err)

    print("KERNEL_OK")
</pallas_src>

<mosaic_0001>
module attributes {stable_mosaic.version = 11 : i64} {
  func.func @_resnet_block_kernel(%arg0: i32, %arg1: memref<4x9x9x4xbf16, #tpu.memory_space<vmem>>, %arg2: memref<36x128xbf16, #tpu.memory_space<vmem>>, %arg3: memref<1152x128xbf16, #tpu.memory_space<vmem>>, %arg4: memref<4x128xbf16, #tpu.memory_space<vmem>>, %arg5: memref<1x128xf32, #tpu.memory_space<vmem>>, %arg6: memref<1x128xf32, #tpu.memory_space<vmem>>, %arg7: memref<1x128xf32, #tpu.memory_space<vmem>>, %arg8: memref<1x128xf32, #tpu.memory_space<vmem>>, %arg9: memref<1x64x128xf32, #tpu.memory_space<vmem>>, %arg10: memref<10x24x128xbf16, #tpu.memory_space<vmem>>) attributes {dimension_semantics = [#tpu.dimension_semantics<parallel>], iteration_bounds = array<i64: 2>, scalar_prefetch = 0 : i64, scratch_operands = 1 : i64, tpu.core_type = #tpu.core_type<tc>, window_params = [{transform_indices = @transform_0, window_bounds = array<i64: 4, 9, 9, 4>}, {pipeline_mode = #tpu.pipeline_mode<synchronous>, transform_indices = @transform_1, window_bounds = array<i64: 36, 128>}, {pipeline_mode = #tpu.pipeline_mode<synchronous>, transform_indices = @transform_2, window_bounds = array<i64: 1152, 128>}, {pipeline_mode = #tpu.pipeline_mode<synchronous>, transform_indices = @transform_3, window_bounds = array<i64: 4, 128>}, {pipeline_mode = #tpu.pipeline_mode<synchronous>, transform_indices = @transform_4, window_bounds = array<i64: 1, 128>}, {pipeline_mode = #tpu.pipeline_mode<synchronous>, transform_indices = @transform_5, window_bounds = array<i64: 1, 128>}, {pipeline_mode = #tpu.pipeline_mode<synchronous>, transform_indices = @transform_6, window_bounds = array<i64: 1, 128>}, {pipeline_mode = #tpu.pipeline_mode<synchronous>, transform_indices = @transform_7, window_bounds = array<i64: 1, 128>}, {transform_indices = @transform_8, window_bounds = array<i64: 1, 64, 128>}]} {
    %c0 = arith.constant 0 : index
    %c0_0 = arith.constant 0 : index
    %c0_1 = arith.constant 0 : index
    %c0_2 = arith.constant 0 : index
    %0 = vector.load %arg1[%c0, %c0_0, %c0_1, %c0_2] : memref<4x9x9x4xbf16, #tpu.memory_space<vmem>>, vector<1x8x8x4xbf16>
    %1 = vector.shape_cast %0 : vector<1x8x8x4xbf16> to vector<8x8x4xbf16>
    %2 = vector.shape_cast %1 : vector<8x8x4xbf16> to vector<64x4xbf16>
    %c1 = arith.constant 1 : index
    %c0_3 = arith.constant 0 : index
    %c0_4 = arith.constant 0 : index
    %c0_5 = arith.constant 0 : index
    %3 = vector.load %arg1[%c1, %c0_3, %c0_4, %c0_5] : memref<4x9x9x4xbf16, #tpu.memory_space<vmem>>, vector<1x8x8x4xbf16>
    %4 = vector.shape_cast %3 : vector<1x8x8x4xbf16> to vector<8x8x4xbf16>
    %5 = vector.shape_cast %4 : vector<8x8x4xbf16> to vector<64x4xbf16>
    %c0_6 = arith.constant 0 : index
    %c0_7 = arith.constant 0 : index
    %c1_8 = arith.constant 1 : index
    %c0_9 = arith.constant 0 : index
    %6 = vector.load %arg1[%c0_6, %c0_7, %c1_8, %c0_9] : memref<4x9x9x4xbf16, #tpu.memory_space<vmem>>, vector<1x8x8x4xbf16>
    %7 = vector.shape_cast %6 : vector<1x8x8x4xbf16> to vector<8x8x4xbf16>
    %8 = vector.shape_cast %7 : vector<8x8x4xbf16> to vector<64x4xbf16>
    %c2 = arith.constant 2 : index
    %c0_10 = arith.constant 0 : index
    %c0_11 = arith.constant 0 : index
    %c0_12 = arith.constant 0 : index
    %9 = vector.load %arg1[%c2, %c0_10, %c0_11, %c0_12] : memref<4x9x9x4xbf16, #tpu.memory_space<vmem>>, vector<1x8x8x4xbf16>
    %10 = vector.shape_cast %9 : vector<1x8x8x4xbf16> to vector<8x8x4xbf16>
    %11 = vector.shape_cast %10 : vector<8x8x4xbf16> to vector<64x4xbf16>
    %c3 = arith.constant 3 : index
    %c0_13 = arith.constant 0 : index
    %c0_14 = arith.constant 0 : index
    %c0_15 = arith.constant 0 : index
    %12 = vector.load %arg1[%c3, %c0_13, %c0_14, %c0_15] : memref<4x9x9x4xbf16, #tpu.memory_space<vmem>>, vector<1x8x8x4xbf16>
    %13 = vector.shape_cast %12 : vector<1x8x8x4xbf16> to vector<8x8x4xbf16>
    %14 = vector.shape_cast %13 : vector<8x8x4xbf16> to vector<64x4xbf16>
    %c2_16 = arith.constant 2 : index
    %c0_17 = arith.constant 0 : index
    %c1_18 = arith.constant 1 : index
    %c0_19 = arith.constant 0 : index
    %15 = vector.load %arg1[%c2_16, %c0_17, %c1_18, %c0_19] : memref<4x9x9x4xbf16, #tpu.memory_space<vmem>>, vector<1x8x8x4xbf16>
    %16 = vector.shape_cast %15 : vector<1x8x8x4xbf16> to vector<8x8x4xbf16>
    %17 = vector.shape_cast %16 : vector<8x8x4xbf16> to vector<64x4xbf16>
    %c0_20 = arith.constant 0 : index
    %c1_21 = arith.constant 1 : index
    %c0_22 = arith.constant 0 : index
    %c0_23 = arith.constant 0 : index
    %18 = vector.load %arg1[%c0_20, %c1_21, %c0_22, %c0_23] : memref<4x9x9x4xbf16, #tpu.memory_space<vmem>>, vector<1x8x8x4xbf16>
    %19 = vector.shape_cast %18 : vector<1x8x8x4xbf16> to vector<8x8x4xbf16>
    %20 = vector.shape_cast %19 : vector<8x8x4xbf16> to vector<64x4xbf16>
    %c1_24 = arith.constant 1 : index
    %c1_25 = arith.constant 1 : index
    %c0_26 = arith.constant 0 : index
    %c0_27 = arith.constant 0 : index
    %21 = vector.load %arg1[%c1_24, %c1_25, %c0_26, %c0_27] : memref<4x9x9x4xbf16, #tpu.memory_space<vmem>>, vector<1x8x8x4xbf16>
    %22 = vector.shape_cast %21 : vector<1x8x8x4xbf16> to vector<8x8x4xbf16>
    %23 = vector.shape_cast %22 : vector<8x8x4xbf16> to vector<64x4xbf16>
    %c0_28 = arith.constant 0 : index
    %c1_29 = arith.constant 1 : index
    %c1_30 = arith.constant 1 : index
    %c0_31 = arith.constant 0 : index
    %24 = vector.load %arg1[%c0_28, %c1_29, %c1_30, %c0_31] : memref<4x9x9x4xbf16, #tpu.memory_space<vmem>>, vector<1x8x8x4xbf16>
    %25 = vector.shape_cast %24 : vector<1x8x8x4xbf16> to vector<8x8x4xbf16>
    %26 = vector.shape_cast %25 : vector<8x8x4xbf16> to vector<64x4xbf16>
    %27 = tpu.concatenate %2, %5, %8, %11, %14, %17, %20, %23, %26 in 1 : vector<64x4xbf16>, vector<64x4xbf16>, vector<64x4xbf16>, vector<64x4xbf16>, vector<64x4xbf16>, vector<64x4xbf16>, vector<64x4xbf16>, vector<64x4xbf16>, vector<64x4xbf16> -> vector<64x36xbf16>
    %c0_32 = arith.constant 0 : index
    %c0_33 = arith.constant 0 : index
    %28 = vector.load %arg2[%c0_32, %c0_33] : memref<36x128xbf16, #tpu.memory_space<vmem>>, vector<36x128xbf16>
    %cst = arith.constant dense<0.000000e+00> : vector<64x128xf32>
    %29 = tpu.matmul %27, %28, %cst {dimension_numbers = #tpu.dot_dimension_numbers<[1], [0], [0], [1], [0, 0, 1, 1], [], []>} : vector<64x36xbf16>, vector<36x128xbf16>, vector<64x128xf32> -> vector<64x128xf32>
    %c0_34 = arith.constant 0 : index
    %c0_35 = arith.constant 0 : index
    %30 = vector.load %arg5[%c0_34, %c0_35] : memref<1x128xf32, #tpu.memory_space<vmem>>, vector<1x128xf32>
    %c0_36 = arith.constant 0 : index
    %c0_37 = arith.constant 0 : index
    %31 = vector.load %arg6[%c0_36, %c0_37] : memref<1x128xf32, #tpu.memory_space<vmem>>, vector<1x128xf32>
    %32 = vector.shape_cast %29 : vector<64x128xf32> to vector<1x64x128xf32>
    %cst_38 = arith.constant dense<0.000000e+00> : vector<1xf32>
    %33 = vector.multi_reduction <add>, %32, %cst_38 [1, 2] : vector<1x64x128xf32> to vector<1xf32>
    %34 = vector.shape_cast %33 : vector<1xf32> to vector<1x1x1xf32>
    %35 = vector.extract %34[0, 0, 0] : f32 from vector<1x1x1xf32>
    %cst_39 = arith.constant 0.001953125 : f32
    %36 = arith.mulf %35, %cst_39 : f32
    %37 = vector.broadcast %36 : f32 to vector<64x128xf32>
    %38 = arith.subf %29, %37 : vector<64x128xf32>
    %39 = arith.mulf %38, %38 : vector<64x128xf32>
    %40 = vector.shape_cast %39 : vector<64x128xf32> to vector<1x64x128xf32>
    %cst_40 = arith.constant dense<0.000000e+00> : vector<1xf32>
    %41 = vector.multi_reduction <add>, %40, %cst_40 [1, 2] : vector<1x64x128xf32> to vector<1xf32>
    %42 = vector.shape_cast %41 : vector<1xf32> to vector<1x1x1xf32>
    %43 = vector.extract %42[0, 0, 0] : f32 from vector<1x1x1xf32>
    %44 = arith.mulf %36, %36 : f32
    %cst_41 = arith.constant 7.680000e+03 : f32
    %45 = arith.mulf %cst_41, %44 : f32
    %46 = arith.subf %43, %45 : f32
    %cst_42 = arith.constant 0.001953125 : f32
    %47 = arith.mulf %46, %cst_42 : f32
    %cst_43 = arith.constant 9.99999974E-6 : f32
    %48 = arith.addf %47, %cst_43 : f32
    %49 = math.rsqrt %48 : f32
    %50 = vector.broadcast %49 : f32 to vector<64x128xf32>
    %51 = arith.mulf %38, %50 : vector<64x128xf32>
    %52 = vector.broadcast %30 : vector<1x128xf32> to vector<64x128xf32>
    %53 = arith.mulf %51, %52 : vector<64x128xf32>
    %54 = vector.broadcast %31 : vector<1x128xf32> to vector<64x128xf32>
    %55 = arith.addf %53, %54 : vector<64x128xf32>
    %cst_44 = arith.constant 0.000000e+00 : f32
    %56 = vector.broadcast %cst_44 : f32 to vector<64x128xf32>
    %57 = arith.maximumf %55, %56 : vector<64x128xf32>
    %cst_45 = arith.constant 0.000000e+00 : bf16
    %58 = vector.broadcast %cst_45 : bf16 to vector<1x24x128xbf16>
    %cst_46 = arith.constant 0.000000e+00 : bf16
    %59 = vector.broadcast %cst_46 : bf16 to vector<10x1x128xbf16>
    %c0_47 = arith.constant 0 : index
    %c0_48 = arith.constant 0 : index
    %c0_49 = arith.constant 0 : index
    %60 = vector.load %arg10[%c0_47, %c0_48, %c0_49] : memref<10x24x128xbf16, #tpu.memory_space<vmem>>, vector<1x24x128xbf16>
    tpu.vector_store %arg10[%c0_47, %c0_48, %c0_49], %58 {strides = array<i32>} : memref<10x24x128xbf16, #tpu.memory_space<vmem>>, vector<1x24x128xbf16>,
    %c9 = arith.constant 9 : index
    %c0_50 = arith.constant 0 : index
    %c0_51 = arith.constant 0 : index
    %61 = vector.load %arg10[%c9, %c0_50, %c0_51] : memref<10x24x128xbf16, #tpu.memory_space<vmem>>, vector<1x24x128xbf16>
    tpu.vector_store %arg10[%c9, %c0_50, %c0_51], %58 {strides = array<i32>} : memref<10x24x128xbf16, #tpu.memory_space<vmem>>, vector<1x24x128xbf16>,
    %c0_52 = arith.constant 0 : index
    %c7 = arith.constant 7 : index
    %c0_53 = arith.constant 0 : index
    %62 = vector.load %arg10[%c0_52, %c7, %c0_53] : memref<10x24x128xbf16, #tpu.memory_space<vmem>>, vector<10x1x128xbf16>
    tpu.vector_store %arg10[%c0_52, %c7, %c0_53], %59 {strides = array<i32>} : memref<10x24x128xbf16, #tpu.memory_space<vmem>>, vector<10x1x128xbf16>,
    %c0_54 = arith.constant 0 : index
    %c16 = arith.constant 16 : index
    %c0_55 = arith.constant 0 : index
    %63 = vector.load %arg10[%c0_54, %c16, %c0_55] : memref<10x24x128xbf16, #tpu.memory_space<vmem>>, vector<10x1x128xbf16>
    tpu.vector_store %arg10[%c0_54, %c16, %c0_55], %59 {strides = array<i32>} : memref<10x24x128xbf16, #tpu.memory_space<vmem>>, vector<10x1x128xbf16>,
    %64 = vector.shape_cast %57 : vector<64x128xf32> to vector<8x8x128xf32>
    %65 = arith.truncf %64 : vector<8x8x128xf32> to vector<8x8x128xbf16>
    %c1_56 = arith.constant 1 : index
    %c8 = arith.constant 8 : index
    %c0_57 = arith.constant 0 : index
    %66 = vector.load %arg10[%c1_56, %c8, %c0_57] : memref<10x24x128xbf16, #tpu.memory_space<vmem>>, vector<8x8x128xbf16>
    tpu.vector_store %arg10[%c1_56, %c8, %c0_57], %65 {strides = array<i32>} : memref<10x24x128xbf16, #tpu.memory_space<vmem>>, vector<8x8x128xbf16>,
    %c0_58 = arith.constant 0 : index
    %c7_59 = arith.constant 7 : index
    %c0_60 = arith.constant 0 : index
    %67 = vector.load %arg10[%c0_58, %c7_59, %c0_60] : memref<10x24x128xbf16, #tpu.memory_space<vmem>>, vector<8x8x128xbf16>
    %68 = vector.shape_cast %67 : vector<8x8x128xbf16> to vector<64x128xbf16>
    %c0_61 = arith.constant 0 : index
    %c0_62 = arith.constant 0 : index
    %69 = vector.load %arg3[%c0_61, %c0_62] : memref<1152x128xbf16, #tpu.memory_space<vmem>>, vector<128x128xbf16>
    %cst_63 = arith.constant dense<0.000000e+00> : vector<64x128xf32>
    %70 = tpu.matmul %68, %69, %cst_63 {dimension_numbers = #tpu.dot_dimension_numbers<[1], [0], [0], [1], [0, 0, 1, 1], [], []>} : vector<64x128xbf16>, vector<128x128xbf16>, vector<64x128xf32> -> vector<64x128xf32>
    %c0_64 = arith.constant 0 : index
    %c8_65 = arith.constant 8 : index
    %c0_66 = arith.constant 0 : index
    %71 = vector.load %arg10[%c0_64, %c8_65, %c0_66] : memref<10x24x128xbf16, #tpu.memory_space<vmem>>, vector<8x8x128xbf16>
    %72 = vector.shape_cast %71 : vector<8x8x128xbf16> to vector<64x128xbf16>
    %c128 = arith.constant 128 : index
    %c0_67 = arith.constant 0 : index
    %73 = vector.load %arg3[%c128, %c0_67] : memref<1152x128xbf16, #tpu.memory_space<vmem>>, vector<128x128xbf16>
    %cst_68 = arith.constant dense<0.000000e+00> : vector<64x128xf32>
    %74 = tpu.matmul %72, %73, %cst_68 {dimension_numbers = #tpu.dot_dimension_numbers<[1], [0], [0], [1], [0, 0, 1, 1], [], []>} : vector<64x128xbf16>, vector<128x128xbf16>, vector<64x128xf32> -> vector<64x128xf32>
    %75 = arith.addf %70, %74 : vector<64x128xf32>
    %c0_69 = arith.constant 0 : index
    %c9_70 = arith.constant 9 : index
    %c0_71 = arith.constant 0 : index
    %76 = vector.load %arg10[%c0_69, %c9_70, %c0_71] : memref<10x24x128xbf16, #tpu.memory_space<vmem>>, vector<8x8x128xbf16>
    %77 = vector.shape_cast %76 : vector<8x8x128xbf16> to vector<64x128xbf16>
    %c256 = arith.constant 256 : index
    %c0_72 = arith.constant 0 : index
    %78 = vector.load %arg3[%c256, %c0_72] : memref<1152x128xbf16, #tpu.memory_space<vmem>>, vector<128x128xbf16>
    %cst_73 = arith.constant dense<0.000000e+00> : vector<64x128xf32>
    %79 = tpu.matmul %77, %78, %cst_73 {dimension_numbers = #tpu.dot_dimension_numbers<[1], [0], [0], [1], [0, 0, 1, 1], [], []>} : vector<64x128xbf16>, vector<128x128xbf16>, vector<64x128xf32> -> vector<64x128xf32>
    %80 = arith.addf %75, %79 : vector<64x128xf32>
    %c1_74 = arith.constant 1 : index
    %c7_75 = arith.constant 7 : index
    %c0_76 = arith.constant 0 : index
    %81 = vector.load %arg10[%c1_74, %c7_75, %c0_76] : memref<10x24x128xbf16, #tpu.memory_space<vmem>>, vector<8x8x128xbf16>
    %82 = vector.shape_cast %81 : vector<8x8x128xbf16> to vector<64x128xbf16>
    %c384 = arith.constant 384 : index
    %c0_77 = arith.constant 0 : index
    %83 = vector.load %arg3[%c384, %c0_77] : memref<1152x128xbf16, #tpu.memory_space<vmem>>, vector<128x128xbf16>
    %cst_78 = arith.constant dense<0.000000e+00> : vector<64x128xf32>
    %84 = tpu.matmul %82, %83, %cst_78 {dimension_numbers = #tpu.dot_dimension_numbers<[1], [0], [0], [1], [0, 0, 1, 1], [], []>} : vector<64x128xbf16>, vector<128x128xbf16>, vector<64x128xf32> -> vector<64x128xf32>
    %85 = arith.addf %80, %84 : vector<64x128xf32>
    %c1_79 = arith.constant 1 : index
    %c8_80 = arith.constant 8 : index
    %c0_81 = arith.constant 0 : index
    %86 = vector.load %arg10[%c1_79, %c8_80, %c0_81] : memref<10x24x128xbf16, #tpu.memory_space<vmem>>, vector<8x8x128xbf16>
    %87 = vector.shape_cast %86 : vector<8x8x128xbf16> to vector<64x128xbf16>
    %c512 = arith.constant 512 : index
    %c0_82 = arith.constant 0 : index
    %88 = vector.load %arg3[%c512, %c0_82] : memref<1152x128xbf16, #tpu.memory_space<vmem>>, vector<128x128xbf16>
    %cst_83 = arith.constant dense<0.000000e+00> : vector<64x128xf32>
    %89 = tpu.matmul %87, %88, %cst_83 {dimension_numbers = #tpu.dot_dimension_numbers<[1], [0], [0], [1], [0, 0, 1, 1], [], []>} : vector<64x128xbf16>, vector<128x128xbf16>, vector<64x128xf32> -> vector<64x128xf32>
    %90 = arith.addf %85, %89 : vector<64x128xf32>
    %c1_84 = arith.constant 1 : index
    %c9_85 = arith.constant 9 : index
    %c0_86 = arith.constant 0 : index
    %91 = vector.load %arg10[%c1_84, %c9_85, %c0_86] : memref<10x24x128xbf16, #tpu.memory_space<vmem>>, vector<8x8x128xbf16>
    %92 = vector.shape_cast %91 : vector<8x8x128xbf16> to vector<64x128xbf16>
    %c640 = arith.constant 640 : index
    %c0_87 = arith.constant 0 : index
    %93 = vector.load %arg3[%c640, %c0_87] : memref<1152x128xbf16, #tpu.memory_space<vmem>>, vector<128x128xbf16>
    %cst_88 = arith.constant dense<0.000000e+00> : vector<64x128xf32>
    %94 = tpu.matmul %92, %93, %cst_88 {dimension_numbers = #tpu.dot_dimension_numbers<[1], [0], [0], [1], [0, 0, 1, 1], [], []>} : vector<64x128xbf16>, vector<128x128xbf16>, vector<64x128xf32> -> vector<64x128xf32>
    %95 = arith.addf %90, %94 : vector<64x128xf32>
    %c2_89 = arith.constant 2 : index
    %c7_90 = arith.constant 7 : index
    %c0_91 = arith.constant 0 : index
    %96 = vector.load %arg10[%c2_89, %c7_90, %c0_91] : memref<10x24x128xbf16, #tpu.memory_space<vmem>>, vector<8x8x128xbf16>
    %97 = vector.shape_cast %96 : vector<8x8x128xbf16> to vector<64x128xbf16>
    %c768 = arith.constant 768 : index
    %c0_92 = arith.constant 0 : index
    %98 = vector.load %arg3[%c768, %c0_92] : memref<1152x128xbf16, #tpu.memory_space<vmem>>, vector<128x128xbf16>
    %cst_93 = arith.constant dense<0.000000e+00> : vector<64x128xf32>
    %99 = tpu.matmul %97, %98, %cst_93 {dimension_numbers = #tpu.dot_dimension_numbers<[1], [0], [0], [1], [0, 0, 1, 1], [], []>} : vector<64x128xbf16>, vector<128x128xbf16>, vector<64x128xf32> -> vector<64x128xf32>
    %100 = arith.addf %95, %99 : vector<64x128xf32>
    %c2_94 = arith.constant 2 : index
    %c8_95 = arith.constant 8 : index
    %c0_96 = arith.constant 0 : index
    %101 = vector.load %arg10[%c2_94, %c8_95, %c0_96] : memref<10x24x128xbf16, #tpu.memory_space<vmem>>, vector<8x8x128xbf16>
    %102 = vector.shape_cast %101 : vector<8x8x128xbf16> to vector<64x128xbf16>
    %c896 = arith.constant 896 : index
    %c0_97 = arith.constant 0 : index
    %103 = vector.load %arg3[%c896, %c0_97] : memref<1152x128xbf16, #tpu.memory_space<vmem>>, vector<128x128xbf16>
    %cst_98 = arith.constant dense<0.000000e+00> : vector<64x128xf32>
    %104 = tpu.matmul %102, %103, %cst_98 {dimension_numbers = #tpu.dot_dimension_numbers<[1], [0], [0], [1], [0, 0, 1, 1], [], []>} : vector<64x128xbf16>, vector<128x128xbf16>, vector<64x128xf32> -> vector<64x128xf32>
    %105 = arith.addf %100, %104 : vector<64x128xf32>
    %c2_99 = arith.constant 2 : index
    %c9_100 = arith.constant 9 : index
    %c0_101 = arith.constant 0 : index
    %106 = vector.load %arg10[%c2_99, %c9_100, %c0_101] : memref<10x24x128xbf16, #tpu.memory_space<vmem>>, vector<8x8x128xbf16>
    %107 = vector.shape_cast %106 : vector<8x8x128xbf16> to vector<64x128xbf16>
    %c1024 = arith.constant 1024 : index
    %c0_102 = arith.constant 0 : index
    %108 = vector.load %arg3[%c1024, %c0_102] : memref<1152x128xbf16, #tpu.memory_space<vmem>>, vector<128x128xbf16>
    %cst_103 = arith.constant dense<0.000000e+00> : vector<64x128xf32>
    %109 = tpu.matmul %107, %108, %cst_103 {dimension_numbers = #tpu.dot_dimension_numbers<[1], [0], [0], [1], [0, 0, 1, 1], [], []>} : vector<64x128xbf16>, vector<128x128xbf16>, vector<64x128xf32> -> vector<64x128xf32>
    %110 = arith.addf %105, %109 : vector<64x128xf32>
    %c0_104 = arith.constant 0 : index
    %c0_105 = arith.constant 0 : index
    %111 = vector.load %arg7[%c0_104, %c0_105] : memref<1x128xf32, #tpu.memory_space<vmem>>, vector<1x128xf32>
    %c0_106 = arith.constant 0 : index
    %c0_107 = arith.constant 0 : index
    %112 = vector.load %arg8[%c0_106, %c0_107] : memref<1x128xf32, #tpu.memory_space<vmem>>, vector<1x128xf32>
    %113 = vector.shape_cast %110 : vector<64x128xf32> to vector<1x64x128xf32>
    %cst_108 = arith.constant dense<0.000000e+00> : vector<1xf32>
    %114 = vector.multi_reduction <add>, %113, %cst_108 [1, 2] : vector<1x64x128xf32> to vector<1xf32>
    %115 = vector.shape_cast %114 : vector<1xf32> to vector<1x1x1xf32>
    %116 = vector.extract %115[0, 0, 0] : f32 from vector<1x1x1xf32>
    %cst_109 = arith.constant 0.001953125 : f32
    %117 = arith.mulf %116, %cst_109 : f32
    %118 = vector.broadcast %117 : f32 to vector<64x128xf32>
    %119 = arith.subf %110, %118 : vector<64x128xf32>
    %120 = arith.mulf %119, %119 : vector<64x128xf32>
    %121 = vector.shape_cast %120 : vector<64x128xf32> to vector<1x64x128xf32>
    %cst_110 = arith.constant dense<0.000000e+00> : vector<1xf32>
    %122 = vector.multi_reduction <add>, %121, %cst_110 [1, 2] : vector<1x64x128xf32> to vector<1xf32>
    %123 = vector.shape_cast %122 : vector<1xf32> to vector<1x1x1xf32>
    %124 = vector.extract %123[0, 0, 0] : f32 from vector<1x1x1xf32>
    %125 = arith.mulf %117, %117 : f32
    %cst_111 = arith.constant 7.680000e+03 : f32
    %126 = arith.mulf %cst_111, %125 : f32
    %127 = arith.subf %124, %126 : f32
    %cst_112 = arith.constant 0.001953125 : f32
    %128 = arith.mulf %127, %cst_112 : f32
    %cst_113 = arith.constant 9.99999974E-6 : f32
    %129 = arith.addf %128, %cst_113 : f32
    %130 = math.rsqrt %129 : f32
    %131 = vector.broadcast %130 : f32 to vector<64x128xf32>
    %132 = arith.mulf %119, %131 : vector<64x128xf32>
    %133 = vector.broadcast %111 : vector<1x128xf32> to vector<64x128xf32>
    %134 = arith.mulf %132, %133 : vector<64x128xf32>
    %135 = vector.broadcast %112 : vector<1x128xf32> to vector<64x128xf32>
    %136 = arith.addf %134, %135 : vector<64x128xf32>
    %c0_114 = arith.constant 0 : index
    %c0_115 = arith.constant 0 : index
    %137 = vector.load %arg4[%c0_114, %c0_115] : memref<4x128xbf16, #tpu.memory_space<vmem>>, vector<4x128xbf16>
    %cst_116 = arith.constant dense<0.000000e+00> : vector<64x128xf32>
    %138 = tpu.matmul %14, %137, %cst_116 {dimension_numbers = #tpu.dot_dimension_numbers<[1], [0], [0], [1], [0, 0, 1, 1], [], []>} : vector<64x4xbf16>, vector<4x128xbf16>, vector<64x128xf32> -> vector<64x128xf32>
    %c0_117 = arith.constant 0 : index
    %c0_118 = arith.constant 0 : index
    %139 = vector.load %arg7[%c0_117, %c0_118] : memref<1x128xf32, #tpu.memory_space<vmem>>, vector<1x128xf32>
    %c0_119 = arith.constant 0 : index
    %c0_120 = arith.constant 0 : index
    %140 = vector.load %arg8[%c0_119, %c0_120] : memref<1x128xf32, #tpu.memory_space<vmem>>, vector<1x128xf32>
    %141 = vector.shape_cast %138 : vector<64x128xf32> to vector<1x64x128xf32>
    %cst_121 = arith.constant dense<0.000000e+00> : vector<1xf32>
    %142 = vector.multi_reduction <add>, %141, %cst_121 [1, 2] : vector<1x64x128xf32> to vector<1xf32>
    %143 = vector.shape_cast %142 : vector<1xf32> to vector<1x1x1xf32>
    %144 = vector.extract %143[0, 0, 0] : f32 from vector<1x1x1xf32>
    %cst_122 = arith.constant 0.001953125 : f32
    %145 = arith.mulf %144, %cst_122 : f32
    %146 = vector.broadcast %145 : f32 to vector<64x128xf32>
    %147 = arith.subf %138, %146 : vector<64x128xf32>
    %148 = arith.mulf %147, %147 : vector<64x128xf32>
    %149 = vector.shape_cast %148 : vector<64x128xf32> to vector<1x64x128xf32>
    %cst_123 = arith.constant dense<0.000000e+00> : vector<1xf32>
    %150 = vector.multi_reduction <add>, %149, %cst_123 [1, 2] : vector<1x64x128xf32> to vector<1xf32>
    %151 = vector.shape_cast %150 : vector<1xf32> to vector<1x1x1xf32>
    %152 = vector.extract %151[0, 0, 0] : f32 from vector<1x1x1xf32>
    %153 = arith.mulf %145, %145 : f32
    %cst_124 = arith.constant 7.680000e+03 : f32
    %154 = arith.mulf %cst_124, %153 : f32
    %155 = arith.subf %152, %154 : f32
    %cst_125 = arith.constant 0.001953125 : f32
    %156 = arith.mulf %155, %cst_125 : f32
    %cst_126 = arith.constant 9.99999974E-6 : f32
    %157 = arith.addf %156, %cst_126 : f32
    %158 = math.rsqrt %157 : f32
    %159 = vector.broadcast %158 : f32 to vector<64x128xf32>
    %160 = arith.mulf %147, %159 : vector<64x128xf32>
    %161 = vector.broadcast %139 : vector<1x128xf32> to vector<64x128xf32>
    %162 = arith.mulf %160, %161 : vector<64x128xf32>
    %163 = vector.broadcast %140 : vector<1x128xf32> to vector<64x128xf32>
    %164 = arith.addf %162, %163 : vector<64x128xf32>
    %165 = arith.addf %136, %164 : vector<64x128xf32>
    %cst_127 = arith.constant 0.000000e+00 : f32
    %166 = vector.broadcast %cst_127 : f32 to vector<64x128xf32>
    %167 = arith.maximumf %165, %166 : vector<64x128xf32>
    %c0_128 = arith.constant 0 : index
    %c0_129 = arith.constant 0 : index
    %c0_130 = arith.constant 0 : index
    %168 = vector.load %arg9[%c0_128, %c0_129, %c0_130] : memref<1x64x128xf32, #tpu.memory_space<vmem>>, vector<1x64x128xf32>
    %169 = vector.shape_cast %168 : vector<1x64x128xf32> to vector<64x128xf32>
    %170 = vector.shape_cast %167 : vector<64x128xf32> to vector<1x64x128xf32>
    tpu.vector_store %arg9[%c0_128, %c0_129, %c0_130], %170 {strides = array<i32>} : memref<1x64x128xf32, #tpu.memory_space<vmem>>, vector<1x64x128xf32>,
    return
  }
  func.func @transform_0(%arg0: i32) -> (i32, i32, i32, i32) {
    %c0_i32 = arith.constant 0 : i32
    %c0_i32_0 = arith.constant 0 : i32
    %c0_i32_1 = arith.constant 0 : i32
    %c0_i32_2 = arith.constant 0 : i32
    return %arg0, %c0_i32, %c0_i32_0, %c0_i32_1 : i32, i32, i32, i32
  }
  func.func @transform_1(%arg0: i32) -> (i32, i32) {
    %c0_i32 = arith.constant 0 : i32
    %c0_i32_0 = arith.constant 0 : i32
    %c0_i32_1 = arith.constant 0 : i32
    return %c0_i32, %c0_i32_0 : i32, i32
  }
  func.func @transform_2(%arg0: i32) -> (i32, i32) {
    %c0_i32 = arith.constant 0 : i32
    %c0_i32_0 = arith.constant 0 : i32
    %c0_i32_1 = arith.constant 0 : i32
    return %c0_i32, %c0_i32_0 : i32, i32
  }
  func.func @transform_3(%arg0: i32) -> (i32, i32) {
    %c0_i32 = arith.constant 0 : i32
    %c0_i32_0 = arith.constant 0 : i32
    %c0_i32_1 = arith.constant 0 : i32
    return %c0_i32, %c0_i32_0 : i32, i32
  }
  func.func @transform_4(%arg0: i32) -> (i32, i32) {
    %c0_i32 = arith.constant 0 : i32
    %c0_i32_0 = arith.constant 0 : i32
    %c0_i32_1 = arith.constant 0 : i32
    return %c0_i32, %c0_i32_0 : i32, i32
  }
  func.func @transform_5(%arg0: i32) -> (i32, i32) {
    %c0_i32 = arith.constant 0 : i32
    %c0_i32_0 = arith.constant 0 : i32
    %c0_i32_1 = arith.constant 0 : i32
    return %c0_i32, %c0_i32_0 : i32, i32
  }
  func.func @transform_6(%arg0: i32) -> (i32, i32) {
    %c0_i32 = arith.constant 0 : i32
    %c0_i32_0 = arith.constant 0 : i32
    %c0_i32_1 = arith.constant 0 : i32
    return %c0_i32, %c0_i32_0 : i32, i32
  }
  func.func @transform_7(%arg0: i32) -> (i32, i32) {
    %c0_i32 = arith.constant 0 : i32
    %c0_i32_0 = arith.constant 0 : i32
    %c0_i32_1 = arith.constant 0 : i32
    return %c0_i32, %c0_i32_0 : i32, i32
  }
  func.func @transform_8(%arg0: i32) -> (i32, i32, i32) {
    %c0_i32 = arith.constant 0 : i32
    %c0_i32_0 = arith.constant 0 : i32
    %c0_i32_1 = arith.constant 0 : i32
    return %arg0, %c0_i32, %c0_i32_0 : i32, i32, i32
  }
}

</mosaic_0001>

<bundles_post_ra>
// kernel: resnet_block_forward.1
= control target key start
LH: loop header
LB: loop body
LE: loop exit
PB: predicated region body
PF: predicated region fallthrough
CT: control target
= control target key end

     0   :  { %s4621_s27 = smov 0   ;;  %s5815_s0 = inlined_call_operand.vmem [shape: bf16[8,9,9,4], index: 0, kind: input, shape index: {}]   ;;  %s5816_s1 = inlined_call_operand.vmem [shape: bf16[36,128], index: 1, kind: input, shape index: {}]   ;;  %s5817_s2 = inlined_call_operand.vmem [shape: bf16[1152,128], index: 2, kind: input, shape index: {}]   ;;  %s5818_s3 = inlined_call_operand.vmem [shape: bf16[4,128], index: 3, kind: input, shape index: {}]   ;;  %s5819_s4 = inlined_call_operand.vmem [shape: f32[1,128], index: 4, kind: input, shape index: {}]   ;;  %s5820_s5 = inlined_call_operand.vmem [shape: f32[1,128], index: 5, kind: input, shape index: {}]   ;;  %s5821_s6 = inlined_call_operand.vmem [shape: f32[1,128], index: 6, kind: input, shape index: {}]   ;;  %s5822_s7 = inlined_call_operand.vmem [shape: f32[1,128], index: 7, kind: input, shape index: {}]   ;;  %s5823_s8 = inlined_call_operand.vmem [shape: f32[2,64,128], index: 8, kind: output, shape index: {}]  }
   0x1 LB: > { %s4627_s28 = sadd.s32 4294967295, %s4565_s27   ;;  %p3793_p0 = scmp.ge.s32.totalorder %s4565_s27, 1  ;;  %s4565_s27 = sphi %s4621_s27, %s18_s27  }
   0x2   : > { %p264_p1 = scmp.lt.s32.totalorder %s4565_s27, 3 }
   0x4   : > { %p265_p2 = pnand %p3793_p0, %p264_p1 }
   0x6   : > { %268 = sbr.rel (%p265_p2) target bundleno = 2070 (0x816), region = 52 }
   0xb   : > { %s3794_s29 = sshll.u32 %s4627_s28, 2  ;;  %s4567_s12 = smov 12   ;;  %vm337_vm0 = vsmask.f32 3328  ;;  %vm338_vm1 = vsmask.f32 7440 }
   0xc   : > { %p300_p3 = scmp.lt.s32.totalorder %s3794_s29, 7  ;;  %s4568_s13 = smov 4   ;;  %vm4699_vm2 = vmor %vm337_vm0, %vm338_vm1  ;;  %vm1053_vm3 = vcmask 1041408   ;;  %vm948_vm4 = vcmask 31744   ;;  %vm961_vm5 = vcmask 64512   ;;  %vm970_vm6 = vcmask 97280  }
   0xd   : > { %s4569_s14 = smov 16   ;;  %s4570_s15 = smov 24   ;;  %vm979_vm7 = vcmask 130048   ;;  %vm988_vm8 = vcmask 162816   ;;  %vm997_vm9 = vcmask 195584   ;;  %vm1006_vm10 = vcmask 228352  }
   0xe   : > { %s5851_s29 = smov (!%p300_p3, %s3794_s29), 7  ;;  %s4571_s16 = smov 8   ;;  %vm1015_vm11 = vcmask 261120   ;;  %vm1044_vm12 = vcmask 293888   ;;  %vm1234_vm13 = vcmask 1043459   ;;  %vm1267_vm1 = vcmask 1040384  }
   0xf   : > { %s4402_s30 = smul.u32 72, %s5851_s29  ;;  %s4572_s17 = smov 20   ;;  %vm1235_vm14 = vsmask.f32 7950  ;;  %vm1268_vm0 = vsmask.f32 256 }
  0x10   : > { %s4573_s18 = smov 28   ;;  %s4574_s19 = smov 32   ;;  %vm5017_vm15 = vmand %vm1234_vm13, %vm1235_vm14 }
  0x11   : > { %s4635_s11 = scalar_lea.vmem %s5815_s0, %s4402_s30  ;;  %p306_p4 = scmp.lt.s32.totalorder %s4627_s28, 1 }
  0x12   : > { %v3808_v0 = vld [vmem:[%s4635_s11 + $0xa0] sm:$0xf]  ;;  %v3809_v1 = vld [vmem:[%s4635_s11 + $0xa8] sm:$0xf]  ;;  %v3832_v15 = vld [vmem:[%s4635_s11 + $0x18] sm:$0xf] }
  0x13   : > { %v521_v2 = vshrl.u32 %v3809_v1, 16  ;;  %v524_v3 = vshll.u32 %v3809_v1, 16  ;;  %v3867_v4 = vcombine.low %v3808_v0, %v3809_v1  ;;  %v507_v5 = vshrl.u32 %v3808_v0, 16  ;;  %v4439_v7 = vld [vmem:[%s4635_s11 + $0x48] ss:$8 sps:$4 sm:$0xff]   ;;  %s5853_s28 = smov (!%p306_p4, %s4627_s28), 1 }
  0x14   : > { %v510_v6 = vshll.u32 %v3808_v0, 16  ;;  %768 = vrot.lane.b32.xlu0 %v4439_v7, %s4568_s13  ;;  %v4440_v12 = vld [vmem:[%s4635_s11 + $0xe8] ss:$8 sps:$4 sm:$0xff]   ;;  %v4441_v14 = vld [vmem:[%s4635_s11 + $0x58] ss:$8 sps:$4 sm:$0xff]   ;;  %v645_v18 = vshrl.u32 %v3832_v15, 16 }
  0x15   : > { %v523_v8 = vrot.slane %v521_v2, 4  ;;  %v526_v9 = vrot.slane %v524_v3, 5  ;;  %818 = vrot.lane.b32.xlu1 %v3867_v4, %s4567_s12  ;;  %v509_v10 = vrot.slane %v507_v5, 4  ;;  %v3833_v17 = vld [vmem:[%s4635_s11 + $0x20] sm:$0xf]  ;;  %v648_v19 = vshll.u32 %v3832_v15, 16 }
  0x16   : > { %v512_v11 = vrot.slane %v510_v6, 5  ;;  %v3806_v20 = vld [vmem:[%s4635_s11 + $0x90] sm:$0xf]  ;;  %v659_v22 = vshrl.u32 %v3833_v17, 16  ;;  %v662_v23 = vshll.u32 %v3833_v17, 16  ;;  %v3879_v24 = vcombine.low %v3832_v15, %v3833_v17 }
  0x17   : > { %v527_v13 = vor.u32 %v526_v9, %v523_v8  ;;  %v3807_v25 = vld [vmem:[%s4635_s11 + $0x98] sm:$0xf]  ;;  %v4654_v27 = vrot.slane %v645_v18, 4  ;;  %v4656_v28 = vrot.slane %v648_v19, 5  ;;  %v479_v29 = vshrl.u32 %v3806_v20, 16 }
  0x18   : > { %v513_v16 = vor.u32 %v512_v11, %v509_v10  ;;  %770 = vrot.lane.b32.xlu0 %v4441_v14, %s4568_s13  ;;  %v4658_v30 = vrot.slane %v659_v22, 4  ;;  %v4660_v31 = vrot.slane %v662_v23, 5  ;;  %v482_v32 = vshll.u32 %v3806_v20, 16  ;;  %v4444_v37 = vld [vmem:[%s4635_s11 + $0xd8] ss:$8 sps:$4 sm:$0xff]  }
  0x19   : > { %v4647_v21 = vrot.slane %v527_v13, 4  ;;  %846 = vrot.lane.b32.xlu1 %v4440_v12, %s4569_s14  ;;  %v493_v33 = vshrl.u32 %v3807_v25, 16  ;;  %v4662_v34 = vrot.slane %v479_v29, 4  ;;  %v496_v35 = vshll.u32 %v3807_v25, 16  ;;  %v4666_v38 = vld [vmem:[%s4635_s11] sm:$0xf] }
  0x1a   : > { %v4651_v26 = vrot.slane %v513_v16, 4  ;;  %v3866_v36 = vcombine.low %v3806_v20, %v3807_v25  ;;  %v484_v39 = vrot.slane %v482_v32, 5  ;;  %v4672_v41 = vld [vmem:[%s4635_s11 + $0x8] sm:$0xf]  ;;  %v329_v42 = vld [vmem:[%s4635_s11 + $0x4] sm:$0x1]  ;;  %v651_v43 = vor.u32 %v4656_v28, %v4654_v27 }
  0x1b   : > { %v4669_v40 = vrot.slane %v493_v33, 4  ;;  %v665_v44 = vor.u32 %v4660_v31, %v4658_v30  ;;  %v4679_v45 = vrot.slane %v496_v35, 5  ;;  %v330_v46 = vld [vmem:[%s4635_s11 + $0xc] sm:$0x1]  ;;  %v341_v47 = vshrl.u32 %v4666_v38, 16 }
  0x1c   : > { %816 = vrot.lane.b32.xlu0 %v3866_v36, %s4567_s12  ;;  %v344_v48 = vshll.u32 %v4666_v38, 16  ;;  %v350_v49 = vshll.u32 %v329_v42, 16  ;;  %v355_v50 = vshrl.u32 %v4672_v41, 16  ;;  %v358_v51 = vshll.u32 %v4672_v41, 16  ;;  %v3830_v53 = vld [vmem:[%s4635_s11 + $0x8] sm:$0xf] }
  0x1d   : > { %894 = vrot.lane.b32.xlu1 %v3879_v24, %s4570_s15  ;;  %v364_v52 = vshll.u32 %v330_v46, 16  ;;  %v485_v54 = vor.u32 %v484_v39, %v4662_v34  ;;  %v343_v55 = vrot.slane %v341_v47, 4  ;;  %v3831_v58 = vld [vmem:[%s4635_s11 + $0x10] sm:$0xf]  ;;  %v617_v59 = vshrl.u32 %v3830_v53, 16 }
  0x1e   : > { %v346_v56 = vrot.slane %v344_v48, 5  ;;  %v352_v57 = vrot.slane %v350_v49, 5  ;;  %v357_v60 = vrot.slane %v355_v50, 4  ;;  %v360_v61 = vrot.slane %v358_v51, 5  ;;  %v4691_v0 = vld [vmem:[%s4635_s11 + $0x10] sm:$0xf] }
  0x1f   : > { %v366_v62 = vrot.slane %v364_v52, 5  ;;  %v620_v63 = vshll.u32 %v3830_v53, 16  ;;  %v619_v2 = vrot.slane %v617_v59, 4  ;;  %v631_v3 = vshrl.u32 %v3831_v58, 16  ;;  %v4695_v5 = vld [vmem:[%s4635_s11 + $0x18] sm:$0xf] }
  0x20   : > { %844 = vrot.lane.b32.xlu0 %v4444_v37, %s4569_s14  ;;  %v347_v1 = vor.u32 %v346_v56, %v343_v55  ;;  %v634_v4 = vshll.u32 %v3831_v58, 16  ;;  %v361_v7 = vor.u32 %v360_v61, %v357_v60  ;;  %v3878_v9 = vcombine.low %v3830_v53, %v3831_v58  ;;  %v331_v10 = vld [vmem:[%s4635_s11 + $0x14] sm:$0x1]  ;;  %v332_v11 = vld [vmem:[%s4635_s11 + $0x1c] sm:$0x1] }
  0x21   : > { %v622_v8 = vrot.slane %v620_v63, 5  ;;  %v369_v12 = vshrl.u32 %v4691_v0, 16  ;;  %v633_v14 = vrot.slane %v631_v3, 4  ;;  %v372_v16 = vshll.u32 %v4691_v0, 16  ;;  %v3822_v17 = vld [vmem:[%s4635_s11 + $0x94] sm:$0x1] }
  0x22   : > { %v348_v13 = vrot.slane %v347_v1, 4  ;;  %v636_v15 = vrot.slane %v634_v4, 5  ;;  %v362_v18 = vrot.slane %v361_v7, 4  ;;  %v378_v20 = vshll.u32 %v331_v10, 16  ;;  %v3823_v23 = vld [vmem:[%s4635_s11 + $0x9c] sm:$0x1] }
  0x23   : > { %v371_v19 = vrot.slane %v369_v12, 4  ;;  %v383_v22 = vshrl.u32 %v4695_v5, 16  ;;  %v374_v25 = vrot.slane %v372_v16, 5  ;;  %v386_v29 = vshll.u32 %v4695_v5, 16  ;;  %v3824_v33 = vld [vmem:[%s4635_s11 + $0xa4] sm:$0x1] }
  0x24   : > { %v353_v24 = vsel %vm4699_vm2, %v348_v13, %v352_v57  ;;  %892 = vrot.lane.b32.xlu0 %v3878_v9, %s4570_s15  ;;  %v392_v32 = vshll.u32 %v332_v11, 16  ;;  %v367_v34 = vsel %vm4699_vm2, %v362_v18, %v366_v62  ;;  %v380_v35 = vrot.slane %v378_v20, 5  ;;  %v3825_v39 = vld [vmem:[%s4635_s11 + $0xac] sm:$0x1]  ;;  %v3847_v63 = vld [vmem:[%s4635_s11 + $0x14] sm:$0x1] }
  0x25   : > { %v385_v36 = vrot.slane %v383_v22, 4  ;;  %v486_v37 = vrot.slane %v485_v54, 4  ;;  %v3862_v42 = vcombine.low %v353_v24, %v367_v34  ;;  %v375_v46 = vor.u32 %v374_v25, %v371_v19  ;;  %v3846_v62 = vld [vmem:[%s4635_s11 + $0xc] sm:$0x1]  ;;  %v4446_v11 = vld [vmem:[%s4635_s11 + $0x50] ss:$8 sps:$4 sm:$0xff]  }
  0x26   : > { %v388_v47 = vrot.slane %v386_v29, 5  ;;  %v394_v48 = vrot.slane %v392_v32, 5  ;;  %v488_v49 = vshll.u32 %v3822_v17, 16  ;;  %v499_v50 = vor.u32 %v4679_v45, %v4669_v40  ;;  %v3848_v13 = vld [vmem:[%s4635_s11 + $0x1c] sm:$0x1] }
  0x27   : > { %v502_v51 = vshll.u32 %v3823_v23, 16  ;;  %v516_v52 = vshll.u32 %v3824_v33, 16  ;;  %788 = vrot.lane.b32.xlu1 %v3862_v42, %s4571_s16  ;;  %v376_v53 = vrot.slane %v375_v46, 4  ;;  %v530_v56 = vshll.u32 %v3825_v39, 16  ;;  %v3849_v18 = vld [vmem:[%s4635_s11 + $0x24] sm:$0x1] }
  0x28   : > { %v389_v55 = vor.u32 %v388_v47, %v385_v36  ;;  %v623_v54 = vor.u32 %v622_v8, %v619_v2  ;;  %v490_v57 = vrot.slane %v488_v49, 5  ;;  %v500_v58 = vrot.slane %v499_v50, 4  ;;  %v4749_v24 = vld [vmem:[%s4635_s11 + $0x20] sm:$0xf]  ;;  %v4758_v30 = vld [vmem:[%s4635_s11 + $0x28] sm:$0xf] }
  0x29   : > { %v504_v59 = vrot.slane %v502_v51, 5  ;;  %v518_v60 = vrot.slane %v516_v52, 5  ;;  %v381_v40 = vsel %vm4699_vm2, %v376_v53, %v380_v35  ;;  %v532_v61 = vrot.slane %v530_v56, 5  ;;  %v333_v31 = vld [vmem:[%s4635_s11 + $0x24] sm:$0x1] }
  0x2a   : > { %v390_v45 = vrot.slane %v389_v55, 4  ;;  %v637_v1 = vor.u32 %v636_v15, %v633_v14  ;;  %v491_v3 = vsel %vm4699_vm2, %v486_v37, %v490_v57  ;;  %v624_v7 = vrot.slane %v623_v54, 4  ;;  %v334_v34 = vld [vmem:[%s4635_s11 + $0x2c] sm:$0x1]  ;;  %v4772_v47 = vld [vmem:[%s4635_s11 + $0x30] sm:$0xf] }
  0x2b   : > { %v505_v2 = vsel %vm4699_vm2, %v500_v58, %v504_v59  ;;  %v519_v4 = vsel %vm4699_vm2, %v4651_v26, %v518_v60  ;;  %v533_v10 = vsel %vm4699_vm2, %v4647_v21, %v532_v61  ;;  %v626_v12 = vshll.u32 %v3846_v62, 16  ;;  %v335_v53 = vld [vmem:[%s4635_s11 + $0x34] sm:$0x1]  ;;  %v336_v57 = vld [vmem:[%s4635_s11 + $0x3c] sm:$0x1] }
  0x2c   : > { %v395_v8 = vsel %vm4699_vm2, %v390_v45, %v394_v48  ;;  %v3874_v9 = vcombine.low %v491_v3, %v505_v2  ;;  %v3875_v15 = vcombine.low %v519_v4, %v533_v10  ;;  %v638_v16 = vrot.slane %v637_v1, 4  ;;  %v4775_v48 = vld [vmem:[%s4635_s11 + $0x38] sm:$0xf]  ;;  %v4786_v61 = vld [vmem:[%s4635_s11 + $0xb0] sm:$0xf] }
  0x2d   : > { %v3863_v14 = vcombine.low %v381_v40, %v395_v8  ;;  %v640_v17 = vshll.u32 %v3847_v63, 16  ;;  %v628_v26 = vrot.slane %v626_v12, 5  ;;  %v652_v21 = vrot.slane %v651_v43, 4  ;;  %v4448_v62 = vld [vmem:[%s4635_s11 + $0x68] ss:$8 sps:$4 sm:$0xff]  }
  0x2e   : > { %864 = vrot.lane.b32.xlu0 %v3874_v9, %s4572_s17  ;;  %v654_v19 = vshll.u32 %v3848_v13, 16  ;;  %v666_v20 = vrot.slane %v665_v44, 4  ;;  %v668_v23 = vshll.u32 %v3849_v18, 16  ;;  %v3854_v25 = vcombine.low %v4666_v38, %v4672_v41  ;;  %v4447_v44 = vld [vmem:[%s4635_s11 + $0x60] ss:$8 sps:$4 sm:$0xff]  }
  0x2f   : > { %790 = vrot.lane.b32.xlu1 %v3863_v14, %s4571_s16  ;;  %v642_v22 = vrot.slane %v640_v17, 5  ;;  %v3855_v29 = vcombine.low %v4691_v0, %v4695_v5  ;;  %v629_v27 = vsel %vm4699_vm2, %v624_v7, %v628_v26  ;;  %v397_v43 = vshrl.u32 %v4749_v24, 16  ;;  %v3811_v10 = vld [vmem:[%s4635_s11 + $0xb8] sm:$0xf] }
  0x30   : > { %v656_v28 = vrot.slane %v654_v19, 5  ;;  %v670_v33 = vrot.slane %v668_v23, 5  ;;  %v400_v35 = vshll.u32 %v4749_v24, 16  ;;  %v406_v36 = vshll.u32 %v333_v31, 16 }
  0x31   : > { %v643_v32 = vsel %vm4699_vm2, %v638_v16, %v642_v22  ;;  %v399_v42 = vrot.slane %v397_v43, 4  ;;  %v411_v46 = vshrl.u32 %v4758_v30, 16  ;;  %v414_v52 = vshll.u32 %v4758_v30, 16  ;;  %v4449_v16 = vld [vmem:[%s4635_s11 + $0x78] ss:$8 sps:$4 sm:$0xff]  }
  0x32   : > { %920 = vrot.lane.b32.xlu0 %v4446_v11, %s4573_s18  ;;  %v3886_v37 = vcombine.low %v629_v27, %v643_v32  ;;  %v657_v39 = vsel %vm4699_vm2, %v652_v21, %v656_v28  ;;  %v671_v49 = vsel %vm4699_vm2, %v666_v20, %v670_v33  ;;  %v402_v50 = vrot.slane %v400_v35, 5  ;;  %v4804_v27 = vld [vmem:[%s4635_s11 + $0xc8] sm:$0xf] }
  0x33   : > { %866 = vrot.lane.b32.xlu1 %v3875_v15, %s4572_s17  ;;  %v408_v51 = vrot.slane %v406_v36, 5  ;;  %v3887_v55 = vcombine.low %v657_v39, %v671_v49  ;;  %v413_v56 = vrot.slane %v411_v46, 4  ;;  %v420_v54 = vshll.u32 %v334_v34, 16  ;;  %v4796_v15 = vld [vmem:[%s4635_s11 + $0xc0] sm:$0xf] }
  0x34   : > { %v425_v58 = vshrl.u32 %v4772_v47, 16  ;;  %v403_v59 = vor.u32 %v402_v50, %v399_v42  ;;  %v416_v60 = vrot.slane %v414_v52, 5  ;;  %v428_v40 = vshll.u32 %v4772_v47, 16  ;;  %v3826_v46 = vld [vmem:[%s4635_s11 + $0xb4] sm:$0x1] }
  0x35   : > { %v434_v45 = vshll.u32 %v335_v53, 16  ;;  %v422_v63 = vrot.slane %v420_v54, 5  ;;  %v439_v3 = vshrl.u32 %v4775_v48, 16  ;;  %v442_v2 = vshll.u32 %v4775_v48, 16  ;;  %v3827_v53 = vld [vmem:[%s4635_s11 + $0xbc] sm:$0x1] }
  0x36   : > { %940 = vrot.lane.b32.xlu0 %v3886_v37, %s4574_s19  ;;  %v427_v1 = vrot.slane %v425_v58, 4  ;;  %v404_v4 = vrot.slane %v403_v59, 4  ;;  %v417_v7 = vor.u32 %v416_v60, %v413_v56  ;;  %v430_v8 = vrot.slane %v428_v40, 5  ;;  %v3829_v59 = vld [vmem:[%s4635_s11 + $0xcc] sm:$0x1] }
  0x37   : > { %922 = vrot.lane.b32.xlu1 %v4447_v44, %s4573_s18  ;;  %v436_v9 = vrot.slane %v434_v45, 5  ;;  %v441_v11 = vrot.slane %v439_v3, 4  ;;  %v444_v12 = vrot.slane %v442_v2, 5  ;;  %v448_v13 = vshll.u32 %v336_v57, 16  ;;  %v4452_v45 = vld [vmem:[%s4635_s11 + $0xf8] ss:$8 sps:$4 sm:$0xff]  }
  0x38   : > { %v535_v14 = vshrl.u32 %v4786_v61, 16  ;;  %v409_v17 = vsel %vm4699_vm2, %v404_v4, %v408_v51  ;;  %v418_v18 = vrot.slane %v417_v7, 4  ;;  %v431_v26 = vor.u32 %v430_v8, %v427_v1  ;;  %v3835_v7 = vld [vmem:[%s4635_s11 + $0x30] sm:$0xf] }
  0x39   : > { %v538_v21 = vshll.u32 %v4786_v61, 16  ;;  %v445_v19 = vor.u32 %v444_v12, %v441_v11  ;;  %v450_v20 = vrot.slane %v448_v13, 5  ;;  %v549_v23 = vshrl.u32 %v3811_v10, 16  ;;  %v4833_v12 = vld [vmem:[%s4635_s11 + $0x38] sm:$0xf] }
  0x3a   : > { %942 = vrot.lane.b32.xlu0 %v3887_v55, %s4574_s19  ;;  %v537_v22 = vrot.slane %v535_v14, 4  ;;  %v423_v28 = vsel %vm4699_vm2, %v418_v18, %v422_v63  ;;  %v432_v31 = vrot.slane %v431_v26, 4  ;;  %v552_v44 = vshll.u32 %v3811_v10, 16  ;;  %v3828_v55 = vld [vmem:[%s4635_s11 + $0xc4] sm:$0x1] }
  0x3b   : > { %772 = vrot.lane.b32.xlu1 %v4448_v62, %s4568_s13  ;;  %v540_v43 = vrot.slane %v538_v21, 5  ;;  %v3864_v32 = vcombine.low %v409_v17, %v423_v28  ;;  %v446_v33 = vrot.slane %v445_v19, 4  ;;  %v551_v34 = vrot.slane %v549_v23, 4  ;;  %v4828_v63 = vld [vmem:[%s4635_s11 + $0x28] sm:$0xf] }
  0x3c   : > { %v3868_v35 = vcombine.low %v4786_v61, %v3811_v10  ;;  %v437_v36 = vsel %vm4699_vm2, %v432_v31, %v436_v9  ;;  %v554_v37 = vrot.slane %v552_v44, 5  ;;  %v563_v39 = vshrl.u32 %v4796_v15, 16  ;;  %v4453_v28 = vld [vmem:[%s4635_s11 + $0x108] ss:$8 sps:$4 sm:$0xff]  }
  0x3d   : > { %v566_v42 = vshll.u32 %v4796_v15, 16  ;;  %v451_v49 = vsel %vm4699_vm2, %v446_v33, %v450_v20  ;;  %v577_v50 = vshrl.u32 %v4804_v27, 16  ;;  %v580_v51 = vshll.u32 %v4804_v27, 16 }
  0x3e   : > { %792 = vrot.lane.b32.xlu0 %v3864_v32, %s4571_s16  ;;  %v3869_v52 = vcombine.low %v4796_v15, %v4804_v27  ;;  %v3865_v56 = vcombine.low %v437_v36, %v451_v49  ;;  %v565_v54 = vrot.slane %v563_v39, 4  ;;  %v541_v58 = vor.u32 %v540_v43, %v537_v22  ;;  %v3837_v27 = vld [vmem:[%s4635_s11 + $0x40] sm:$0xf]  ;;  %v3850_v36 = vld [vmem:[%s4635_s11 + $0x2c] sm:$0x1] }
  0x3f   : > { %774 = vrot.lane.b32.xlu1 %v4449_v16, %s4568_s13  ;;  %v568_v57 = vrot.slane %v566_v42, 5  ;;  %v579_v60 = vrot.slane %v577_v50, 4  ;;  %v582_v40 = vrot.slane %v580_v51, 5  ;;  %v544_v61 = vshll.u32 %v3826_v46, 16  ;;  %v3852_v50 = vld [vmem:[%s4635_s11 + $0x3c] sm:$0x1] }
  0x40   : > { %v555_v62 = vor.u32 %v554_v37, %v551_v34  ;;  %v542_v1 = vrot.slane %v541_v58, 4  ;;  %v558_v3 = vshll.u32 %v3827_v53, 16  ;;  %v572_v4 = vshll.u32 %v3828_v55, 16  ;;  %v3851_v37 = vld [vmem:[%s4635_s11 + $0x34] sm:$0x1] }
  0x41   : > { %v569_v2 = vor.u32 %v568_v57, %v565_v54  ;;  %v546_v8 = vrot.slane %v544_v61, 5  ;;  %v583_v10 = vor.u32 %v582_v40, %v579_v60  ;;  %v586_v11 = vshll.u32 %v3829_v59, 16  ;;  %v3853_v54 = vld [vmem:[%s4635_s11 + $0x44] sm:$0x1] }
  0x42   : > { %820 = vrot.lane.b32.xlu0 %v3868_v35, %s4567_s12  ;;  %v556_v9 = vrot.slane %v555_v62, 4  ;;  %v560_v13 = vrot.slane %v558_v3, 5  ;;  %v574_v15 = vrot.slane %v572_v4, 5  ;;  %v673_v16 = vshrl.u32 %v4828_v63, 16 }
  0x43   : > { %794 = vrot.lane.b32.xlu1 %v3865_v56, %s4571_s16  ;;  %v570_v14 = vrot.slane %v569_v2, 4  ;;  %v547_v17 = vsel %vm4699_vm2, %v542_v1, %v546_v8  ;;  %v584_v18 = vrot.slane %v583_v10, 4  ;;  %v588_v26 = vrot.slane %v586_v11, 5  ;;  %v4460_v60 = vld [vmem:[%s5816_s1 + $0x10] ss:$0 sps:$4 sm:$0x33]  }
  0x44   : > { %v676_v21 = vshll.u32 %v4828_v63, 16  ;;  %v561_v19 = vsel %vm4699_vm2, %v556_v9, %v560_v13  ;;  %v675_v22 = vrot.slane %v673_v16, 4  ;;  %v687_v23 = vshrl.u32 %v3835_v7, 16  ;;  %v4456_v8 = vld [vmem:[%s4635_s11 + $0x70] ss:$8 sps:$4 sm:$0xff]   ;;  %v4461_v11 = vld [vmem:[%s5816_s1 + $0x8] sm:$0xff]   ;;  %4400 = vmatprep.subr.msk.bf16.mxu0 %vm1053_vm3, %v4460_v60 }
  0x45   : > { %v575_v20 = vsel %vm4699_vm2, %v570_v14, %v574_v15  ;;  %v3876_v31 = vcombine.low %v547_v17, %v561_v19  ;;  %v589_v43 = vsel %vm4699_vm2, %v584_v18, %v588_v26  ;;  %v690_v32 = vshll.u32 %v3835_v7, 16  ;;  %v4463_v17 = vld [vmem:[%s5816_s1] sm:$0xff]  }
  0x46   : > { %848 = vrot.lane.b32.xlu0 %v4452_v45, %s4569_s14  ;;  %v678_v44 = vrot.slane %v676_v21, 5  ;;  %v3877_v33 = vcombine.low %v575_v20, %v589_v43  ;;  %v689_v34 = vrot.slane %v687_v23, 4  ;;  %v701_v35 = vshrl.u32 %v4833_v12, 16  ;;  %v4457_v18 = vld [vmem:[%s4635_s11 + $0x80] ss:$8 sps:$4 sm:$0xff]  }
  0x47   : > { %822 = vrot.lane.b32.xlu1 %v3869_v52, %s4567_s12  ;;  %v692_v39 = vrot.slane %v690_v32, 5  ;;  %v704_v42 = vshll.u32 %v4833_v12, 16  ;;  %v715_v46 = vshrl.u32 %v3837_v27, 16  ;;  %v718_v49 = vshll.u32 %v3837_v27, 16 }
  0x48   : > { %v3880_v51 = vcombine.low %v4828_v63, %v3835_v7  ;;  %v703_v53 = vrot.slane %v701_v35, 4  ;;  %v679_v55 = vor.u32 %v678_v44, %v675_v22  ;;  %v682_v56 = vshll.u32 %v3850_v36, 16 }
  0x49   : > { %v706_v52 = vrot.slane %v704_v42, 5  ;;  %v717_v57 = vrot.slane %v715_v46, 4  ;;  %v720_v58 = vrot.slane %v718_v49, 5  ;;  %v693_v59 = vor.u32 %v692_v39, %v689_v34 }
  0x4a   : > { %868 = vrot.lane.b32.xlu0 %v3876_v31, %s4572_s17  ;;  %v680_v40 = vrot.slane %v679_v55, 4  ;;  %v684_v45 = vrot.slane %v682_v56, 5  ;;  %v696_v61 = vshll.u32 %v3851_v37, 16  ;;  %v710_v62 = vshll.u32 %v3852_v50, 16 }
  0x4b   : > { %850 = vrot.lane.b32.xlu1 %v4453_v28, %s4569_s14  ;;  %v694_v63 = vrot.slane %v693_v59, 4  ;;  %v707_v1 = vor.u32 %v706_v52, %v703_v53  ;;  %v721_v3 = vor.u32 %v720_v58, %v717_v57  ;;  %v724_v2 = vshll.u32 %v3853_v54, 16 }
  0x4c   : > { %v698_v4 = vrot.slane %v696_v61, 5  ;;  %v3881_v7 = vcombine.low %v4833_v12, %v3837_v27  ;;  %v685_v9 = vsel %vm4699_vm2, %v680_v40, %v684_v45  ;;  %v712_v10 = vrot.slane %v710_v62, 5 }
  0x4d   : > { %v708_v14 = vrot.slane %v707_v1, 4  ;;  %v722_v15 = vrot.slane %v721_v3, 4  ;;  %v726_v16 = vrot.slane %v724_v2, 5  ;;  %v1055_v12 = vsel %vm1053_vm3, %v4460_v60, 0 }
  0x4e   : > { %896 = vrot.lane.b32.xlu0 %v3880_v51, %s4570_s15  ;;  %v699_v13 = vsel %vm4699_vm2, %v694_v63, %v698_v4  ;;  %4161 = vmatpush3.bf16.msra.mxu0 %v1055_v12  ;;  %v3856_v26 = vcombine.low %v4749_v24, %v4758_v30  ;;  %v3857_v19 = vcombine.low %v4772_v47, %v4775_v48 }
  0x4f   : > { %870 = vrot.lane.b32.xlu1 %v3877_v33, %s4572_s17  ;;  %v3888_v21 = vcombine.low %v685_v9, %v699_v13  ;;  %4162 = vmatprep.subr.bf16.mxu0 %v4461_v11  ;;  %v713_v20 = vsel %vm4699_vm2, %v708_v14, %v712_v10  ;;  %v727_v22 = vsel %vm4699_vm2, %v722_v15, %v726_v16 }
  0x50   : > { %v3889_v23 = vcombine.low %v713_v20, %v727_v22 }
  0x52   : > { %924 = vrot.lane.b32.xlu0 %v4456_v8, %s4573_s18  ;;  %4163 = vmatpush3.bf16.msra.mxu0 %v4461_v11 }
  0x53   : > { %898 = vrot.lane.b32.xlu1 %v3881_v7, %s4570_s15  ;;  %4164 = vmatprep.subr.bf16.mxu0 %v4463_v17 }
  0x56   : > { %944 = vrot.lane.b32.xlu0 %v3888_v21, %s4574_s19  ;;  %4165 = vmatpush3.bf16.msra.mxu0 %v4463_v17 }
  0x57   : > { %926 = vrot.lane.b32.xlu1 %v4457_v18, %s4573_s18 }
  0x5b   : > { %946 = vrot.lane.b32.xlu1 %v3889_v23, %s4574_s19 }
  0x86   : > { %v769_v27 = vpop.permute.xlu0 %768 }
  0x87   : > { %v819_v28 = vpop.permute.xlu1 %818  ;;  %v951_v36 = vsel %vm948_vm4, %v3854_v25, %v769_v27 }
  0x8a   : > { %v771_v31 = vpop.permute.xlu0 %770 }
  0x8b   : > { %v847_v43 = vpop.permute.xlu1 %846  ;;  %v954_v46 = vsel %vm948_vm4, %v3855_v29, %v771_v31 }
  0x8e   : > { %v817_v44 = vpop.permute.xlu0 %816 }
  0x8f   : > { %v895_v32 = vpop.permute.xlu1 %894 }
  0x92   : > { %v845_v33 = vpop.permute.xlu0 %844 }
  0x96   : > { %v893_v35 = vpop.permute.xlu0 %892 }
  0x99   : > { %v789_v34 = vpop.permute.xlu1 %788 }
  0x9a   : > { %v963_v37 = vsel %vm961_vm5, %v951_v36, %v789_v34 }
  0x9b   : > { %v972_v39 = vsel %vm970_vm6, %v963_v37, %v817_v44 }
  0x9c   : > { %v981_v41 = vsel %vm979_vm7, %v972_v39, %v845_v33 }
  0xa0   : > { %v865_v42 = vpop.permute.xlu0 %864 }
  0xa1   : > { %v791_v49 = vpop.permute.xlu1 %790  ;;  %v990_v25 = vsel %vm988_vm8, %v981_v41, %v865_v42 }
  0xa2   : > { %v965_v50 = vsel %vm961_vm5, %v954_v46, %v791_v49  ;;  %v999_v0 = vsel %vm997_vm9, %v990_v25, %v893_v35 }
  0xa3   : > { %v974_v38 = vsel %vm970_vm6, %v965_v50, %v819_v28 }
  0xa4   : > { %v921_v51 = vpop.permute.xlu0 %920  ;;  %v983_v53 = vsel %vm979_vm7, %v974_v38, %v847_v43 }
  0xa5   : > { %v867_v55 = vpop.permute.xlu1 %866  ;;  %v1008_v29 = vsel %vm1006_vm10, %v999_v0, %v921_v51 }
  0xa6   : > { %v992_v5 = vsel %vm988_vm8, %v983_v53, %v867_v55 }
  0xa7   : > { %v1001_v57 = vsel %vm997_vm9, %v992_v5, %v895_v32 }
  0xa8   : > { %v941_v56 = vpop.permute.xlu0 %940 }
  0xa9   : > { %v923_v54 = vpop.permute.xlu1 %922  ;;  %v1017_v52 = vsel %vm1015_vm11, %v1008_v29, %v941_v56 }
  0xaa   : > { %4166 = vmatprep.mubr.msk.bf16.mxu0 %vm1044_vm12, %v1017_v52  ;;  %v1010_v58 = vsel %vm1006_vm10, %v1001_v57, %v923_v54 }
  0xac   : > { %v943_v59 = vpop.permute.xlu0 %942 }
  0xad   : > { %v773_v60 = vpop.permute.xlu1 %772  ;;  %v1019_v40 = vsel %vm1015_vm11, %v1010_v58, %v943_v59 }
  0xae   : > { %4167 = vmatmul.mubr.msk.bf16.vlgmr.msra.gmra.mxu0 %vm1044_vm12, %v1019_v40  ;;  %v957_v9 = vsel %vm948_vm4, %v3856_v26, %v773_v60 }
  0xb0   : > { %v793_v45 = vpop.permute.xlu0 %792 }
  0xb1   : > { %v775_v61 = vpop.permute.xlu1 %774  ;;  %v967_v10 = vsel %vm961_vm5, %v957_v9, %v793_v45 }
  0xb2   : > { %v960_v12 = vsel %vm948_vm4, %v3857_v19, %v775_v61 }
  0xb4   : > { %v821_v62 = vpop.permute.xlu0 %820 }
  0xb5   : > { %v795_v63 = vpop.permute.xlu1 %794  ;;  %v976_v11 = vsel %vm970_vm6, %v967_v10, %v821_v62 }
  0xb6   : > { %v969_v24 = vsel %vm961_vm5, %v960_v12, %v795_v63  ;;  %v4468_v12 = vld [vmem:[%s5817_s2 + $0x68] sm:$0xff]   ;;  %vm5042_vm5 = vmand %vm1267_vm1, %vm1268_vm0 }
  0xb8   : > { %v849_v1 = vpop.permute.xlu0 %848 }
  0xb9   : > { %v823_v3 = vpop.permute.xlu1 %822  ;;  %v985_v14 = vsel %vm979_vm7, %v976_v11, %v849_v1 }
  0xba   : > { %v978_v26 = vsel %vm970_vm6, %v969_v24, %v823_v3  ;;  %vm1333_vm6 = vsmask.f32 4368 }
  0xbc   : > { %v869_v2 = vpop.permute.xlu0 %868 }
  0xbd   : > { %v851_v4 = vpop.permute.xlu1 %850  ;;  %v994_v16 = vsel %vm988_vm8, %v985_v14, %v869_v2  ;;  %v4465_v14 = vld [vmem:[%s5817_s2 + $0x78] sm:$0xff]  }
  0xbe   : > { %v987_v22 = vsel %vm979_vm7, %v978_v26, %v851_v4  ;;  %4174 = vmatprep.subr.bf16.mxu1 %v4465_v14  ;;  %v4469_v26 = vld [vmem:[%s5817_s2 + $0x30] sm:$0xff]   ;;  %vm5154_vm7 = vmor %vm1268_vm0, %vm1333_vm6 }
  0xbf   : > { %4175 = vmatpush3.bf16.msra.mxu1 %v4465_v14 }
  0xc0   : > { %v897_v7 = vpop.permute.xlu0 %896 }
  0xc1   : > { %v871_v8 = vpop.permute.xlu1 %870  ;;  %v1003_v17 = vsel %vm997_vm9, %v994_v16, %v897_v7  ;;  %v4467_v16 = vld [vmem:[%s5817_s2 + $0x38] sm:$0xff]  }
  0xc2   : > { %v996_v47 = vsel %vm988_vm8, %v987_v22, %v871_v8  ;;  %4198 = vmatprep.subr.bf16.mxu0 %v4467_v16 }
  0xc3   : > { %4199 = vmatpush3.bf16.msra.mxu0 %v4467_v16  ;;  %v1291_v16 = vld [vmem:[#allocation2 + $0x5c] sm:$0x1] }
  0xc4   : > { %v925_v13 = vpop.permute.xlu0 %924  ;;  %4200 = vmatprep.subr.bf16.mxu0 %v4469_v26 }
  0xc5   : > { %v899_v15 = vpop.permute.xlu1 %898  ;;  %v1012_v30 = vsel %vm1006_vm10, %v1003_v17, %v925_v13 }
  0xc6   : > { %v1005_v48 = vsel %vm997_vm9, %v996_v47, %v899_v15  ;;  %v4466_v15 = vld [vmem:[%s5817_s2 + $0x70] sm:$0xff]   ;;  %v4471_v47 = vld [vmem:[%s5817_s2 + $0x28] sm:$0xff]  }
  0xc7   : > { %4176 = vmatprep.subr.bf16.mxu1 %v4466_v15  ;;  %4201 = vmatpush3.bf16.msra.mxu0 %v4469_v26 }
  0xc8   : > { %v945_v18 = vpop.permute.xlu0 %944  ;;  %4177 = vmatpush3.bf16.msra.mxu1 %v4466_v15  ;;  %4202 = vmatprep.subr.bf16.mxu0 %v4471_v47  ;;  %v1288_v15 = vld [vmem:[#allocation2 + $0x50] sm:$0x1] }
  0xc9   : > { %v927_v21 = vpop.permute.xlu1 %926  ;;  %v1021_v20 = vsel %vm1015_vm11, %v1012_v30, %v945_v18  ;;  %4178 = vmatprep.subr.bf16.mxu1 %v4468_v12 }
  0xca   : > { %4170 = vmatprep.mubr.msk.bf16.mxu0 %vm1044_vm12, %v1021_v20  ;;  %v1014_v19 = vsel %vm1006_vm10, %v1005_v48, %v927_v21  ;;  %v4470_v21 = vld [vmem:[%s5817_s2 + $0x60] sm:$0xff]   ;;  %v4472_v48 = vld [vmem:[%s5817_s2 + $0x58] sm:$0xff]  }
  0xcb   : > { %4203 = vmatpush3.bf16.msra.mxu0 %v4471_v47 }
  0xcc   : > { %4179 = vmatpush3.bf16.msra.mxu1 %v4468_v12  ;;  %v1289_v12 = vsel %vm5042_vm5, 0, %v1288_v15 }
  0xcd   : > { %v947_v23 = vpop.permute.xlu1 %946  ;;  %4180 = vmatprep.subr.bf16.mxu1 %v4470_v21  ;;  %1290 = vst [vmem:[#allocation2 + $0x50] sm:$0x1] %v1289_v12 }
  0xce   : > { %v1023_v27 = vsel %vm1015_vm11, %v1014_v19, %v947_v23  ;;  %v4575_v23 = vmov 0  }
  0xcf   : > { %4171 = vmatmul.mubr.msk.bf16.gmra.mxu0 %vm1044_vm12, %v1023_v27  ;;  %1228 = vst [vmem:[#allocation2 + $0x4] sm:$0xf] %v4575_v23  ;;  %1227 = vst [vmem:[#allocation2] sm:$0xf] %v4575_v23  ;;  %v4473_v27 = vld [vmem:[%s5817_s2 + $0x20] sm:$0xff]  }
  0xd0   : > { %4181 = vmatpush3.bf16.msra.mxu1 %v4470_v21  ;;  %1229 = vst [vmem:[#allocation2 + $0x8] sm:$0xf] %v4575_v23  ;;  %1231 = vst [vmem:[#allocation2 + $0x6c] sm:$0xf] %v4575_v23  ;;  %4204 = vmatprep.subr.bf16.mxu0 %v4473_v27 }
  0xd1   : > { %1232 = vst [vmem:[#allocation2 + $0x70] sm:$0xf] %v4575_v23  ;;  %1233 = vst [vmem:[#allocation2 + $0x74] sm:$0xf] %v4575_v23  ;;  %4182 = vmatprep.subr.bf16.mxu1 %v4472_v48  ;;  %4205 = vmatpush3.bf16.msra.mxu0 %v4473_v27 }
  0xd4   : > { %4183 = vmatpush3.bf16.msra.mxu1 %v4472_v48 }
  0xd6   : > { %v1737_v23 = vld [vmem:[#allocation2 + $0x4] sm:$0xf] }
  0xd7   : > { %v5086_v27 = vld [vmem:[#allocation2 + $0x4] sm:$0xf] }
  0xd8   : > { %v1297_v48 = vld [vmem:[#allocation2 + $0x74] sm:$0x1] }
 0x16e   : > { %v4168_v28 = vpop.f32.mrf.mxu0 }
 0x170   : > { %v1091_v31 = vpop.f32.mrf.mxu0 }
 0x172   : > { %v4169_v43 = vpop.f32.mrf.mxu0 }
 0x174   : > { %v1094_v44 = vpop.f32.mrf.mxu0 }
 0x175   : > { %v1124_v32 = vadd.f32 %v1094_v44, %v1091_v31 }
 0x177   : > { %v1125_v33 = vadd.f32 %v4168_v28, %v1124_v32  ;;  %v4478_v32 = vld [vmem:[%s5817_s2 + $0x40] sm:$0xff]  }
 0x179   : > { %v1126_v36 = vadd.f32 %v4169_v43, %v1125_v33  ;;  %v1341_v33 = vshrl.u32 %v5086_v27, 16 }
 0x18f   : > { %v4172_v34 = vpop.f32.mrf.mxu0 }
 0x191   : > { %v1107_v35 = vpop.f32.mrf.mxu0 }
 0x192   : > { %v1127_v39 = vadd.f32 %v1126_v36, %v1107_v35  ;;  %v4479_v36 = vld [vmem:[%s5817_s2 + $0x8] sm:$0xff]  }
 0x193   : > { %v4173_v37 = vpop.f32.mrf.mxu0 }
 0x195   : > { %v1110_v42 = vpop.f32.mrf.mxu0 }
 0x196   : > { %v1128_v46 = vadd.f32 %v1127_v39, %v1110_v42 }
 0x198   : > { %v1129_v49 = vadd.f32 %v4172_v34, %v1128_v46 }
 0x19a   : > { %v1130_v50 = vadd.f32 %v4173_v37, %v1129_v49  ;;  %v1246_v49 = vld [vmem:[#allocation2 + $0x24] sm:$0x8] }
 0x19c   : > { %1131 = vadd.xlane.f32.xlu0 %v1130_v50  ;;  %v1247_v50 = vsel %vm5017_vm15, 0, %v1246_v49 }
 0x19d   : > { %1248 = vst [vmem:[#allocation2 + $0x24] sm:$0x8] %v1247_v50 }
 0x225   : > { %v1132_v38 = vpop.xlane.xlu0 %1131 }
 0x226   : > { %v1133_v41 = vrot.slane %v1132_v38, 4 }
 0x228   : > { %v1134_v25 = vadd.f32 %v1133_v41, %v1132_v38  ;;  %v1249_v38 = vld [vmem:[#allocation2 + $0x30] sm:$0x8]  ;;  %v1252_v41 = vld [vmem:[#allocation2 + $0x3c] sm:$0x8] }
 0x22a   : > { %v1135_v51 = vrot.slane %v1134_v25, 2 }
 0x22c   : > { %v1136_v53 = vadd.f32 %v1135_v51, %v1134_v25  ;;  %v1250_v25 = vsel %vm5017_vm15, 0, %v1249_v38  ;;  %v1253_v51 = vsel %vm5017_vm15, 0, %v1252_v41 }
 0x22d   : > { %1251 = vst [vmem:[#allocation2 + $0x30] sm:$0x8] %v1250_v25  ;;  %1254 = vst [vmem:[#allocation2 + $0x3c] sm:$0x8] %v1253_v51  ;;  %v5097_v25 = vrot.slane %v1341_v33, 7  ;;  %v1344_v51 = vshll.u32 %v5086_v27, 16 }
 0x22e   : > { %v1137_v55 = vrot.slane %v1136_v53, 1 }
 0x230   : > { %v1138_v0 = vadd.f32 %v1137_v55, %v1136_v53  ;;  %v5039_v53 = vld [vmem:[%s5817_s2 + $0xb8] sm:$0xff]  }
 0x232   : > { %4403 = vpush %v1138_v0  ;;  %v1270_v0 = vld [vmem:[#allocation2 + $0x8] sm:$0x1] }
 0x263   : > { %s4404_s26 = spop %4403 }
 0x264   : > { %s4940_s29 = smul.f32 0.001953125, %s4404_s26 }
 0x266   : > { %v1141_v5 = vstv %s4940_s29  ;;  %s1174_s30 = smul.f32 %s4940_s29, %s4940_s29 }
 0x267   : > { %v4943_v29 = vsub.f32 %v1091_v31, %v1141_v5  ;;  %v4945_v56 = vsub.f32 %v1094_v44, %v1141_v5  ;;  %v4947_v54 = vsub.f32 %v4168_v28, %v1141_v5  ;;  %v4949_v52 = vsub.f32 %v4169_v43, %v1141_v5  ;;  %v4474_v28 = vld [vmem:[%s5817_s2 + $0x50] sm:$0xff]   ;;  %v4475_v31 = vld [vmem:[%s5817_s2 + $0x18] sm:$0xff]   ;;  %v4476_v43 = vld [vmem:[%s5817_s2 + $0x48] sm:$0xff]  }
 0x268   : > { %v4955_v59 = vsub.f32 %v1107_v35, %v1141_v5  ;;  %v4959_v45 = vsub.f32 %v1110_v42, %v1141_v5  ;;  %v4963_v63 = vsub.f32 %v4172_v34, %v1141_v5  ;;  %v4967_v2 = vsub.f32 %v4173_v37, %v1141_v5  ;;  %4184 = vmatprep.subr.bf16.mxu1 %v4474_v28  ;;  %v4477_v44 = vld [vmem:[%s5817_s2 + $0x10] sm:$0xff]   ;;  %v1237_v34 = vld [vmem:[#allocation2] sm:$0x8]  ;;  %v1240_v35 = vld [vmem:[#allocation2 + $0xc] sm:$0x8]  ;;  %s1175_s9 = smul.f32 7680.0, %s1174_s30 }
 0x269   : > { %v1150_v57 = vmul.f32 %v4943_v29, %v4943_v29  ;;  %v1151_v58 = vmul.f32 %v4945_v56, %v4945_v56  ;;  %v1152_v60 = vmul.f32 %v4947_v54, %v4947_v54  ;;  %v1153_v61 = vmul.f32 %v4949_v52, %v4949_v52  ;;  %4185 = vmatpush3.bf16.msra.mxu1 %v4474_v28  ;;  %v1243_v42 = vld [vmem:[#allocation2 + $0x18] sm:$0x8] }
 0x26a   : > { %v1154_v1 = vmul.f32 %v4955_v59, %v4955_v59  ;;  %v1155_v4 = vmul.f32 %v4959_v45, %v4959_v45  ;;  %v1156_v8 = vmul.f32 %v4963_v63, %v4963_v63  ;;  %v1157_v10 = vmul.f32 %v4967_v2, %v4967_v2  ;;  %4206 = vmatprep.subr.bf16.mxu0 %v4475_v31 }
 0x26b   : > { %v1158_v40 = vadd.f32 %v1151_v58, %v1150_v57  ;;  %4186 = vmatprep.subr.bf16.mxu1 %v4476_v43  ;;  %4207 = vmatpush3.bf16.msra.mxu0 %v4475_v31  ;;  %v1238_v37 = vsel %vm5017_vm15, 0, %v1237_v34  ;;  %v1241_v39 = vsel %vm5017_vm15, 0, %v1240_v35  ;;  %v1244_v46 = vsel %vm5017_vm15, 0, %v1243_v42  ;;  %v1273_v57 = vld [vmem:[#allocation2 + $0x14] sm:$0x1] }
 0x26c   : > { %4208 = vmatprep.subr.bf16.mxu0 %v4477_v44  ;;  %1239 = vst [vmem:[#allocation2] sm:$0x8] %v1238_v37  ;;  %1242 = vst [vmem:[#allocation2 + $0xc] sm:$0x8] %v1241_v39  ;;  %v1271_v5 = vsel %vm5042_vm5, 0, %v1270_v0  ;;  %v1757_v34 = vshll.u32 %v1737_v23, 16 }
 0x26d   : > { %v1159_v62 = vadd.f32 %v1158_v40, %v1152_v60  ;;  %4187 = vmatpush3.bf16.msra.mxu1 %v4476_v43  ;;  %1245 = vst [vmem:[#allocation2 + $0x18] sm:$0x8] %v1244_v46  ;;  %v1255_v58 = vld [vmem:[#allocation2 + $0x48] sm:$0x8]  ;;  %1272 = vst [vmem:[#allocation2 + $0x8] sm:$0x1] %v1271_v5 }
 0x26e   : > { %4188 = vmatprep.subr.bf16.mxu1 %v4478_v32  ;;  %v1274_v60 = vsel %vm5042_vm5, 0, %v1273_v57  ;;  %v1256_v40 = vsel %vm5017_vm15, 0, %v1255_v58  ;;  %v1325_v35 = vld [vmem:[#allocation2 + $0x30] sm:$0x8]  ;;  %v5089_v46 = vld [vmem:[#allocation2 + $0x3c] sm:$0x8] }
 0x26f   : > { %v1160_v3 = vadd.f32 %v1159_v62, %v1153_v61  ;;  %4209 = vmatpush3.bf16.msra.mxu0 %v4477_v44  ;;  %v1258_v61 = vld [vmem:[#allocation2 + $0x54] sm:$0x8]  ;;  %1275 = vst [vmem:[#allocation2 + $0x14] sm:$0x1] %v1274_v60  ;;  %1257 = vst [vmem:[#allocation2 + $0x48] sm:$0x8] %v1256_v40 }
 0x270   : > { %4210 = vmatprep.subr.bf16.mxu0 %v4479_v36  ;;  %v1259_v62 = vsel %vm5017_vm15, 0, %v1258_v61  ;;  %v1323_v44 = vld [vmem:[#allocation2 + $0x24] sm:$0x8]  ;;  %v1388_v49 = vshrl.u32 %v1325_v35, 16  ;;  %v5093_v38 = vrot.slane %v1757_v34, 5  ;;  %v1401_v58 = vshrl.u32 %v5089_v46, 16 }
 0x271   : > { %v1161_v7 = vadd.f32 %v1160_v3, %v1154_v1  ;;  %4189 = vmatpush3.bf16.msra.mxu1 %v4478_v32  ;;  %v4484_v1 = vld [vmem:[%s5817_s2] sm:$0xff]   ;;  %1260 = vst [vmem:[#allocation2 + $0x54] sm:$0x8] %v1259_v62  ;;  %v5061_v3 = vld [vmem:[%s5817_s2 + $0xf8] sm:$0xff]   ;;  %v1754_v32 = vshrl.u32 %v1737_v23, 16  ;;  %v1375_v42 = vshrl.u32 %v1323_v44, 16 }
 0x272   : > { %4222 = vmatprep.subr.bf16.mxu1 %v5039_v53  ;;  %v3897_v60 = vld [vmem:[%s5819_s4] ss:$0 sm:$0xff]  ;;  %v5112_v61 = vrot.slane %v1388_v49, 11  ;;  %v2022_v49 = vld [vmem:[#allocation2 + $0x24] sm:$0x8] }
 0x273   : > { %v1162_v9 = vadd.f32 %v1161_v7, %v1155_v4  ;;  %4211 = vmatpush3.bf16.msra.mxu0 %v4479_v36  ;;  %v1276_v4 = vld [vmem:[#allocation2 + $0x20] sm:$0x1]  ;;  %v1317_v28 = vld [vmem:[#allocation2] sm:$0x8]  ;;  %v1319_v31 = vld [vmem:[#allocation2 + $0xc] sm:$0x8] }
 0x274   : > { %4212 = vmatprep.subr.bf16.mxu0 %v4484_v1  ;;  %v1277_v7 = vsel %vm5042_vm5, 0, %v1276_v4  ;;  %v1321_v43 = vld [vmem:[#allocation2 + $0x18] sm:$0x8]  ;;  %v1336_v36 = vshrl.u32 %v1317_v28, 16  ;;  %v1349_v37 = vshrl.u32 %v1319_v31, 16  ;;  %v5091_v50 = vrot.slane %v1754_v32, 4 }
 0x275   : > { %v1163_v11 = vadd.f32 %v1162_v9, %v1156_v8  ;;  %1278 = vst [vmem:[#allocation2 + $0x20] sm:$0x1] %v1277_v7  ;;  %v1279_v8 = vld [vmem:[#allocation2 + $0x2c] sm:$0x1]  ;;  %v1282_v9 = vld [vmem:[#allocation2 + $0x38] sm:$0x1] }
 0x276   : > { %v1362_v39 = vshrl.u32 %v1321_v43, 16  ;;  %v5095_v41 = vld [vmem:[#allocation2 + $0x8] sm:$0x1]  ;;  %v5100_v55 = vrot.slane %v1336_v36, 11  ;;  %v5102_v0 = vrot.slane %v1349_v37, 11  ;;  %v5106_v57 = vrot.slane %v1375_v42, 11 }
 0x277   : > { %v1164_v13 = vadd.f32 %v1163_v11, %v1157_v10  ;;  %4213 = vmatpush3.bf16.msra.mxu0 %v4484_v1  ;;  %v1280_v10 = vsel %vm5042_vm5, 0, %v1279_v8  ;;  %v1283_v11 = vsel %vm5042_vm5, 0, %v1282_v9  ;;  %v1760_v62 = vor.u32 %v5093_v38, %v5091_v50  ;;  %v2018_v31 = vld [vmem:[#allocation2 + $0xc] sm:$0x8]  ;;  %v2020_v35 = vld [vmem:[#allocation2 + $0x18] sm:$0x8] }
 0x278   : > { %4246 = vmatprep.subr.bf16.mxu0 %v5061_v3  ;;  %1281 = vst [vmem:[#allocation2 + $0x2c] sm:$0x1] %v1280_v10  ;;  %1284 = vst [vmem:[#allocation2 + $0x38] sm:$0x1] %v1283_v11  ;;  %v5104_v5 = vrot.slane %v1362_v39, 11  ;;  %v1763_v1 = vshll.u32 %v5095_v41, 16 }
 0x279   : > { %1165 = vadd.xlane.f32.xlu1 %v1164_v13  ;;  %v1285_v13 = vld [vmem:[#allocation2 + $0x44] sm:$0x1]  ;;  %v3898_v10 = vld [vmem:[%s5820_s5] ss:$0 sm:$0xff] }
 0x27a   : > { %v1286_v14 = vsel %vm5042_vm5, 0, %v1285_v13  ;;  %v4543_v50 = vld [vmem:[%s5817_s2 + $0x220] sm:$0xff]  }
 0x27b   : > { %1287 = vst [vmem:[#allocation2 + $0x44] sm:$0x1] %v1286_v14 }
 0x27c   : > { %v1742_v42 = vld [vmem:[#allocation2 + $0x20] sm:$0x1] }
 0x282   : > { %v5148_v46 = vld [vmem:[#allocation2 + $0x44] sm:$0x1] }
 0x302   : > { %v1166_v17 = vpop.xlane.xlu1 %1165 }
 0x303   : > { %v1167_v24 = vrot.slane %v1166_v17, 4 }
 0x305   : > { %v1168_v30 = vadd.f32 %v1167_v24, %v1166_v17  ;;  %v1292_v17 = vsel %vm5042_vm5, 0, %v1291_v16  ;;  %v1261_v24 = vld [vmem:[#allocation2 + $0x60] sm:$0x8] }
 0x306   : > { %1293 = vst [vmem:[#allocation2 + $0x5c] sm:$0x1] %v1292_v17 }
 0x307   : > { %v1169_v18 = vrot.slane %v1168_v30, 2 }
 0x309   : > { %v1170_v20 = vadd.f32 %v1169_v18, %v1168_v30  ;;  %v1262_v30 = vsel %vm5017_vm15, 0, %v1261_v24  ;;  %v1294_v18 = vld [vmem:[#allocation2 + $0x68] sm:$0x1] }
 0x30a   : > { %1263 = vst [vmem:[#allocation2 + $0x60] sm:$0x8] %v1262_v30  ;;  %v1295_v26 = vsel %vm5042_vm5, 0, %v1294_v18 }
 0x30b   : > { %v1171_v22 = vrot.slane %v1170_v20, 1  ;;  %1296 = vst [vmem:[#allocation2 + $0x68] sm:$0x1] %v1295_v26 }
 0x30d   : > { %v1172_v19 = vadd.f32 %v1171_v22, %v1170_v20  ;;  %v1264_v20 = vld [vmem:[#allocation2 + $0x6c] sm:$0x8] }
 0x30e   : > { %v1265_v22 = vsel %vm5017_vm15, 0, %v1264_v20 }
 0x30f   : > { %4405 = vpush %v1172_v19  ;;  %1266 = vst [vmem:[#allocation2 + $0x6c] sm:$0x8] %v1265_v22  ;;  %v1298_v19 = vsel %vm5042_vm5, 0, %v1297_v48 }
 0x310   : > { %1299 = vst [vmem:[#allocation2 + $0x74] sm:$0x1] %v1298_v19 }
 0x340   : > { %s4406_s10 = spop %4405 }
 0x341   : > { %s1176_s12 = ssub.f32 %s4406_s10, %s1175_s9 }
 0x343   : > { %s1177_s13 = smul.f32 0.001953125, %s1176_s12 }
 0x345   : > { %s1178_s14 = sadd.f32 1e-05, %s1177_s13 }
 0x347   : > { %v1179_v21 = vstv %s1178_s14 }
 0x348   : > { %4549 = vrsqrt.f32 %v1179_v21 }
 0x355   : > { %v4550_v47 = vpop.eup %4549 }
 0x356   : > { %4407 = vpush %v4550_v47  ;;  %v1329_v47 = vld [vmem:[#allocation2 + $0x48] sm:$0x8] }
 0x387   : > { %s4408_s29 = spop %4407 }
 0x388   : > { %v1182_v40 = vstv %s4408_s29 }
 0x389   : > { %v1183_v4 = vmul.f32 %v1182_v40, %v4943_v29  ;;  %v1184_v7 = vmul.f32 %v1182_v40, %v4945_v56  ;;  %v1185_v8 = vmul.f32 %v1182_v40, %v4947_v54  ;;  %v1186_v9 = vmul.f32 %v1182_v40, %v4949_v52 }
 0x38a   : > { %v1187_v11 = vmul.f32 %v1182_v40, %v4955_v59  ;;  %v1188_v13 = vmul.f32 %v1182_v40, %v4959_v45  ;;  %v1189_v14 = vmul.f32 %v1182_v40, %v4963_v63  ;;  %v1190_v15 = vmul.f32 %v1182_v40, %v4967_v2  ;;  %v1740_v63 = vld [vmem:[#allocation2 + $0x14] sm:$0x1]  ;;  %v1331_v2 = vld [vmem:[#allocation2 + $0x54] sm:$0x8] }
 0x38b   : > { %v1197_v16 = vmul.f32 %v3897_v60, %v1183_v4  ;;  %v1198_v29 = vmul.f32 %v3897_v60, %v1184_v7  ;;  %v1199_v12 = vmul.f32 %v3897_v60, %v1185_v8  ;;  %v1200_v56 = vmul.f32 %v3897_v60, %v1186_v9  ;;  %v1744_v9 = vld [vmem:[#allocation2 + $0x2c] sm:$0x1] }
 0x38c   : > { %v1201_v17 = vmul.f32 %v3897_v60, %v1187_v11  ;;  %v1202_v54 = vmul.f32 %v3897_v60, %v1188_v13  ;;  %v1203_v24 = vmul.f32 %v3897_v60, %v1189_v14  ;;  %v1204_v52 = vmul.f32 %v3897_v60, %v1190_v15  ;;  %v2024_v60 = vld [vmem:[#allocation2 + $0x30] sm:$0x8] }
 0x38d   : > { %v1211_v30 = vadd.f32 %v3898_v10, %v1197_v16  ;;  %v1212_v18 = vadd.f32 %v3898_v10, %v1198_v29  ;;  %v1213_v26 = vadd.f32 %v3898_v10, %v1199_v12  ;;  %v1214_v21 = vadd.f32 %v3898_v10, %v1200_v56 }
 0x38e   : > { %v1215_v59 = vadd.f32 %v3898_v10, %v1201_v17  ;;  %v1216_v20 = vadd.f32 %v3898_v10, %v1202_v54  ;;  %v1217_v45 = vadd.f32 %v3898_v10, %v1203_v24  ;;  %v1218_v22 = vadd.f32 %v3898_v10, %v1204_v52 }
 0x38f   : > { %v1219_v48 = vmax.f32 %v1211_v30, 0.0  ;;  %v1220_v19 = vmax.f32 %v1212_v18, 0.0  ;;  %v1221_v23 = vmax.f32 %v1213_v26, 0.0  ;;  %v1222_v28 = vmax.f32 %v1214_v21, 0.0  ;;  %v5146_v30 = vld [vmem:[#allocation2 + $0x38] sm:$0x1] }
 0x390   : > { %v1223_v43 = vmax.f32 %v1215_v59, 0.0  ;;  %v1224_v44 = vmax.f32 %v1216_v20, 0.0  ;;  %v1225_v32 = vmax.f32 %v1217_v45, 0.0  ;;  %v1226_v34 = vmax.f32 %v1218_v22, 0.0 }
 0x391   : > { %v1300_v33 = vpack.c.bf16 %v1219_v48, %v1219_v48  ;;  %v1301_v36 = vpack.c.bf16 %v1220_v19, %v1220_v19  ;;  %v1302_v37 = vpack.c.bf16 %v1221_v23, %v1221_v23  ;;  %v1303_v39 = vpack.c.bf16 %v1222_v28, %v1222_v28 }
 0x392   : > { %v1304_v40 = vpack.c.bf16 %v1223_v43, %v1223_v43  ;;  %v1305_v4 = vpack.c.bf16 %v1224_v44, %v1224_v44  ;;  %v1306_v7 = vpack.c.bf16 %v1225_v32, %v1225_v32  ;;  %v1307_v8 = vpack.c.bf16 %v1226_v34, %v1226_v34 }
 0x393   : > { %1309 = vst [vmem:[#allocation2 + $0x10] sm:$0xf] %v1300_v33  ;;  %1310 = vst [vmem:[#allocation2 + $0x1c] sm:$0xf] %v1301_v36  ;;  %v1777_v10 = vshll.u32 %v1740_v63, 16  ;;  %v1414_v11 = vshrl.u32 %v1329_v47, 16  ;;  %v5144_v52 = vor.u32 %v1344_v51, %v5097_v25 }
 0x394   : > { %1311 = vst [vmem:[#allocation2 + $0x28] sm:$0xf] %v1302_v37  ;;  %1312 = vst [vmem:[#allocation2 + $0x34] sm:$0xf] %v1303_v39  ;;  %v1427_v13 = vshrl.u32 %v1331_v2, 16  ;;  %v2035_v14 = vshrl.u32 %v2018_v31, 16 }
 0x395   : > { %1313 = vst [vmem:[#allocation2 + $0x40] sm:$0xf] %v1304_v40  ;;  %1314 = vst [vmem:[#allocation2 + $0x4c] sm:$0xf] %v1305_v4  ;;  %v2048_v15 = vshrl.u32 %v2020_v35, 16  ;;  %v1791_v16 = vshll.u32 %v1742_v42, 16  ;;  %v1347_v2 = vsel %vm5154_vm7, %v5100_v55, %v5144_v52 }
 0x396   : > { %1315 = vst [vmem:[#allocation2 + $0x58] sm:$0xf] %v1306_v7  ;;  %1316 = vst [vmem:[#allocation2 + $0x64] sm:$0xf] %v1307_v8  ;;  %v2061_v29 = vshrl.u32 %v2022_v49, 16  ;;  %v2074_v12 = vshrl.u32 %v2024_v60, 16 }
 0x397   : > { %v5130_v56 = vrot.slane %v1401_v58, 11  ;;  %v5135_v17 = vrot.slane %v1760_v62, 4  ;;  %v5139_v54 = vrot.slane %v1763_v1, 5  ;;  %v1805_v24 = vshll.u32 %v1744_v9, 16  ;;  %v5150_v58 = vld [vmem:[#allocation2 + $0x50] sm:$0x1] }
 0x398   : > { %v5158_v38 = vrot.slane %v1777_v10, 5  ;;  %v5160_v41 = vrot.slane %v1414_v11, 11  ;;  %v5162_v62 = vrot.slane %v1427_v13, 11  ;;  %v5164_v25 = vrot.slane %v2035_v14, 11  ;;  %v4485_v55 = vld [vmem:[%s5817_s2 + $0xb0] sm:$0xff]  }
 0x399   : > { %v5166_v51 = vrot.slane %v2048_v15, 11  ;;  %v5168_v1 = vrot.slane %v1791_v16, 5  ;;  %v5170_v18 = vrot.slane %v2061_v29, 11  ;;  %v5172_v26 = vrot.slane %v2074_v12, 11  ;;  %v4487_v15 = vld [vmem:[%s5817_s2 + $0xa8] sm:$0xff]  }
 0x39a   : > { %v5174_v21 = vrot.slane %v1805_v24, 5  ;;  %v1819_v59 = vshll.u32 %v5146_v30, 16  ;;  %v1833_v20 = vshll.u32 %v5148_v46, 16  ;;  %v1847_v45 = vshll.u32 %v5150_v58, 16  ;;  %v1320_v22 = vld [vmem:[#allocation2 + $0x10] sm:$0xf] }
 0x39b   : > { %v1322_v63 = vld [vmem:[#allocation2 + $0x1c] sm:$0xf]  ;;  %v1324_v47 = vld [vmem:[#allocation2 + $0x28] sm:$0xf]  ;;  %v1766_v48 = vsel %vm4699_vm2, %v5135_v17, %v5139_v54  ;;  %v1354_v19 = vshrl.u32 %v1320_v22, 16  ;;  %v1357_v23 = vshll.u32 %v1320_v22, 16  ;;  %v3907_v28 = vcombine.low %v5086_v27, %v1320_v22 }
 0x39c   : > { %v1367_v31 = vshrl.u32 %v1322_v63, 16  ;;  %v1326_v43 = vld [vmem:[#allocation2 + $0x34] sm:$0xf]  ;;  %v1370_v44 = vshll.u32 %v1322_v63, 16  ;;  %v1380_v32 = vshrl.u32 %v1324_v47, 16  ;;  %v1383_v34 = vshll.u32 %v1324_v47, 16 }
 0x39d   : > { %v3908_v35 = vcombine.low %v1322_v63, %v1324_v47  ;;  %v1328_v33 = vld [vmem:[#allocation2 + $0x40] sm:$0xf]  ;;  %v1356_v36 = vrot.slane %v1354_v19, 7  ;;  %4190 = vmatprep.mubr.bf16.mxu1 %v3907_v28  ;;  %v1393_v39 = vshrl.u32 %v1326_v43, 16  ;;  %v1396_v42 = vshll.u32 %v1326_v43, 16  ;;  %v4496_v54 = vld [vmem:[%s5817_s2 + $0x88] sm:$0xff]  }
 0x39e   : > { %v1369_v37 = vrot.slane %v1367_v31, 7  ;;  %v1330_v49 = vld [vmem:[#allocation2 + $0x4c] sm:$0xf]  ;;  %v1382_v60 = vrot.slane %v1380_v32, 7  ;;  %v1406_v27 = vshrl.u32 %v1328_v33, 16  ;;  %v1409_v40 = vshll.u32 %v1328_v33, 16 }
 0x39f   : > { %4191 = vmatmul.mubr.bf16.vlgmr.msra.gmra.mxu1 %v3908_v35  ;;  %v3909_v4 = vcombine.low %v1326_v43, %v1328_v33  ;;  %v1332_v7 = vld [vmem:[#allocation2 + $0x58] sm:$0xf]  ;;  %v1359_v8 = vor.u32 %v1357_v23, %v1356_v36  ;;  %v1395_v10 = vrot.slane %v1393_v39, 7  ;;  %v1419_v11 = vshrl.u32 %v1330_v49, 16  ;;  %v1739_v12 = vld [vmem:[#allocation2 + $0x10] sm:$0xf] }
 0x3a0   : > { %v1372_v9 = vor.u32 %v1370_v44, %v1369_v37  ;;  %4223 = vmatpush3.bf16.msra.mxu1 %v5039_v53  ;;  %v1385_v13 = vor.u32 %v1383_v34, %v1382_v60  ;;  %v1408_v14 = vrot.slane %v1406_v27, 7  ;;  %v1422_v16 = vshll.u32 %v1330_v49, 16  ;;  %v5201_v63 = vld [vmem:[#allocation2 + $0x10] sm:$0xf]  ;;  %v5206_v31 = vld [vmem:[#allocation2 + $0x3c] sm:$0x8] }
 0x3a1   : > { %4194 = vmatprep.mubr.bf16.mxu1 %v3909_v4  ;;  %4224 = vmatprep.subr.bf16.mxu1 %v4485_v55  ;;  %v1432_v29 = vshrl.u32 %v1332_v7, 16  ;;  %v1360_v24 = vsel %vm5154_vm7, %v5102_v0, %v1359_v8  ;;  %v1421_v52 = vrot.slane %v1419_v11, 7  ;;  %v1435_v22 = vshll.u32 %v1332_v7, 16  ;;  %v5214_v33 = vld [vmem:[#allocation2 + $0x1c] sm:$0xf] }
 0x3a2   : > { %v1373_v53 = vsel %vm5154_vm7, %v5104_v5, %v1372_v9  ;;  %v3919_v47 = vcombine.low %v1347_v2, %v1360_v24  ;;  %v1386_v19 = vsel %vm5154_vm7, %v5106_v57, %v1385_v13  ;;  %v3910_v28 = vcombine.low %v1330_v49, %v1332_v7  ;;  %v4489_v5 = vld [vmem:[%s5817_s2 + $0xf0] sm:$0xff]   ;;  %v4490_v57 = vld [vmem:[%s5817_s2 + $0xa0] sm:$0xff]   ;;  %v1743_v49 = vld [vmem:[#allocation2 + $0x28] sm:$0xf] }
 0x3a3   : > { %v1434_v23 = vrot.slane %v1432_v29, 7  ;;  %v3920_v43 = vcombine.low %v1373_v53, %v1386_v19  ;;  %v1398_v0 = vor.u32 %v1396_v42, %v1395_v10  ;;  %v1411_v44 = vor.u32 %v1409_v40, %v1408_v14  ;;  %v1741_v42 = vld [vmem:[#allocation2 + $0x1c] sm:$0xf]  ;;  %v1745_v7 = vld [vmem:[#allocation2 + $0x34] sm:$0xf] }
 0x3a4   : > { %4225 = vmatpush3.bf16.msra.mxu1 %v4485_v55  ;;  %v1768_v32 = vshrl.u32 %v1739_v12, 16  ;;  %4214 = vmatprep.mubr.bf16.mxu0 %v3919_v47  ;;  %v1771_v2 = vshll.u32 %v1739_v12, 16  ;;  %v1424_v34 = vor.u32 %v1422_v16, %v1421_v52  ;;  %v2040_v55 = vshrl.u32 %v5201_v63, 16  ;;  %v4492_v11 = vld [vmem:[%s5817_s2 + $0x98] sm:$0xff]   ;;  %v1747_v24 = vld [vmem:[#allocation2 + $0x40] sm:$0xf] }
 0x3a5   : > { %4226 = vmatprep.subr.bf16.mxu1 %v4487_v15  ;;  %v1437_v35 = vor.u32 %v1435_v22, %v1434_v23  ;;  %4215 = vmatmul.mubr.bf16.vlgmr.msra.gmra.mxu0 %v3920_v43  ;;  %v1399_v36 = vsel %vm5154_vm7, %v5112_v61, %v1398_v0  ;;  %v1412_v37 = vsel %vm5154_vm7, %v5130_v56, %v1411_v44  ;;  %v2087_v60 = vshrl.u32 %v5206_v31, 16  ;;  %v4491_v56 = vld [vmem:[%s5817_s2 + $0xe8] sm:$0xff]   ;;  %v4493_v44 = vld [vmem:[%s5817_s2 + $0xe0] sm:$0xff]   ;;  %v5287_v30 = vld [vmem:[#allocation2 + $0x54] sm:$0x8] }
 0x3a6   : > { %v1770_v39 = vrot.slane %v1768_v32, 4  ;;  %4247 = vmatpush3.bf16.msra.mxu0 %v5061_v3  ;;  %v3921_v27 = vcombine.low %v1399_v36, %v1412_v37  ;;  %v1773_v40 = vrot.slane %v1771_v2, 5  ;;  %v1425_v4 = vsel %vm5154_vm7, %v5160_v41, %v1424_v34  ;;  %v4494_v34 = vld [vmem:[%s5817_s2 + $0x90] sm:$0xff]   ;;  %v5263_v37 = vld [vmem:[#allocation2 + $0x28] sm:$0xf] }
 0x3a7   : > { %4195 = vmatmul.mubr.bf16.gmra.mxu1 %v3910_v28  ;;  %v2043_v61 = vshll.u32 %v5201_v63, 16  ;;  %4248 = vmatprep.subr.bf16.mxu0 %v4489_v5  ;;  %v1438_v3 = vsel %vm5154_vm7, %v5162_v62, %v1437_v35  ;;  %v2042_v8 = vrot.slane %v2040_v55, 7  ;;  %v2053_v9 = vshrl.u32 %v5214_v33, 16  ;;  %v4495_v35 = vld [vmem:[%s5817_s2 + $0xd8] sm:$0xff]   ;;  %v5290_v58 = vld [vmem:[#allocation2 + $0x40] sm:$0xf] }
 0x3a8   : > { %4227 = vmatpush3.bf16.msra.mxu1 %v4487_v15  ;;  %v2056_v10 = vshll.u32 %v5214_v33, 16  ;;  %4218 = vmatprep.mubr.bf16.mxu0 %v3921_v27  ;;  %v1774_v41 = vor.u32 %v1773_v40, %v1770_v39  ;;  %v1782_v13 = vshrl.u32 %v1741_v42, 16  ;;  %v1785_v14 = vshll.u32 %v1741_v42, 16  ;;  %v1749_v42 = vld [vmem:[#allocation2 + $0x4c] sm:$0xf] }
 0x3a9   : > { %4228 = vmatprep.subr.bf16.mxu1 %v4490_v57  ;;  %v1796_v15 = vshrl.u32 %v1743_v49, 16  ;;  %v2045_v16 = vor.u32 %v2043_v61, %v2042_v8  ;;  %v2055_v29 = vrot.slane %v2053_v9, 7  ;;  %v1799_v12 = vshll.u32 %v1743_v49, 16  ;;  %v5268_v27 = vld [vmem:[#allocation2 + $0x34] sm:$0xf] }
 0x3aa   : > { %v1810_v62 = vshrl.u32 %v1745_v7, 16  ;;  %v1775_v53 = vrot.slane %v1774_v41, 4  ;;  %4249 = vmatpush3.bf16.msra.mxu0 %v4489_v5  ;;  %v1784_v52 = vrot.slane %v1782_v13, 4  ;;  %v1787_v22 = vrot.slane %v1785_v14, 5 }
 0x3ab   : > { %v1798_v47 = vrot.slane %v1796_v15, 4  ;;  %4250 = vmatprep.subr.bf16.mxu0 %v4491_v56  ;;  %v3922_v19 = vcombine.low %v1425_v4, %v1438_v3  ;;  %v2046_v23 = vsel %vm5154_vm7, %v5164_v25, %v2045_v16  ;;  %v2058_v28 = vor.u32 %v2056_v10, %v2055_v29  ;;  %v2028_v4 = vld [vmem:[#allocation2 + $0x48] sm:$0x8]  ;;  %v1751_v3 = vld [vmem:[#allocation2 + $0x58] sm:$0xf]  ;;  %v4498_v16 = vld [vmem:[%s5817_s2 + $0x80] sm:$0xff]  }
 0x3ac   : > { %4229 = vmatpush3.bf16.msra.mxu1 %v4490_v57  ;;  %v1801_v43 = vrot.slane %v1799_v12, 5  ;;  %v1780_v0 = vsel %vm4699_vm2, %v1775_v53, %v5158_v38  ;;  %v1788_v32 = vor.u32 %v1787_v22, %v1784_v52  ;;  %v1813_v5 = vshll.u32 %v1745_v7, 16  ;;  %v1752_v57 = vld [vmem:[#allocation2 + $0x5c] sm:$0x1] }
 0x3ad   : > { %4230 = vmatprep.subr.bf16.mxu1 %v4492_v11  ;;  %v1824_v2 = vshrl.u32 %v1747_v24, 16  ;;  %v3931_v25 = vcombine.low %v1766_v48, %v1780_v0  ;;  %4219 = vmatmul.mubr.bf16.gmra.mxu0 %v3922_v19  ;;  %v2059_v38 = vsel %vm5154_vm7, %v5166_v51, %v2058_v28  ;;  %v1827_v36 = vshll.u32 %v1747_v24, 16 }
 0x3ae   : > { %v1802_v55 = vor.u32 %v1801_v43, %v1798_v47  ;;  %4251 = vmatpush3.bf16.msra.mxu0 %v4491_v56  ;;  %v3951_v17 = vcombine.low %v2046_v23, %v2059_v38  ;;  %v1812_v48 = vrot.slane %v1810_v62, 4  ;;  %v1815_v51 = vrot.slane %v1813_v5, 5  ;;  %v5303_v62 = vld [vmem:[#allocation2 + $0x4c] sm:$0xf]  ;;  %v5321_v38 = vld [vmem:[#allocation2 + $0x58] sm:$0xf] }
 0x3af   : > { %v1826_v39 = vrot.slane %v1824_v2, 4  ;;  %4238 = vmatprep.mubr.bf16.mxu1 %v3931_v25  ;;  %v1829_v49 = vrot.slane %v1827_v36, 5  ;;  %v1861_v40 = vshll.u32 %v1752_v57, 16  ;;  %4252 = vmatprep.subr.bf16.mxu0 %v4493_v44  ;;  %v1789_v61 = vrot.slane %v1788_v32, 4 }
 0x3b0   : > { %4231 = vmatpush3.bf16.msra.mxu1 %v4492_v11  ;;  %4262 = vmatprep.mubr.bf16.mxu0 %v3951_v17  ;;  %v5272_v7 = vrot.slane %v1819_v59, 5  ;;  %v5276_v56 = vrot.slane %v1833_v20, 5  ;;  %v5280_v8 = vrot.slane %v1847_v45, 5  ;;  %v1803_v9 = vrot.slane %v1802_v55, 4  ;;  %v4497_v45 = vld [vmem:[%s5817_s2 + $0xd0] sm:$0xff]  }
 0x3b1   : > { %4232 = vmatprep.subr.bf16.mxu1 %v4494_v34  ;;  %v2066_v10 = vshrl.u32 %v5263_v37, 16  ;;  %v1838_v41 = vshrl.u32 %v1749_v42, 16  ;;  %v5285_v11 = vrot.slane %v2087_v60, 11  ;;  %v1816_v46 = vor.u32 %v1815_v51, %v1812_v48  ;;  %v2454_v48 = vld [vmem:[#allocation2 + $0x1c] sm:$0xf] }
 0x3b2   : > { %4253 = vmatpush3.bf16.msra.mxu0 %v4493_v44  ;;  %v1830_v59 = vor.u32 %v1829_v49, %v1826_v39  ;;  %v2079_v20 = vshrl.u32 %v5268_v27, 16  ;;  %v1841_v13 = vshll.u32 %v1749_v42, 16  ;;  %v1852_v31 = vshrl.u32 %v1751_v3, 16  ;;  %v4500_v44 = vld [vmem:[%s5817_s2 + $0x138] sm:$0xff]  }
 0x3b3   : > { %4254 = vmatprep.subr.bf16.mxu0 %v4495_v35  ;;  %v1840_v14 = vrot.slane %v1838_v41, 4  ;;  %v5295_v60 = vrot.slane %v1861_v40, 5  ;;  %v2100_v15 = vshrl.u32 %v2028_v4, 16  ;;  %v1794_v29 = vsel %vm4699_vm2, %v1789_v61, %v5168_v1  ;;  %v4499_v1 = vld [vmem:[%s5817_s2 + $0xc8] sm:$0xff]   ;;  %v2032_v40 = vld [vmem:[#allocation2 + $0x60] sm:$0x8] }
 0x3b4   : > { %4233 = vmatpush3.bf16.msra.mxu1 %v4494_v34  ;;  %v1843_v12 = vrot.slane %v1841_v13, 5  ;;  %v1855_v24 = vshll.u32 %v1751_v3, 16  ;;  %v2113_v53 = vshrl.u32 %v5287_v30, 16  ;;  %v1808_v52 = vsel %vm4699_vm2, %v1803_v9, %v5174_v21  ;;  %v2452_v34 = vld [vmem:[#allocation2 + $0x10] sm:$0xf] }
 0x3b5   : > { %4234 = vmatprep.subr.bf16.mxu1 %v4496_v54  ;;  %v2068_v22 = vrot.slane %v2066_v10, 7  ;;  %v1854_v47 = vrot.slane %v1852_v31, 4  ;;  %v2092_v19 = vshrl.u32 %v5290_v58, 16  ;;  %v1817_v23 = vrot.slane %v1816_v46, 4  ;;  %v2453_v4 = vld [vmem:[#allocation2 + $0x14] sm:$0x1] }
 0x3b6   : > { %4255 = vmatpush3.bf16.msra.mxu0 %v4495_v35  ;;  %v1831_v28 = vrot.slane %v1830_v59, 4  ;;  %v2081_v43 = vrot.slane %v2079_v20, 7  ;;  %v1857_v0 = vrot.slane %v1855_v24, 5  ;;  %v1844_v21 = vor.u32 %v1843_v12, %v1840_v14  ;;  %v2455_v10 = vld [vmem:[#allocation2 + $0x20] sm:$0x1] }
 0x3b7   : > { %4256 = vmatprep.subr.bf16.mxu0 %v4497_v45  ;;  %v2094_v32 = vrot.slane %v2092_v19, 7  ;;  %v5316_v5 = vrot.slane %v2100_v15, 11  ;;  %v2105_v2 = vshrl.u32 %v5303_v62, 16  ;;  %v2069_v57 = vshll.u32 %v5263_v37, 16 }
 0x3b8   : > { %4235 = vmatpush3.bf16.msra.mxu1 %v4496_v54  ;;  %v2082_v25 = vshll.u32 %v5268_v27, 16  ;;  %v3932_v35 = vcombine.low %v1794_v29, %v1808_v52  ;;  %v1858_v55 = vor.u32 %v1857_v0, %v1854_v47  ;;  %v2095_v36 = vshll.u32 %v5290_v58, 16  ;;  %v5324_v54 = vld [vmem:[#allocation2 + $0x64] sm:$0xf]  ;;  %v4503_v47 = vld [vmem:[%s5817_s2 + $0x178] sm:$0xff]  }
 0x3b9   : > { %4236 = vmatprep.subr.bf16.mxu1 %v4498_v16  ;;  %v2107_v17 = vrot.slane %v2105_v2, 7  ;;  %v1822_v51 = vsel %vm4699_vm2, %v1817_v23, %v5272_v7  ;;  %v1836_v39 = vsel %vm4699_vm2, %v1831_v28, %v5276_v56  ;;  %v2071_v42 = vor.u32 %v2069_v57, %v2068_v22  ;;  %v4501_v7 = vld [vmem:[%s5817_s2 + $0xc0] sm:$0xff]   ;;  %v4502_v56 = vld [vmem:[%s5817_s2 + $0x130] sm:$0xff]  }
 0x3ba   : > { %4257 = vmatpush3.bf16.msra.mxu0 %v4497_v45  ;;  %v2084_v49 = vor.u32 %v2082_v25, %v2081_v43  ;;  %v1845_v61 = vrot.slane %v1844_v21, 4  ;;  %v2097_v3 = vor.u32 %v2095_v36, %v2094_v32  ;;  %v2108_v9 = vshll.u32 %v5303_v62, 16 }
 0x3bb   : > { %4258 = vmatprep.subr.bf16.mxu0 %v4499_v1  ;;  %v2469_v41 = vshrl.u32 %v2452_v34, 16  ;;  %v2118_v46 = vshrl.u32 %v5321_v38, 16  ;;  %v2131_v59 = vshrl.u32 %v5324_v54, 16  ;;  %v2472_v20 = vshll.u32 %v2452_v34, 16 }
 0x3bc   : > { %4237 = vmatpush3.bf16.msra.mxu1 %v4498_v16  ;;  %v2483_v13 = vshrl.u32 %v2454_v48, 16  ;;  %v3933_v45 = vcombine.low %v1822_v51, %v1836_v39  ;;  %v1859_v14 = vrot.slane %v1858_v55, 4  ;;  %v2110_v31 = vor.u32 %v2108_v9, %v2107_v17  ;;  %v4507_v17 = vld [vmem:[%s5817_s2 + $0x120] sm:$0xff]  }
 0x3bd   : > { %4270 = vmatprep.subr.bf16.mxu1 %v4500_v44  ;;  %v2471_v15 = vrot.slane %v2469_v41, 4  ;;  %v2126_v16 = vshrl.u32 %v2032_v40, 16  ;;  %v2474_v29 = vrot.slane %v2472_v20, 5  ;;  %v2478_v12 = vshll.u32 %v2453_v4, 16  ;;  %v4508_v40 = vld [vmem:[%s5817_s2 + $0x168] sm:$0xff]   ;;  %v4509_v4 = vld [vmem:[%s5817_s2 + $0x118] sm:$0xff]  }
 0x3be   : > { %4259 = vmatpush3.bf16.msra.mxu0 %v4499_v1  ;;  %v2492_v24 = vshll.u32 %v2455_v10, 16  ;;  %v2072_v52 = vsel %vm5154_vm7, %v5170_v18, %v2071_v42  ;;  %v2085_v22 = vsel %vm5154_vm7, %v5172_v26, %v2084_v49  ;;  %v2485_v19 = vrot.slane %v2483_v13, 4  ;;  %v4504_v26 = vld [vmem:[%s5817_s2 + $0x128] sm:$0xff]   ;;  %v4510_v9 = vld [vmem:[%s5817_s2 + $0x160] sm:$0xff]   ;;  %v4511_v10 = vld [vmem:[%s5817_s2 + $0x110] sm:$0xff]  }
 0x3bf   : > { %4239 = vmatmul.mubr.bf16.vlgmr.msra.gmra.mxu1 %v3932_v35  ;;  %v2486_v23 = vshll.u32 %v2454_v48, 16  ;;  %4260 = vmatprep.subr.bf16.mxu0 %v4501_v7  ;;  %v1850_v28 = vsel %vm4699_vm2, %v1845_v61, %v5280_v8  ;;  %v2098_v18 = vsel %vm5154_vm7, %v5285_v11, %v2097_v3  ;;  %v2120_v43 = vrot.slane %v2118_v46, 7  ;;  %v2456_v41 = vld [vmem:[#allocation2 + $0x28] sm:$0xf]  ;;  %v2459_v46 = vld [vmem:[#allocation2 + $0x38] sm:$0x1] }
 0x3c0   : > { %4242 = vmatprep.mubr.bf16.mxu1 %v3933_v45  ;;  %4271 = vmatpush3.bf16.msra.mxu1 %v4500_v44  ;;  %v2133_v0 = vrot.slane %v2131_v59, 7  ;;  %v1864_v1 = vsel %vm4699_vm2, %v1859_v14, %v5295_v60  ;;  %v2111_v44 = vsel %vm5154_vm7, %v5316_v5, %v2110_v31  ;;  %v2475_v21 = vor.u32 %v2474_v29, %v2471_v15  ;;  %v4506_v5 = vld [vmem:[%s5817_s2 + $0x170] sm:$0xff]   ;;  %v2460_v59 = vld [vmem:[#allocation2 + $0x40] sm:$0xf]  ;;  %v2462_v20 = vld [vmem:[#allocation2 + $0x4c] sm:$0xf] }
 0x3c1   : > { %4272 = vmatprep.subr.bf16.mxu1 %v4502_v56  ;;  %v2488_v8 = vrot.slane %v2486_v23, 5  ;;  %v2121_v32 = vshll.u32 %v5321_v38, 16  ;;  %v2134_v11 = vshll.u32 %v5324_v54, 16  ;;  %v3952_v2 = vcombine.low %v2072_v52, %v2085_v22  ;;  %v4512_v13 = vld [vmem:[%s5817_s2 + $0x158] sm:$0xff]   ;;  %v4513_v45 = vld [vmem:[%s5817_s2 + $0x108] sm:$0xff]   ;;  %v4514_v22 = vld [vmem:[%s5817_s2 + $0x150] sm:$0xff]  }
 0x3c2   : > { %4261 = vmatpush3.bf16.msra.mxu0 %v4501_v7  ;;  %v3949_v57 = vrot.slane %v2113_v53, 11  ;;  %v3950_v25 = vrot.slane %v2126_v16, 11  ;;  %v3934_v60 = vcombine.low %v1850_v28, %v1864_v1  ;;  %v3953_v35 = vcombine.low %v2098_v18, %v2111_v44  ;;  %v2458_v7 = vld [vmem:[#allocation2 + $0x34] sm:$0xf]  ;;  %v2461_v28 = vld [vmem:[#allocation2 + $0x44] sm:$0x1] }
 0x3c3   : > { %4294 = vmatprep.subr.bf16.mxu0 %v4503_v47  ;;  %v2489_v34 = vor.u32 %v2488_v8, %v2485_v19  ;;  %v2123_v55 = vor.u32 %v2121_v32, %v2120_v43  ;;  %v2136_v36 = vor.u32 %v2134_v11, %v2133_v0  ;;  %v2476_v48 = vrot.slane %v2475_v21, 4  ;;  %v5409_v18 = vld [vmem:[#allocation2 + $0x1c] sm:$0xf]  ;;  %v5411_v44 = vld [vmem:[#allocation2 + $0x28] sm:$0xf] }
 0x3c4   : > { %4273 = vmatpush3.bf16.msra.mxu1 %v4502_v56  ;;  %v2480_v51 = vrot.slane %v2478_v12, 5  ;;  %v2494_v53 = vrot.slane %v2492_v24, 5  ;;  %v3963_v39 = vcombine.low %v5201_v63, %v5214_v33  ;;  %v2457_v56 = vld [vmem:[#allocation2 + $0x2c] sm:$0x1]  ;;  %v2497_v14 = vshrl.u32 %v2456_v41, 16 }
 0x3c5   : > { %4274 = vmatprep.subr.bf16.mxu1 %v4504_v26  ;;  %4263 = vmatmul.mubr.bf16.vlgmr.msra.gmra.mxu0 %v3952_v2  ;;  %v2490_v30 = vrot.slane %v2489_v34, 4  ;;  %v2124_v42 = vsel %vm5154_vm7, %v3949_v57, %v2123_v55  ;;  %v2137_v49 = vsel %vm5154_vm7, %v3950_v25, %v2136_v36  ;;  %v2500_v31 = vshll.u32 %v2456_v41, 16  ;;  %v2463_v21 = vld [vmem:[#allocation2 + $0x50] sm:$0x1]  ;;  %v2734_v8 = vld [vmem:[#allocation2 + $0x18] sm:$0x8] }
 0x3c6   : > { %4266 = vmatprep.mubr.bf16.mxu0 %v3953_v35  ;;  %4295 = vmatpush3.bf16.msra.mxu0 %v4503_v47  ;;  %v2481_v63 = vsel %vm4699_vm2, %v2476_v48, %v2480_v51  ;;  %v3954_v61 = vcombine.low %v2124_v42, %v2137_v49  ;;  %v2511_v15 = vshrl.u32 %v2458_v7, 16  ;;  %v2514_v16 = vshll.u32 %v2458_v7, 16  ;;  %v4515_v47 = vld [vmem:[%s5817_s2 + $0x100] sm:$0xff]   ;;  %v2464_v32 = vld [vmem:[#allocation2 + $0x58] sm:$0xf] }
 0x3c7   : > { %4243 = vmatmul.mubr.bf16.gmra.mxu1 %v3934_v60  ;;  %4296 = vmatprep.subr.bf16.mxu0 %v4506_v5  ;;  %v2495_v33 = vsel %vm4699_vm2, %v2490_v30, %v2494_v53  ;;  %v2525_v29 = vshrl.u32 %v2460_v59, 16  ;;  %v2528_v12 = vshll.u32 %v2460_v59, 16  ;;  %v2539_v24 = vshrl.u32 %v2462_v20, 16  ;;  %v2466_v34 = vld [vmem:[#allocation2 + $0x64] sm:$0xf]  ;;  %v4518_v48 = vld [vmem:[%s5817_s2 + $0x1b8] sm:$0xff]  }
 0x3c8   : > { %4275 = vmatpush3.bf16.msra.mxu1 %v4504_v26  ;;  %4286 = vmatprep.mubr.bf16.mxu1 %v3963_v39  ;;  %v3975_v3 = vcombine.low %v2481_v63, %v2495_v33  ;;  %v2542_v52 = vshll.u32 %v2462_v20, 16  ;;  %v2506_v19 = vshll.u32 %v2457_v56, 16  ;;  %v2520_v23 = vshll.u32 %v2459_v46, 16  ;;  %v2465_v56 = vld [vmem:[#allocation2 + $0x5c] sm:$0x1]  ;;  %v4520_v59 = vld [vmem:[%s5817_s2 + $0x140] sm:$0xff]  }
 0x3c9   : > { %4276 = vmatprep.subr.bf16.mxu1 %v4507_v17  ;;  %v2499_v26 = vrot.slane %v2497_v14, 4  ;;  %v2502_v43 = vrot.slane %v2500_v31, 5  ;;  %v2513_v0 = vrot.slane %v2511_v15, 4  ;;  %v2516_v1 = vrot.slane %v2514_v16, 5  ;;  %v2467_v46 = vld [vmem:[#allocation2 + $0x68] sm:$0x1] }
 0x3ca   : > { %4297 = vmatpush3.bf16.msra.mxu0 %v4506_v5  ;;  %v2527_v11 = vrot.slane %v2525_v29, 4  ;;  %v2530_v2 = vrot.slane %v2528_v12, 5  ;;  %v2541_v57 = vrot.slane %v2539_v24, 4  ;;  %v2544_v25 = vrot.slane %v2542_v52, 5  ;;  %v2736_v5 = vld [vmem:[#allocation2 + $0x24] sm:$0x8] }
 0x3cb   : > { %4298 = vmatprep.subr.bf16.mxu0 %v4508_v40  ;;  %v5413_v60 = vrot.slane %v2506_v19, 5  ;;  %v5415_v35 = vrot.slane %v2520_v23, 5  ;;  %v2756_v55 = vshrl.u32 %v5409_v18, 16  ;;  %v2769_v36 = vshrl.u32 %v5411_v44, 16  ;;  %v4522_v19 = vld [vmem:[%s5817_s2 + $0x1f8] sm:$0xff]  }
 0x3cc   : > { %4277 = vmatpush3.bf16.msra.mxu1 %v4507_v17  ;;  %v4516_v17 = vld [vmem:[%s5817_s2 + $0x148] sm:$0xff]   ;;  %v2503_v51 = vor.u32 %v2502_v43, %v2499_v26  ;;  %v2517_v30 = vor.u32 %v2516_v1, %v2513_v0  ;;  %v2534_v53 = vshll.u32 %v2461_v28, 16  ;;  %v2751_v39 = vshrl.u32 %v2734_v8, 16 }
 0x3cd   : > { %4278 = vmatprep.subr.bf16.mxu1 %v4509_v4  ;;  %4267 = vmatmul.mubr.bf16.gmra.mxu0 %v3954_v61  ;;  %v2553_v42 = vshrl.u32 %v2464_v32, 16  ;;  %v2556_v49 = vshll.u32 %v2464_v32, 16  ;;  %v2531_v63 = vor.u32 %v2530_v2, %v2527_v11  ;;  %v2545_v33 = vor.u32 %v2544_v25, %v2541_v57  ;;  %v4524_v0 = vld [vmem:[%s5817_s2 + $0x1a8] sm:$0xff]  }
 0x3ce   : > { %4310 = vmatprep.mubr.bf16.mxu0 %v3975_v3  ;;  %4299 = vmatpush3.bf16.msra.mxu0 %v4508_v40  ;;  %v2567_v40 = vshrl.u32 %v2466_v34, 16  ;;  %v2548_v61 = vshll.u32 %v2463_v21, 16  ;;  %v2764_v3 = vshrl.u32 %v2736_v5, 16  ;;  %v2758_v41 = vrot.slane %v2756_v55, 7  ;;  %v4526_v5 = vld [vmem:[%s5817_s2 + $0x1a0] sm:$0xff]  }
 0x3cf   : > { %4300 = vmatprep.subr.bf16.mxu0 %v4510_v9  ;;  %v2771_v7 = vrot.slane %v2769_v36, 7  ;;  %v2504_v20 = vrot.slane %v2503_v51, 4  ;;  %v2772_v14 = vshll.u32 %v5411_v44, 16  ;;  %v2532_v15 = vrot.slane %v2531_v63, 4  ;;  %v4530_v63 = vld [vmem:[%s5817_s2 + $0x1e0] sm:$0xff]  }
 0x3d0   : > { %4279 = vmatpush3.bf16.msra.mxu1 %v4509_v4  ;;  %v2570_v4 = vshll.u32 %v2466_v34, 16  ;;  %v2536_v16 = vrot.slane %v2534_v53, 5  ;;  %v2546_v29 = vrot.slane %v2545_v33, 4  ;;  %v2550_v12 = vrot.slane %v2548_v61, 5  ;;  %v2738_v53 = vld [vmem:[#allocation2 + $0x30] sm:$0x8] }
 0x3d1   : > { %4280 = vmatprep.subr.bf16.mxu1 %v4511_v10  ;;  %v3987_v24 = vrot.slane %v2751_v39, 11  ;;  %v2562_v23 = vshll.u32 %v2465_v56, 16  ;;  %v2576_v28 = vshll.u32 %v2467_v46, 16  ;;  %v2509_v26 = vsel %vm4699_vm2, %v2504_v20, %v5413_v60  ;;  %v5475_v39 = vld [vmem:[#allocation2 + $0x34] sm:$0xf] }
 0x3d2   : > { %4301 = vmatpush3.bf16.msra.mxu0 %v4510_v9  ;;  %v3964_v9 = vcombine.low %v5263_v37, %v5268_v27  ;;  %v4521_v37 = vld [vmem:[%s5817_s2 + $0x1b0] sm:$0xff]   ;;  %v2555_v27 = vrot.slane %v2553_v42, 4  ;;  %v2572_v31 = vrot.slane %v2570_v4, 5  ;;  %v2537_v8 = vsel %vm4699_vm2, %v2532_v15, %v2536_v16  ;;  %v5477_v42 = vld [vmem:[#allocation2 + $0x40] sm:$0xf] }
 0x3d3   : > { %4302 = vmatprep.subr.bf16.mxu0 %v4512_v13  ;;  %v2551_v32 = vsel %vm4699_vm2, %v2546_v29, %v2550_v12  ;;  %v3966_v25 = vcombine.low %v5321_v38, %v5324_v54  ;;  %v2564_v34 = vrot.slane %v2562_v23, 5  ;;  %v4527_v38 = vld [vmem:[%s5817_s2 + $0x1e8] sm:$0xff]   ;;  %v2740_v33 = vld [vmem:[#allocation2 + $0x3c] sm:$0x8]  ;;  %v4007_v61 = vcombine.low %v5409_v18, %v5411_v44  ;;  %v2744_v56 = vld [vmem:[#allocation2 + $0x54] sm:$0x8] }
 0x3d4   : > { %4281 = vmatpush3.bf16.msra.mxu1 %v4511_v10  ;;  %v3965_v10 = vcombine.low %v5290_v58, %v5303_v62  ;;  %v2558_v58 = vrot.slane %v2556_v49, 5  ;;  %v2569_v62 = vrot.slane %v2567_v40, 4  ;;  %v3977_v60 = vcombine.low %v2537_v8, %v2551_v32  ;;  %v5479_v49 = vld [vmem:[#allocation2 + $0x4c] sm:$0xf]  ;;  %v5481_v40 = vld [vmem:[#allocation2 + $0x58] sm:$0xf] }
 0x3d5   : > { %4282 = vmatprep.subr.bf16.mxu1 %v4513_v45  ;;  %v2808_v46 = vshrl.u32 %v5479_v49, 16  ;;  %v2790_v44 = vshrl.u32 %v2740_v33, 16  ;;  %v3168_v20 = vld [vmem:[#allocation2 + $0x1c] sm:$0xf]  ;;  %v5504_v29 = vld [vmem:[#allocation2 + $0x70] sm:$0xf] }
 0x3d6   : > { %4303 = vmatpush3.bf16.msra.mxu0 %v4512_v13  ;;  %v2518_v13 = vrot.slane %v2517_v30, 4  ;;  %v2559_v1 = vor.u32 %v2558_v58, %v2555_v27  ;;  %v2573_v21 = vor.u32 %v2572_v31, %v2569_v62  ;;  %v4528_v30 = vld [vmem:[%s5817_s2 + $0x198] sm:$0xff]   ;;  %v2816_v58 = vshrl.u32 %v2744_v56, 16  ;;  %v5506_v12 = vld [vmem:[#allocation2 + $0x64] sm:$0xf] }
 0x3d7   : > { %4304 = vmatprep.subr.bf16.mxu0 %v4514_v22  ;;  %v2785_v62 = vshll.u32 %v5475_v39, 16  ;;  %v2810_v15 = vrot.slane %v2808_v46, 7  ;;  %v3990_v23 = vrot.slane %v2790_v44, 11  ;;  %v2746_v32 = vld [vmem:[#allocation2 + $0x60] sm:$0x8]  ;;  %v2837_v46 = vshll.u32 %v5506_v12, 16 }
 0x3d8   : > { %4283 = vmatpush3.bf16.msra.mxu1 %v4513_v45  ;;  %v2759_v45 = vshll.u32 %v5409_v18, 16  ;;  %v2523_v43 = vsel %vm4699_vm2, %v2518_v13, %v5415_v35  ;;  %v4525_v35 = vld [vmem:[%s5817_s2 + $0x1f0] sm:$0xff]   ;;  %v2560_v55 = vrot.slane %v2559_v1, 4  ;;  %v2574_v36 = vrot.slane %v2573_v21, 4  ;;  %v4532_v18 = vld [vmem:[%s5817_s2 + $0x1d8] sm:$0xff]  }
 0x3d9   : > { %4284 = vmatprep.subr.bf16.mxu1 %v4515_v47  ;;  %v3976_v57 = vcombine.low %v2509_v26, %v2523_v43  ;;  %v3170_v13 = vld [vmem:[#allocation2 + $0x28] sm:$0xf]  ;;  %v2811_v26 = vshll.u32 %v5479_v49, 16  ;;  %v2824_v43 = vshll.u32 %v5481_v40, 16  ;;  %v3992_v8 = vrot.slane %v2816_v58, 11  ;;  %v4539_v44 = vld [vmem:[%s5817_s2 + $0x230] sm:$0xff]  }
 0x3da   : > { %4305 = vmatpush3.bf16.msra.mxu0 %v4514_v22  ;;  %v2761_v52 = vor.u32 %v2759_v45, %v2758_v41  ;;  %v3988_v22 = vrot.slane %v2764_v3, 11  ;;  %v2565_v54 = vsel %vm4699_vm2, %v2560_v55, %v2564_v34  ;;  %v4531_v3 = vld [vmem:[%s5817_s2 + $0x190] sm:$0xff]   ;;  %v2742_v41 = vld [vmem:[#allocation2 + $0x48] sm:$0x8]  ;;  %v2748_v34 = vld [vmem:[#allocation2 + $0x6c] sm:$0x8] }
 0x3db   : > { %4306 = vmatprep.subr.bf16.mxu0 %v4516_v17  ;;  %v4533_v45 = vld [vmem:[%s5817_s2 + $0x188] sm:$0xff]   ;;  %v2803_v27 = vshrl.u32 %v2742_v41, 16 }
 0x3dc   : > { %4285 = vmatpush3.bf16.msra.mxu1 %v4515_v47  ;;  %v2774_v47 = vor.u32 %v2772_v14, %v2771_v7  ;;  %v2762_v11 = vsel %vm5154_vm7, %v3987_v24, %v2761_v52  ;;  %v2795_v7 = vshrl.u32 %v5477_v42, 16  ;;  %v3185_v24 = vshrl.u32 %v3168_v20, 16 }
 0x3dd   : > { %4318 = vmatprep.subr.bf16.mxu1 %v4518_v48  ;;  %v3188_v52 = vshll.u32 %v3168_v20, 16  ;;  %v3991_v21 = vrot.slane %v2803_v27, 11 }
 0x3de   : > { %4307 = vmatpush3.bf16.msra.mxu0 %v4516_v17  ;;  %v2775_v2 = vsel %vm5154_vm7, %v3988_v22, %v2774_v47  ;;  %v2578_v17 = vrot.slane %v2576_v28, 5  ;;  %v2797_v31 = vrot.slane %v2795_v7, 7  ;;  %v3199_v22 = vshrl.u32 %v3170_v13, 16 }
 0x3df   : > { %4287 = vmatmul.mubr.bf16.vlgmr.msra.gmra.mxu1 %v3964_v9  ;;  %4308 = vmatprep.subr.bf16.mxu0 %v4520_v59  ;;  %v2777_v9 = vshrl.u32 %v2738_v53, 16  ;;  %v3202_v47 = vshll.u32 %v3170_v13, 16  ;;  %v2798_v28 = vshll.u32 %v5477_v42, 16  ;;  %v3187_v55 = vrot.slane %v3185_v24, 4 }
 0x3e0   : > { %4290 = vmatprep.mubr.bf16.mxu1 %v3965_v10  ;;  %4319 = vmatpush3.bf16.msra.mxu1 %v4518_v48  ;;  %v3995_v48 = vcombine.low %v2762_v11, %v2775_v2  ;;  %v2579_v51 = vsel %vm4699_vm2, %v2574_v36, %v2578_v17  ;;  %v2782_v10 = vshrl.u32 %v5475_v39, 16  ;;  %v2847_v11 = vshrl.u32 %v5504_v29, 16 }
 0x3e1   : > { %4320 = vmatprep.subr.bf16.mxu1 %v4521_v37  ;;  %v3978_v4 = vcombine.low %v2565_v54, %v2579_v51  ;;  %v5501_v14 = vrot.slane %v2777_v9, 11  ;;  %v2800_v2 = vor.u32 %v2798_v28, %v2797_v31  ;;  %v3190_v36 = vrot.slane %v3188_v52, 5  ;;  %v4537_v51 = vld [vmem:[%s5817_s2 + $0x238] sm:$0xff]  }
 0x3e2   : > { %4309 = vmatpush3.bf16.msra.mxu0 %v4520_v59  ;;  %v2821_v59 = vshrl.u32 %v5481_v40, 16  ;;  %v3201_v17 = vrot.slane %v3199_v22, 4  ;;  %v2829_v54 = vshrl.u32 %v2746_v32, 16  ;;  %v2849_v53 = vrot.slane %v2847_v11, 7 }
 0x3e3   : > { %4342 = vmatprep.subr.bf16.mxu0 %v4522_v19  ;;  %v3191_v7 = vor.u32 %v3190_v36, %v3187_v55 }
 0x3e4   : > { %4321 = vmatpush3.bf16.msra.mxu1 %v4521_v37  ;;  %v2784_v37 = vrot.slane %v2782_v10, 7  ;;  %v2823_v16 = vrot.slane %v2821_v59, 7  ;;  %v3993_v20 = vrot.slane %v2829_v54, 11 }
 0x3e5   : > { %4322 = vmatprep.subr.bf16.mxu1 %v4524_v0  ;;  %4311 = vmatmul.mubr.bf16.vlgmr.msra.gmra.mxu0 %v3976_v57  ;;  %v2813_v57 = vor.u32 %v2811_v26, %v2810_v15  ;;  %v3192_v27 = vrot.slane %v3191_v7, 4  ;;  %v4542_v15 = vld [vmem:[%s5817_s2 + $0x228] sm:$0xff]   ;;  %v3172_v26 = vld [vmem:[#allocation2 + $0x34] sm:$0xf] }
 0x3e6   : > { %4314 = vmatprep.mubr.bf16.mxu0 %v3977_v60  ;;  %4343 = vmatpush3.bf16.msra.mxu0 %v4522_v19  ;;  %v4534_v19 = vld [vmem:[%s5817_s2 + $0x1d0] sm:$0xff]   ;;  %v2787_v1 = vor.u32 %v2785_v62, %v2784_v37  ;;  %v2834_v60 = vshrl.u32 %v5506_v12, 16 }
 0x3e7   : > { %4291 = vmatmul.mubr.bf16.gmra.mxu1 %v3966_v25  ;;  %4344 = vmatprep.subr.bf16.mxu0 %v4525_v35  ;;  %v2826_v25 = vor.u32 %v2824_v43, %v2823_v16  ;;  %v2814_v10 = vsel %vm5154_vm7, %v3991_v21, %v2813_v57  ;;  %v3174_v43 = vld [vmem:[#allocation2 + $0x40] sm:$0xf]  ;;  %v4010_v57 = vcombine.low %v5506_v12, %v5504_v29  ;;  %v3177_v12 = vld [vmem:[#allocation2 + $0x50] sm:$0x1] }
 0x3e8   : > { %4323 = vmatpush3.bf16.msra.mxu1 %v4524_v0  ;;  %4334 = vmatprep.mubr.bf16.mxu1 %v3995_v48  ;;  %v4535_v0 = vld [vmem:[%s5817_s2 + $0x180] sm:$0xff]   ;;  %v3204_v48 = vrot.slane %v3202_v47, 5  ;;  %v2788_v33 = vsel %vm5154_vm7, %v5501_v14, %v2787_v1  ;;  %v4008_v47 = vcombine.low %v5475_v39, %v5477_v42  ;;  %v3178_v1 = vld [vmem:[#allocation2 + $0x58] sm:$0xf]  ;;  %v3213_v42 = vshrl.u32 %v3172_v26, 16 }
 0x3e9   : > { %4324 = vmatprep.subr.bf16.mxu1 %v4526_v5  ;;  %v2827_v41 = vsel %vm5154_vm7, %v3992_v8, %v2826_v25  ;;  %v4545_v39 = vld [vmem:[%s5817_s2 + $0x218] sm:$0xff]   ;;  %v3230_v21 = vshll.u32 %v3174_v43, 16  ;;  %v3255_v11 = vshrl.u32 %v3178_v1, 16  ;;  %v4546_v25 = vld [vmem:[%s5817_s2 + $0x210] sm:$0xff]  }
 0x3ea   : > { %4345 = vmatpush3.bf16.msra.mxu0 %v4525_v35  ;;  %v3169_v35 = vld [vmem:[#allocation2 + $0x20] sm:$0x1]  ;;  %v3205_v56 = vor.u32 %v3204_v48, %v3201_v17  ;;  %v3997_v13 = vcombine.low %v2814_v10, %v2827_v41  ;;  %v3182_v17 = vld [vmem:[#allocation2 + $0x70] sm:$0xf] }
 0x3eb   : > { %4346 = vmatprep.subr.bf16.mxu0 %v4527_v38  ;;  %v3232_v36 = vrot.slane %v3230_v21, 5  ;;  %v3257_v54 = vrot.slane %v3255_v11, 4 }
 0x3ec   : > { %4325 = vmatpush3.bf16.msra.mxu1 %v4526_v5  ;;  %v3171_v5 = vld [vmem:[#allocation2 + $0x2c] sm:$0x1]  ;;  %v3206_v62 = vrot.slane %v3205_v56, 4 }
 0x3ed   : > { %4326 = vmatprep.subr.bf16.mxu1 %v4528_v30  ;;  %4315 = vmatmul.mubr.bf16.gmra.mxu0 %v3978_v4  ;;  %v2850_v4 = vshll.u32 %v5504_v29, 16  ;;  %v3208_v9 = vshll.u32 %v3171_v5, 16  ;;  %v4555_v29 = vld [vmem:[%s4635_s11 + $0xd8] ss:$8 sps:$4 sm:$0xff]  }
 0x3ee   : > { %4347 = vmatpush3.bf16.msra.mxu0 %v4527_v38  ;;  %4358 = vmatprep.mubr.bf16.mxu0 %v4007_v61  ;;  %v4536_v38 = vld [vmem:[%s5817_s2 + $0x1c8] sm:$0xff]   ;;  %v2801_v61 = vsel %vm5154_vm7, %v3990_v23, %v2800_v2  ;;  %v4009_v23 = vcombine.low %v5479_v49, %v5481_v40  ;;  %v3216_v49 = vshll.u32 %v3172_v26, 16  ;;  %v3227_v40 = vshrl.u32 %v3174_v43, 16 }
 0x3ef   : > { %4348 = vmatprep.subr.bf16.mxu0 %v4530_v63  ;;  %v3996_v59 = vcombine.low %v2788_v33, %v2801_v61  ;;  %v2852_v37 = vor.u32 %v2850_v4, %v2849_v53  ;;  %v3210_v31 = vrot.slane %v3208_v9, 5  ;;  %v3258_v2 = vshll.u32 %v3178_v1, 16  ;;  %v3179_v53 = vld [vmem:[#allocation2 + $0x5c] sm:$0x1]  ;;  %v4547_v4 = vld [vmem:[%s5817_s2 + $0x208] sm:$0xff]  }
 0x3f0   : > { %4327 = vmatpush3.bf16.msra.mxu1 %v4528_v30  ;;  %v2842_v30 = vshrl.u32 %v2748_v34, 16  ;;  %v3173_v34 = vld [vmem:[#allocation2 + $0x38] sm:$0x1]  ;;  %v3218_v5 = vrot.slane %v3216_v49, 5  ;;  %v3229_v55 = vrot.slane %v3227_v40, 4  ;;  %v3283_v61 = vshrl.u32 %v3182_v17, 16 }
 0x3f1   : > { %4328 = vmatprep.subr.bf16.mxu1 %v4531_v3  ;;  %v3211_v22 = vsel %vm4699_vm2, %v3206_v62, %v3210_v31 }
 0x3f2   : > { %4349 = vmatpush3.bf16.msra.mxu0 %v4530_v63  ;;  %v3194_v63 = vshll.u32 %v3169_v35, 16  ;;  %v3994_v14 = vrot.slane %v2842_v30, 11  ;;  %v3215_v35 = vrot.slane %v3213_v42, 4  ;;  %v3180_v30 = vld [vmem:[#allocation2 + $0x64] sm:$0xf]  ;;  %v3233_v10 = vor.u32 %v3232_v36, %v3229_v55 }
 0x3f3   : > { %4350 = vmatprep.subr.bf16.mxu0 %v4532_v18  ;;  %v3269_v41 = vshrl.u32 %v3180_v30, 16  ;;  %v3272_v7 = vshll.u32 %v3180_v30, 16 }
 0x3f4   : > { %4329 = vmatpush3.bf16.msra.mxu1 %v4531_v3  ;;  %v2836_v3 = vrot.slane %v2834_v60, 7  ;;  %v3196_v58 = vrot.slane %v3194_v63, 5  ;;  %v2853_v24 = vsel %vm5154_vm7, %v3994_v14, %v2852_v37  ;;  %v3175_v60 = vld [vmem:[#allocation2 + $0x44] sm:$0x1]  ;;  %v3222_v63 = vshll.u32 %v3173_v34, 16 }
 0x3f5   : > { %4330 = vmatprep.subr.bf16.mxu1 %v4533_v45  ;;  %v3236_v33 = vshll.u32 %v3175_v60, 16  ;;  %v3219_v9 = vor.u32 %v3218_v5, %v3215_v35  ;;  %v3271_v62 = vrot.slane %v3269_v41, 4  ;;  %v3274_v31 = vrot.slane %v3272_v7, 5  ;;  %v3546_v35 = vld [vmem:[%s5818_s3] sm:$0x3] }
 0x3f6   : > { %4351 = vmatpush3.bf16.msra.mxu0 %v4532_v18  ;;  %v4538_v18 = vld [vmem:[%s5817_s2 + $0x1c0] sm:$0xff]   ;;  %v3197_v52 = vsel %vm4699_vm2, %v3192_v27, %v3196_v58  ;;  %v3234_v27 = vrot.slane %v3233_v10, 4  ;;  %v3181_v58 = vld [vmem:[#allocation2 + $0x68] sm:$0x1]  ;;  %v3560_v55 = vsel %vm1053_vm3, %v3546_v35, 0 }
 0x3f7   : > { %4352 = vmatprep.subr.bf16.mxu0 %v4534_v19  ;;  %v4019_v28 = vcombine.low %v3197_v52, %v3211_v22  ;;  %v3220_v37 = vrot.slane %v3219_v9, 4  ;;  %v3183_v22 = vld [vmem:[#allocation2 + $0x74] sm:$0x1] }
 0x3f8   : > { %4331 = vmatpush3.bf16.msra.mxu1 %v4533_v45  ;;  %v2839_v45 = vor.u32 %v2837_v46, %v2836_v3  ;;  %v3286_v3 = vshll.u32 %v3182_v17, 16  ;;  %v3250_v46 = vshll.u32 %v3177_v12, 16  ;;  %v3292_v26 = vshll.u32 %v3183_v22, 16  ;;  %v4558_v12 = vld [vmem:[%s4635_s11 + $0x108] ss:$8 sps:$4 sm:$0xff]  }
 0x3f9   : > { %4332 = vmatprep.subr.bf16.mxu1 %v4535_v0 }
 0x3fa   : > { %4353 = vmatpush3.bf16.msra.mxu0 %v4534_v19  ;;  %v2840_v16 = vsel %vm5154_vm7, %v3993_v20, %v2839_v45  ;;  %v3224_v20 = vrot.slane %v3222_v63, 5  ;;  %v3285_v45 = vrot.slane %v3283_v61, 4  ;;  %v3288_v14 = vrot.slane %v3286_v3, 5 }
 0x3fb   : > { %4354 = vmatprep.subr.bf16.mxu0 %v4536_v38  ;;  %v3998_v19 = vcombine.low %v2840_v16, %v2853_v24  ;;  %v3252_v16 = vrot.slane %v3250_v46, 5  ;;  %v3294_v21 = vrot.slane %v3292_v26, 5 }
 0x3fc   : > { %4333 = vmatpush3.bf16.msra.mxu1 %v4535_v0  ;;  %v3176_v0 = vld [vmem:[#allocation2 + $0x4c] sm:$0xf] }
 0x3fd   : > { %4366 = vmatprep.subr.bf16.mxu1 %v4537_v51  ;;  %v3241_v8 = vshrl.u32 %v3176_v0, 16  ;;  %v3244_v32 = vshll.u32 %v3176_v0, 16 }
 0x3fe   : > { %4355 = vmatpush3.bf16.msra.mxu0 %v4536_v38 }
 0x3ff   : > { %4335 = vmatmul.mubr.bf16.vlgmr.msra.gmra.mxu1 %v3996_v59  ;;  %4356 = vmatprep.subr.bf16.mxu0 %v4538_v18  ;;  %v3243_v48 = vrot.slane %v3241_v8, 4  ;;  %v3246_v38 = vrot.slane %v3244_v32, 5 }
 0x400   : > { %4338 = vmatprep.mubr.bf16.mxu1 %v3997_v13  ;;  %4367 = vmatpush3.bf16.msra.mxu1 %v4537_v51  ;;  %v3260_v51 = vrot.slane %v3258_v2, 5  ;;  %v3238_v13 = vrot.slane %v3236_v33, 5 }
 0x401   : > { %4368 = vmatprep.subr.bf16.mxu1 %v4539_v44  ;;  %v3247_v56 = vor.u32 %v3246_v38, %v3243_v48  ;;  %v4556_v48 = vld [vmem:[%s4635_s11 + $0xe8] ss:$8 sps:$4 sm:$0xff]   ;;  %v4557_v38 = vld [vmem:[%s4635_s11 + $0xf8] ss:$8 sps:$4 sm:$0xff]  }
 0x402   : > { %4357 = vmatpush3.bf16.msra.mxu0 %v4538_v18  ;;  %v3261_v59 = vor.u32 %v3260_v51, %v3257_v54  ;;  %v3264_v18 = vshll.u32 %v3179_v53, 16 }
 0x403   : > { %4401 = vmatprep.subr.msk.bf16.mxu0 %vm1053_vm3, %v3546_v35 }
 0x404   : > { %4369 = vmatpush3.bf16.msra.mxu1 %v4539_v44  ;;  %v4548_v44 = vld [vmem:[%s5817_s2 + $0x200] sm:$0xff]   ;;  %v3262_v24 = vrot.slane %v3261_v59, 4  ;;  %v3266_v52 = vrot.slane %v3264_v18, 5 }
 0x405   : > { %4370 = vmatprep.subr.bf16.mxu1 %v4542_v15  ;;  %4359 = vmatmul.mubr.bf16.vlgmr.msra.gmra.mxu0 %v4008_v47  ;;  %v3278_v47 = vshll.u32 %v3181_v58, 16 }
 0x406   : > { %4362 = vmatprep.mubr.bf16.mxu0 %v4009_v23  ;;  %v3225_v23 = vsel %vm4699_vm2, %v3220_v37, %v3224_v20  ;;  %v3267_v0 = vsel %vm4699_vm2, %v3262_v24, %v3266_v52  ;;  %4391 = vmatpush3.bf16.msra.mxu0 %v3560_v55 }
 0x407   : > { %4339 = vmatmul.mubr.bf16.gmra.mxu1 %v3998_v19  ;;  %v3289_v19 = vor.u32 %v3288_v14, %v3285_v45 }
 0x408   : > { %4371 = vmatpush3.bf16.msra.mxu1 %v4542_v15  ;;  %4382 = vmatprep.mubr.bf16.mxu1 %v4019_v28  ;;  %v3248_v15 = vrot.slane %v3247_v56, 4  ;;  %v3275_v28 = vor.u32 %v3274_v31, %v3271_v62 }
 0x409   : > { %4372 = vmatprep.subr.bf16.mxu1 %v4543_v50  ;;  %v3290_v40 = vrot.slane %v3289_v19, 4 }
 0x40a   : > { %v3253_v43 = vsel %vm4699_vm2, %v3248_v15, %v3252_v16  ;;  %v3276_v49 = vrot.slane %v3275_v28, 4 }
 0x40b   : > { %v4021_v42 = vcombine.low %v3253_v43, %v3267_v0  ;;  %v3295_v32 = vsel %vm4699_vm2, %v3290_v40, %v3294_v21 }
 0x40c   : > { %4373 = vmatpush3.bf16.msra.mxu1 %v4543_v50  ;;  %v3239_v50 = vsel %vm4699_vm2, %v3234_v27, %v3238_v13 }
 0x40d   : > { %4374 = vmatprep.subr.bf16.mxu1 %v4545_v39  ;;  %4363 = vmatmul.mubr.bf16.gmra.mxu0 %v4010_v57  ;;  %v4020_v1 = vcombine.low %v3225_v23, %v3239_v50 }
 0x40e   : > { %4392 = vmatprep.mubr.msk.bf16.mxu0 %vm948_vm4, %v4555_v29 }
 0x410   : > { %4375 = vmatpush3.bf16.msra.mxu1 %v4545_v39  ;;  %v3280_v39 = vrot.slane %v3278_v47, 5 }
 0x411   : > { %4376 = vmatprep.subr.bf16.mxu1 %v4546_v25 }
 0x412   : > { %v3281_v8 = vsel %vm4699_vm2, %v3276_v49, %v3280_v39 }
 0x413   : > { %v4022_v11 = vcombine.low %v3281_v8, %v3295_v32 }
 0x414   : > { %4377 = vmatpush3.bf16.msra.mxu1 %v4546_v25 }
 0x415   : > { %4378 = vmatprep.subr.bf16.mxu1 %v4547_v4  ;;  %4393 = vmatmul.mubr.msk.bf16.vlgmr.msra.gmra.mxu0 %vm948_vm4, %v4556_v48 }
 0x416   : > { %4396 = vmatprep.mubr.msk.bf16.mxu0 %vm948_vm4, %v4557_v38 }
 0x418   : > { %4379 = vmatpush3.bf16.msra.mxu1 %v4547_v4 }
 0x419   : > { %4380 = vmatprep.subr.bf16.mxu1 %v4548_v44 }
 0x41c   : > { %4381 = vmatpush3.bf16.msra.mxu1 %v4548_v44 }
 0x41d   : > { %4397 = vmatmul.mubr.msk.bf16.gmra.mxu0 %vm948_vm4, %v4558_v12 }
 0x41f   : > { %4383 = vmatmul.mubr.bf16.vlgmr.msra.gmra.mxu1 %v4020_v1 }
 0x420   : > { %4386 = vmatprep.mubr.bf16.mxu1 %v4021_v42 }
 0x427   : > { %4387 = vmatmul.mubr.bf16.gmra.mxu1 %v4022_v11 }
 0x45f   : > { %v5588_v2 = vpop.f32.mrf.mxu1 }
 0x461   : > { %v5590_v57 = vpop.f32.mrf.mxu1 }
 0x463   : > { %v5592_v25 = vpop.f32.mrf.mxu1 }
 0x465   : > { %v5594_v34 = vpop.f32.mrf.mxu1  ;;  %v5596_v60 = vpop.f32.mrf.mxu0 }
 0x466   : > { %v1715_v48 = vadd.f32 %v5596_v60, %v5588_v2 }
 0x467   : > { %v5601_v6 = vpop.f32.mrf.mxu1  ;;  %v1706_v5 = vpop.f32.mrf.mxu0 }
 0x468   : > { %v1707_v32 = vadd.f32 %v1706_v5, %v5590_v57 }
 0x469   : > { %v5605_v36 = vpop.f32.mrf.mxu1  ;;  %v4217_v17 = vpop.f32.mrf.mxu0 }
 0x46b   : > { %v5611_v54 = vpop.f32.mrf.mxu1  ;;  %v1709_v51 = vpop.f32.mrf.mxu0 }
 0x46c   : > { %v1710_v11 = vadd.f32 %v1709_v51, %v5594_v34 }
 0x46d   : > { %v5613_v30 = vpop.f32.mrf.mxu1  ;;  %v5615_v29 = vpop.f32.mrf.mxu0 }
 0x46f   : > { %v1722_v4 = vpop.f32.mrf.mxu0 }
 0x471   : > { %v5619_v33 = vpop.f32.mrf.mxu0 }
 0x473   : > { %v1725_v3 = vpop.f32.mrf.mxu0 }
 0x47f   : > { %v4240_v53 = vpop.f32.mrf.mxu1 }
 0x481   : > { %v1979_v63 = vpop.f32.mrf.mxu1 }
 0x482   : > { %v2010_v38 = vadd.f32 %v1979_v63, %v1707_v32 }
 0x483   : > { %v4241_v61 = vpop.f32.mrf.mxu1 }
 0x485   : > { %v1982_v9 = vpop.f32.mrf.mxu1  ;;  %v4264_v10 = vpop.f32.mrf.mxu0 }
 0x486   : > { %v2011_v12 = vadd.f32 %v1982_v9, %v1710_v11 }
 0x487   : > { %v5621_v41 = vpop.f32.mrf.mxu1  ;;  %v2252_v7 = vpop.f32.mrf.mxu0 }
 0x489   : > { %v1995_v56 = vpop.f32.mrf.mxu1  ;;  %v4265_v46 = vpop.f32.mrf.mxu0 }
 0x48b   : > { %v5623_v59 = vpop.f32.mrf.mxu1  ;;  %v2255_v18 = vpop.f32.mrf.mxu0 }
 0x48c   : > { %5832 = vst [vmem:[#allocation3_spill] sm:$0xff] %v5623_v59 }
 0x48d   : > { %v1998_v44 = vpop.f32.mrf.mxu1  ;;  %v5625_v20 = vpop.f32.mrf.mxu0 }
 0x48e   : > { %5833 = vst [vmem:[#allocation4_spill] sm:$0xff] %v5625_v20 }
 0x48f   : > { %v2268_v45 = vpop.f32.mrf.mxu0 }
 0x491   : > { %v5627_v37 = vpop.f32.mrf.mxu0 }
 0x492   : > { %5834 = vst [vmem:[#allocation5_spill] sm:$0xff] %v5627_v37 }
 0x493   : > { %v2271_v58 = vpop.f32.mrf.mxu0 }
 0x49f   : > { %v4288_v13 = vpop.f32.mrf.mxu1 }
 0x4a1   : > { %v2413_v14 = vpop.f32.mrf.mxu1 }
 0x4a3   : > { %v4289_v27 = vpop.f32.mrf.mxu1 }
 0x4a5   : > { %v2416_v62 = vpop.f32.mrf.mxu1  ;;  %v4312_v31 = vpop.f32.mrf.mxu0 }
 0x4a7   : > { %v5629_v15 = vpop.f32.mrf.mxu1  ;;  %v2694_v16 = vpop.f32.mrf.mxu0 }
 0x4a8   : > { %5835 = vst [vmem:[#allocation6_spill] sm:$0xff] %v5629_v15  ;;  %v1723_v15 = vadd.f32 %v1722_v4, %v5605_v36 }
 0x4a9   : > { %v2429_v24 = vpop.f32.mrf.mxu1  ;;  %v4313_v52 = vpop.f32.mrf.mxu0 }
 0x4aa   : > { %v2014_v59 = vadd.f32 %v1995_v56, %v1723_v15 }
 0x4ab   : > { %v5631_v22 = vpop.f32.mrf.mxu1  ;;  %v2697_v47 = vpop.f32.mrf.mxu0 }
 0x4ac   : > { %5836 = vst [vmem:[#allocation7_spill] sm:$0xff] %v5631_v22  ;;  %v2283_v22 = vadd.f32 %v2252_v7, %v2010_v38  ;;  %v2287_v36 = vadd.f32 %v2268_v45, %v2014_v59 }
 0x4ad   : > { %v2432_v19 = vpop.f32.mrf.mxu1  ;;  %v5633_v23 = vpop.f32.mrf.mxu0 }
 0x4ae   : > { %5837 = vst [vmem:[#allocation8_spill] sm:$0xff] %v5633_v23  ;;  %v2012_v23 = vadd.f32 %v4240_v53, %v1715_v48  ;;  %v2444_v5 = vadd.f32 %v2413_v14, %v2283_v22 }
 0x4af   : > { %v2710_v28 = vpop.f32.mrf.mxu0 }
 0x4b0   : > { %v2285_v34 = vadd.f32 %v4264_v10, %v2012_v23  ;;  %v2725_v9 = vadd.f32 %v2694_v16, %v2444_v5 }
 0x4b1   : > { %v5635_v43 = vpop.f32.mrf.mxu0 }
 0x4b2   : > { %5838 = vst [vmem:[#allocation9_spill] sm:$0xff] %v5635_v43  ;;  %v1718_v43 = vadd.f32 %v4217_v17, %v5592_v25  ;;  %v2446_v63 = vadd.f32 %v4288_v13, %v2285_v34  ;;  %v1731_v17 = vadd.f32 %v5615_v29, %v5601_v6  ;;  %v5841_v29 = vld [vmem:[#allocation3_spill] sm:$0xff] }
 0x4b3   : > { %v2713_v1 = vpop.f32.mrf.mxu0 }
 0x4b4   : > { %v2013_v57 = vadd.f32 %v4241_v61, %v1718_v43  ;;  %v2727_v61 = vadd.f32 %v4312_v31, %v2446_v63 }
 0x4b6   : > { %v2286_v60 = vadd.f32 %v4265_v46, %v2013_v57  ;;  %v2448_v46 = vadd.f32 %v2429_v24, %v2287_v36  ;;  %v5844_v24 = vld [vmem:[#allocation6_spill] sm:$0xff] }
 0x4b8   : > { %v2729_v31 = vadd.f32 %v2710_v28, %v2448_v46  ;;  %v5845_v28 = vld [vmem:[#allocation7_spill] sm:$0xff] }
 0x4b9   : > { %v5847_v57 = vld [vmem:[#allocation9_spill] sm:$0xff] }
 0x4bf   : > { %v4336_v50 = vpop.f32.mrf.mxu1 }
 0x4c0   : > { %v3001_v15 = vadd.f32 %v4336_v50, %v2727_v61 }
 0x4c1   : > { %v2968_v26 = vpop.f32.mrf.mxu1 }
 0x4c2   : > { %v2999_v10 = vadd.f32 %v2968_v26, %v2725_v9 }
 0x4c3   : > { %v4337_v0 = vpop.f32.mrf.mxu1 }
 0x4c5   : > { %v2971_v39 = vpop.f32.mrf.mxu1  ;;  %v4360_v42 = vpop.f32.mrf.mxu0 }
 0x4c6   : > { %v3162_v26 = vadd.f32 %v4360_v42, %v3001_v15 }
 0x4c7   : > { %v5637_v49 = vpop.f32.mrf.mxu1  ;;  %v3129_v40 = vpop.f32.mrf.mxu0 }
 0x4c8   : > { %5839 = vst [vmem:[#allocation10_spill] sm:$0xff] %v5637_v49  ;;  %v2284_v49 = vadd.f32 %v2255_v18, %v2011_v12  ;;  %v2447_v18 = vadd.f32 %v4289_v27, %v2286_v60  ;;  %v3160_v16 = vadd.f32 %v3129_v40, %v2999_v10 }
 0x4c9   : > { %v2984_v21 = vpop.f32.mrf.mxu1  ;;  %v4361_v8 = vpop.f32.mrf.mxu0 }
 0x4ca   : > { %v2445_v51 = vadd.f32 %v2416_v62, %v2284_v49  ;;  %v2728_v62 = vadd.f32 %v4313_v52, %v2447_v18 }
 0x4cb   : > { %v5641_v35 = vpop.f32.mrf.mxu1  ;;  %v3132_v55 = vpop.f32.mrf.mxu0 }
 0x4cc   : > { %5840 = vst [vmem:[#allocation11_spill] sm:$0xff] %v5641_v35  ;;  %v1726_v35 = vadd.f32 %v1725_v3, %v5613_v30  ;;  %v2726_v25 = vadd.f32 %v2697_v47, %v2445_v51  ;;  %v1734_v30 = vadd.f32 %v5619_v33, %v5611_v54  ;;  %v2016_v3 = vadd.f32 %v5621_v41, %v1731_v17  ;;  %v5843_v41 = vld [vmem:[#allocation5_spill] sm:$0xff] }
 0x4cd   : > { %v2987_v37 = vpop.f32.mrf.mxu1  ;;  %v5647_v20 = vpop.f32.mrf.mxu0  ;;  %v3002_v23 = vadd.f32 %v4337_v0, %v2728_v62  ;;  %v5846_v0 = vld [vmem:[#allocation8_spill] sm:$0xff] }
 0x4ce   : > { %v2015_v53 = vadd.f32 %v1998_v44, %v1726_v35  ;;  %v3000_v14 = vadd.f32 %v2971_v39, %v2726_v25  ;;  %v2017_v59 = vadd.f32 %v5841_v29, %v1734_v30  ;;  %v5842_v44 = vld [vmem:[#allocation4_spill] sm:$0xff]  ;;  %v3003_v39 = vadd.f32 %v2984_v21, %v2729_v31 }
 0x4cf   : > { %v3145_v4 = vpop.f32.mrf.mxu0  ;;  %v2289_v45 = vadd.f32 %v5842_v44, %v2016_v3  ;;  %v3163_v49 = vadd.f32 %v4361_v8, %v3002_v23  ;;  %v5848_v5 = vld [vmem:[#allocation10_spill] sm:$0xff] }
 0x4d0   : > { %v2288_v56 = vadd.f32 %v2271_v58, %v2015_v53  ;;  %v3161_v6 = vadd.f32 %v3132_v55, %v3000_v14  ;;  %v2290_v58 = vadd.f32 %v5843_v41, %v2017_v59  ;;  %v3164_v48 = vadd.f32 %v3145_v4, %v3003_v39 }
 0x4d1   : > { %v4365_v22 = vpop.f32.mrf.mxu0  ;;  %v2450_v52 = vadd.f32 %v5844_v24, %v2289_v45 }
 0x4d2   : > { %v2449_v27 = vadd.f32 %v2432_v19, %v2288_v56  ;;  %v2451_v32 = vadd.f32 %v5845_v28, %v2290_v58 }
 0x4d3   : > { %v2731_v42 = vadd.f32 %v5846_v0, %v2450_v52  ;;  %v3148_v11 = vpop.f32.mrf.mxu0  ;;  %v5849_v63 = vld [vmem:[#allocation11_spill] sm:$0xff] }
 0x4d4   : > { %v2730_v50 = vadd.f32 %v2713_v1, %v2449_v27  ;;  %v2732_v34 = vadd.f32 %v5847_v57, %v2451_v32 }
 0x4d5   : > { %v3005_v21 = vadd.f32 %v5848_v5, %v2731_v42  ;;  %v5671_v10 = vpop.f32.mrf.mxu0 }
 0x4d6   : > { %v3004_v55 = vadd.f32 %v2987_v37, %v2730_v50  ;;  %v3006_v9 = vadd.f32 %v5849_v63, %v2732_v34 }
 0x4d7   : > { %v3166_v25 = vadd.f32 %v5647_v20, %v3005_v21  ;;  %v5673_v14 = vpop.f32.mrf.mxu0 }
 0x4d8   : > { %v3165_v8 = vadd.f32 %v3148_v11, %v3004_v55  ;;  %v3167_v36 = vadd.f32 %v4365_v22, %v3006_v9 }
 0x4d9   : > { %v5675_v30 = vpop.f32.mrf.mxu0 }
 0x4db   : > { %v5677_v3 = vpop.f32.mrf.mxu0 }
 0x4dc   : > { %v3627_v20 = vadd.f32 %v5677_v3, %v5673_v14 }
 0x4dd   : > { %v5681_v56 = vpop.f32.mrf.mxu0 }
 0x4de   : > { %v3628_v46 = vadd.f32 %v5671_v10, %v3627_v20 }
 0x4df   : > { %v4384_v2 = vpop.f32.mrf.mxu1 }
 0x4e0   : > { %v3443_v40 = vadd.f32 %v4384_v2, %v3162_v26  ;;  %v3629_v62 = vadd.f32 %v5675_v30, %v3628_v46 }
 0x4e1   : > { %v3410_v7 = vpop.f32.mrf.mxu1 }
 0x4e2   : > { %v5657_v54 = vadd.f32 %v3410_v7, %v3160_v16 }
 0x4e3   : > { %v4385_v13 = vpop.f32.mrf.mxu1 }
 0x4e4   : > { %v3444_v38 = vadd.f32 %v4385_v13, %v3163_v49  ;;  %v5684_v13 = vpop.f32.mrf.mxu0 }
 0x4e5   : > { %v3413_v47 = vpop.f32.mrf.mxu1  ;;  %v3630_v16 = vadd.f32 %v3629_v62, %v5684_v13 }
 0x4e6   : > { %v5659_v33 = vadd.f32 %v3413_v47, %v3161_v6  ;;  %v5687_v15 = vpop.f32.mrf.mxu0 }
 0x4e7   : > { %v4388_v43 = vpop.f32.mrf.mxu1 }
 0x4e8   : > { %v3451_v19 = vadd.f32 %v5659_v33, %v5657_v54  ;;  %v3447_v37 = vadd.f32 %v4388_v43, %v3166_v25  ;;  %v5690_v6 = vpop.f32.mrf.mxu0 }
 0x4e9   : > { %v3426_v35 = vpop.f32.mrf.mxu1  ;;  %v3631_v29 = vadd.f32 %v3630_v16, %v5690_v6 }
 0x4ea   : > { %v3452_v12 = vadd.f32 %v3451_v19, %v3443_v40  ;;  %v3445_v51 = vadd.f32 %v3426_v35, %v3164_v48 }
 0x4eb   : > { %v4389_v1 = vpop.f32.mrf.mxu1  ;;  %v3632_v59 = vadd.f32 %v5681_v56, %v3631_v29 }
 0x4ec   : > { %v3453_v2 = vadd.f32 %v3452_v12, %v3444_v38  ;;  %v3448_v7 = vadd.f32 %v4389_v1, %v3167_v36 }
 0x4ed   : > { %v3429_v60 = vpop.f32.mrf.mxu1  ;;  %v3633_v44 = vadd.f32 %v5687_v15, %v3632_v59 }
 0x4ee   : > { %v3454_v17 = vadd.f32 %v3453_v2, %v3445_v51  ;;  %v3446_v53 = vadd.f32 %v3429_v60, %v3165_v8 }
 0x4ef   : > { %3634 = vadd.xlane.f32.xlu1 %v3633_v44 }
 0x4f0   : > { %v3455_v4 = vadd.f32 %v3454_v17, %v3446_v53 }
 0x4f2   : > { %v3456_v18 = vadd.f32 %v3455_v4, %v3447_v37 }
 0x4f4   : > { %v3457_v61 = vadd.f32 %v3456_v18, %v3448_v7 }
 0x4f6   : > { %3458 = vadd.xlane.f32.xlu0 %v3457_v61 }
 0x578   : > { %v3635_v63 = vpop.xlane.xlu1 %3634 }
 0x579   : > { %v3636_v9 = vrot.slane %v3635_v63, 4 }
 0x57b   : > { %v3637_v25 = vadd.f32 %v3636_v9, %v3635_v63 }
 0x57f   : > { %v3459_v45 = vpop.xlane.xlu0 %3458 }
 0x580   : > { %v3460_v27 = vrot.slane %v3459_v45, 4 }
 0x582   : > { %v3461_v31 = vadd.f32 %v3460_v27, %v3459_v45 }
 0x584   : > { %v3462_v22 = vrot.slane %v3461_v31, 2 }
 0x586   : > { %v3463_v47 = vadd.f32 %v3462_v22, %v3461_v31 }
 0x588   : > { %v3464_v23 = vrot.slane %v3463_v47, 1 }
 0x58a   : > { %v3465_v26 = vadd.f32 %v3464_v23, %v3463_v47 }
 0x58c   : > { %4409 = vpush %v3465_v26 }
 0x5bd   : > { %s4410_s11 = spop %4409 }
 0x5be   : > { %s5695_s15 = smul.f32 0.001953125, %s4410_s11 }
 0x5c0   : > { %v3468_v41 = vstv %s5695_s15  ;;  %s3501_s16 = smul.f32 %s5695_s15, %s5695_s15 }
 0x5c1   : > { %v5699_v58 = vsub.f32 %v5657_v54, %v3468_v41  ;;  %v5702_v24 = vsub.f32 %v5659_v33, %v3468_v41  ;;  %v5704_v52 = vsub.f32 %v3443_v40, %v3468_v41  ;;  %v5706_v50 = vsub.f32 %v3444_v38, %v3468_v41 }
 0x5c2   : > { %v5712_v49 = vsub.f32 %v3445_v51, %v3468_v41  ;;  %v5716_v28 = vsub.f32 %v3446_v53, %v3468_v41  ;;  %v5720_v32 = vsub.f32 %v3447_v37, %v3468_v41  ;;  %v5724_v11 = vsub.f32 %v3448_v7, %v3468_v41  ;;  %s3502_s17 = smul.f32 7680.0, %s3501_s16  ;;  %s4039_s16 = sshll.u32 %s5853_s28, 6 }
 0x5c3   : > { %v3477_v43 = vmul.f32 %v5699_v58, %v5699_v58  ;;  %v3478_v39 = vmul.f32 %v5702_v24, %v5702_v24  ;;  %v3479_v19 = vmul.f32 %v5704_v52, %v5704_v52  ;;  %v3480_v33 = vmul.f32 %v5706_v50, %v5706_v50 }
 0x5c4   : > { %v3481_v0 = vmul.f32 %v5712_v49, %v5712_v49  ;;  %v3482_v35 = vmul.f32 %v5716_v28, %v5716_v28  ;;  %v3483_v48 = vmul.f32 %v5720_v32, %v5720_v32  ;;  %v3484_v12 = vmul.f32 %v5724_v11, %v5724_v11 }
 0x5c5   : > { %v3485_v54 = vadd.f32 %v3478_v39, %v3477_v43  ;;  %v3638_v53 = vrot.slane %v3637_v25, 2 }
 0x5c7   : > { %v3486_v40 = vadd.f32 %v3485_v54, %v3479_v19  ;;  %v3639_v36 = vadd.f32 %v3638_v53, %v3637_v25 }
 0x5c9   : > { %v3487_v42 = vadd.f32 %v3486_v40, %v3480_v33  ;;  %v3640_v37 = vrot.slane %v3639_v36, 1 }
 0x5cb   : > { %v3488_v55 = vadd.f32 %v3487_v42, %v3481_v0  ;;  %v3641_v7 = vadd.f32 %v3640_v37, %v3639_v36 }
 0x5cd   : > { %v3489_v38 = vadd.f32 %v3488_v55, %v3482_v35 }
 0x5cf   : > { %v3490_v57 = vadd.f32 %v3489_v38, %v3483_v48  ;;  %v4031_v48 = vld [vmem:[%s5821_s6] ss:$0 sm:$0xff] }
 0x5d1   : > { %v3491_v34 = vadd.f32 %v3490_v57, %v3484_v12 }
 0x5d3   : > { %3492 = vadd.xlane.f32.xlu0 %v3491_v34 }
 0x65c   : > { %v3493_v1 = vpop.xlane.xlu0 %3492 }
 0x65d   : > { %v3494_v5 = vrot.slane %v3493_v1, 4 }
 0x65f   : > { %v3495_v21 = vadd.f32 %v3494_v5, %v3493_v1 }
 0x661   : > { %v3496_v8 = vrot.slane %v3495_v21, 2 }
 0x663   : > { %v3497_v51 = vadd.f32 %v3496_v8, %v3495_v21  ;;  %v4032_v8 = vld [vmem:[%s5822_s7] ss:$0 sm:$0xff] }
 0x665   : > { %v3498_v2 = vrot.slane %v3497_v51, 1 }
 0x667   : > { %v3499_v60 = vadd.f32 %v3498_v2, %v3497_v51 }
 0x669   : > { %4411 = vpush %v3499_v60 }
 0x69a   : > { %s4412_s18 = spop %4411 }
 0x69b   : > { %s3503_s19 = ssub.f32 %s4412_s18, %s3502_s17 }
 0x69d   : > { %s3504_s20 = smul.f32 0.001953125, %s3503_s19  ;;  %s310_s19 = scalar_lea.vmem %s5823_s8, %s4039_s16 }
 0x69f   : > { %s3505_s21 = sadd.f32 1e-05, %s3504_s20 }
 0x6a1   : > { %v3506_v17 = vstv %s3505_s21 }
 0x6a2   : > { %4551 = vrsqrt.f32 %v3506_v17 }
 0x6af   : > { %v4552_v4 = vpop.eup %4551 }
 0x6b0   : > { %4413 = vpush %v4552_v4 }
 0x6b1   : > { %4415 = vpush %v3641_v7 }
 0x6e1   : > { %s5734_s22 = spop %4413 }
 0x6e2   : > { %s4416_s23 = spop %4415  ;;  %v3509_v35 = vstv %s5734_s22 }
 0x6e3   : > { %s5736_s24 = smul.f32 0.001953125, %s4416_s23  ;;  %v3510_v55 = vmul.f32 %v3509_v35, %v5699_v58  ;;  %v3511_v38 = vmul.f32 %v3509_v35, %v5702_v24  ;;  %v3512_v12 = vmul.f32 %v3509_v35, %v5704_v52  ;;  %v3513_v57 = vmul.f32 %v3509_v35, %v5706_v50 }
 0x6e4   : > { %v3514_v34 = vmul.f32 %v3509_v35, %v5712_v49  ;;  %v3515_v1 = vmul.f32 %v3509_v35, %v5716_v28  ;;  %v3516_v5 = vmul.f32 %v3509_v35, %v5720_v32  ;;  %v3517_v21 = vmul.f32 %v3509_v35, %v5724_v11 }
 0x6e5   : > { %v3644_v18 = vstv %s5736_s24  ;;  %s3677_s25 = smul.f32 %s5736_s24, %s5736_s24  ;;  %v3524_v58 = vmul.f32 %v4031_v48, %v3510_v55  ;;  %v3525_v51 = vmul.f32 %v4031_v48, %v3511_v38  ;;  %v3526_v24 = vmul.f32 %v4031_v48, %v3512_v12 }
 0x6e6   : > { %v5740_v61 = vsub.f32 %v5673_v14, %v3644_v18  ;;  %v5743_v20 = vsub.f32 %v5677_v3, %v3644_v18  ;;  %v5746_v46 = vsub.f32 %v5671_v10, %v3644_v18  ;;  %v5749_v62 = vsub.f32 %v5675_v30, %v3644_v18 }
 0x6e7   : > { %v5756_v59 = vsub.f32 %v5684_v13, %v3644_v18  ;;  %v5761_v44 = vsub.f32 %v5690_v6, %v3644_v18  ;;  %v5766_v45 = vsub.f32 %v5681_v56, %v3644_v18  ;;  %v5771_v13 = vsub.f32 %v5687_v15, %v3644_v18  ;;  %s3678_s26 = smul.f32 7680.0, %s3677_s25 }
 0x6e8   : > { %v3653_v16 = vmul.f32 %v5740_v61, %v5740_v61  ;;  %v3654_v29 = vmul.f32 %v5743_v20, %v5743_v20  ;;  %v3655_v14 = vmul.f32 %v5746_v46, %v5746_v46  ;;  %v3656_v10 = vmul.f32 %v5749_v62, %v5749_v62 }
 0x6e9   : > { %v3657_v27 = vmul.f32 %v5756_v59, %v5756_v59  ;;  %v3658_v22 = vmul.f32 %v5761_v44, %v5761_v44  ;;  %v3659_v47 = vmul.f32 %v5766_v45, %v5766_v45  ;;  %v3660_v56 = vmul.f32 %v5771_v13, %v5771_v13 }
 0x6ea   : > { %v3661_v3 = vadd.f32 %v3654_v29, %v3653_v16  ;;  %v3527_v2 = vmul.f32 %v4031_v48, %v3513_v57  ;;  %v3528_v52 = vmul.f32 %v4031_v48, %v3514_v34  ;;  %v3529_v60 = vmul.f32 %v4031_v48, %v3515_v1 }
 0x6eb   : > { %v3530_v50 = vmul.f32 %v4031_v48, %v3516_v5  ;;  %v3531_v63 = vmul.f32 %v4031_v48, %v3517_v21  ;;  %v3538_v49 = vadd.f32 %v4032_v8, %v3524_v58  ;;  %v3539_v28 = vadd.f32 %v4032_v8, %v3525_v51 }
 0x6ec   : > { %v3662_v30 = vadd.f32 %v3661_v3, %v3655_v14  ;;  %v3540_v9 = vadd.f32 %v4032_v8, %v3526_v24  ;;  %v3541_v32 = vadd.f32 %v4032_v8, %v3527_v2  ;;  %v3542_v25 = vadd.f32 %v4032_v8, %v3528_v52 }
 0x6ed   : > { %v3543_v11 = vadd.f32 %v4032_v8, %v3529_v60  ;;  %v3544_v17 = vadd.f32 %v4032_v8, %v3530_v50  ;;  %v3545_v53 = vadd.f32 %v4032_v8, %v3531_v63 }
 0x6ee   : > { %v3663_v31 = vadd.f32 %v3662_v30, %v3656_v10 }
 0x6f0   : > { %v3664_v6 = vadd.f32 %v3663_v31, %v3657_v27 }
 0x6f2   : > { %v3665_v23 = vadd.f32 %v3664_v6, %v3658_v22 }
 0x6f4   : > { %v3666_v26 = vadd.f32 %v3665_v23, %v3659_v47 }
 0x6f6   : > { %v3667_v41 = vadd.f32 %v3666_v26, %v3660_v56 }
 0x6f8   : > { %3668 = vadd.xlane.f32.xlu0 %v3667_v41 }
 0x781   : > { %v3669_v43 = vpop.xlane.xlu0 %3668 }
 0x782   : > { %v3670_v39 = vrot.slane %v3669_v43, 4 }
 0x784   : > { %v3671_v19 = vadd.f32 %v3670_v39, %v3669_v43 }
 0x786   : > { %v3672_v15 = vrot.slane %v3671_v19, 2 }
 0x788   : > { %v3673_v54 = vadd.f32 %v3672_v15, %v3671_v19 }
 0x78a   : > { %v3674_v33 = vrot.slane %v3673_v54, 1 }
 0x78c   : > { %v3675_v40 = vadd.f32 %v3674_v33, %v3673_v54 }
 0x78e   : > { %4417 = vpush %v3675_v40 }
 0x7bf   : > { %s4418_s30 = spop %4417 }
 0x7c0   : > { %s3679_s9 = ssub.f32 %s4418_s30, %s3678_s26 }
 0x7c2   : > { %s3680_s10 = smul.f32 0.001953125, %s3679_s9 }
 0x7c4   : > { %s3681_s12 = sadd.f32 1e-05, %s3680_s10 }
 0x7c6   : > { %v3682_v0 = vstv %s3681_s12 }
 0x7c7   : > { %4553 = vrsqrt.f32 %v3682_v0 }
 0x7d4   : > { %v4554_v42 = vpop.eup %4553 }
 0x7d5   : > { %4419 = vpush %v4554_v42 }
 0x806   : > { %s4420_s15 = spop %4419 }
 0x807   : > { %v3685_v36 = vstv %s4420_s15 }
 0x808   : > { %v3686_v37 = vmul.f32 %v3685_v36, %v5740_v61  ;;  %v3687_v4 = vmul.f32 %v3685_v36, %v5743_v20  ;;  %v3688_v7 = vmul.f32 %v3685_v36, %v5746_v46  ;;  %v3689_v18 = vmul.f32 %v3685_v36, %v5749_v62 }
 0x809   : > { %v3690_v16 = vmul.f32 %v3685_v36, %v5756_v59  ;;  %v3691_v29 = vmul.f32 %v3685_v36, %v5761_v44  ;;  %v3692_v14 = vmul.f32 %v3685_v36, %v5766_v45  ;;  %v3693_v3 = vmul.f32 %v3685_v36, %v5771_v13 }
 0x80a   : > { %v3694_v10 = vmul.f32 %v4031_v48, %v3686_v37  ;;  %v3695_v30 = vmul.f32 %v4031_v48, %v3687_v4  ;;  %v3696_v27 = vmul.f32 %v4031_v48, %v3688_v7  ;;  %v3697_v31 = vmul.f32 %v4031_v48, %v3689_v18 }
 0x80b   : > { %v3698_v61 = vmul.f32 %v4031_v48, %v3690_v16  ;;  %v3699_v22 = vmul.f32 %v4031_v48, %v3691_v29  ;;  %v3700_v6 = vmul.f32 %v4031_v48, %v3692_v14  ;;  %v3701_v20 = vmul.f32 %v4031_v48, %v3693_v3 }
 0x80c   : > { %v3702_v46 = vadd.f32 %v4032_v8, %v3694_v10  ;;  %v3703_v47 = vadd.f32 %v4032_v8, %v3695_v30  ;;  %v3704_v62 = vadd.f32 %v4032_v8, %v3696_v27  ;;  %v3705_v23 = vadd.f32 %v4032_v8, %v3697_v31 }
 0x80d   : > { %v3706_v59 = vadd.f32 %v4032_v8, %v3698_v61  ;;  %v3707_v56 = vadd.f32 %v4032_v8, %v3699_v22  ;;  %v3708_v44 = vadd.f32 %v4032_v8, %v3700_v6  ;;  %v3709_v26 = vadd.f32 %v4032_v8, %v3701_v20 }
 0x80e   : > { %v3710_v45 = vadd.f32 %v3702_v46, %v3538_v49  ;;  %v3711_v41 = vadd.f32 %v3703_v47, %v3539_v28  ;;  %v3712_v13 = vadd.f32 %v3704_v62, %v3540_v9  ;;  %v3713_v43 = vadd.f32 %v3705_v23, %v3541_v32 }
 0x80f   : > { %v3714_v39 = vadd.f32 %v3706_v59, %v3542_v25  ;;  %v3715_v19 = vadd.f32 %v3707_v56, %v3543_v11  ;;  %v3716_v15 = vadd.f32 %v3708_v44, %v3544_v17  ;;  %v3717_v54 = vadd.f32 %v3709_v26, %v3545_v53 }
 0x810   : > { %v3718_v33 = vmax.f32 %v3710_v45, 0.0  ;;  %v3719_v40 = vmax.f32 %v3711_v41, 0.0  ;;  %v3720_v0 = vmax.f32 %v3712_v13, 0.0  ;;  %v3721_v42 = vmax.f32 %v3713_v43, 0.0 }
 0x811   : > { %v3722_v35 = vmax.f32 %v3714_v39, 0.0  ;;  %v3723_v55 = vmax.f32 %v3715_v19, 0.0  ;;  %v3724_v48 = vmax.f32 %v3716_v15, 0.0  ;;  %v3725_v38 = vmax.f32 %v3717_v54, 0.0 }
 0x812   : > { %3726 = vst [vmem:[%s310_s19] sm:$0xff] %v3718_v33  ;;  %3727 = vst [vmem:[%s310_s19 + $0x8] sm:$0xff] %v3719_v40 }
 0x813   : > { %3728 = vst [vmem:[%s310_s19 + $0x10] sm:$0xff] %v3720_v0  ;;  %3729 = vst [vmem:[%s310_s19 + $0x18] sm:$0xff] %v3721_v42 }
 0x814   : > { %3730 = vst [vmem:[%s310_s19 + $0x20] sm:$0xff] %v3722_v35  ;;  %3731 = vst [vmem:[%s310_s19 + $0x28] sm:$0xff] %v3723_v55 }
 0x815   : > { %3732 = vst [vmem:[%s310_s19 + $0x30] sm:$0xff] %v3724_v48  ;;  %3733 = vst [vmem:[%s310_s19 + $0x38] sm:$0xff] %v3725_v38 }
 0x816 PF: > { %s18_s27 = sadd.s32 1, %s4565_s27  }
 0x817   : > { %p15_p5 = scmp.ge.s32.totalorder %s18_s27, 4  }
 0x819   :  { %17 = sbr.rel (!%p15_p5) target bundleno = 1 (0x1), region = 90 }

</bundles_post_ra>
